<compile_context>
chip_gen: v7x
topology: tpu7x:2x2x1
jax: 0.10.0
libtpu: 0.0.40
codegen_flags: <defaults>
</compile_context>

<pallas_src>
import functools

import jax
import jax.numpy as jnp
from jax.experimental import pallas as pl
from jax.experimental.pallas import tpu as pltpu


# ----------------------------------------------------------------------------
# Pallas kernel (Bblk batch elements per grid step)
# ----------------------------------------------------------------------------
def _quater_attention_kernel(x4_ref, xf_ref, wh_ref, bh_ref, ww_ref, bw_ref,
                             kbh_ref, kbw_ref, wg_ref, rh_ref, rw_ref,
                             mh_ref, mw_ref, o_ref):
    f32 = jnp.float32
    bblk, c, h, w = x4_ref.shape
    hw = h * w
    n_taps = mh_ref.shape[0]
    half = n_taps // 2
    dot = functools.partial(jnp.dot, preferred_element_type=f32)

    # --- pooled descriptors, batch-stacked along lanes -----------------------
    xh_avg, xh_max, xw_avg, xw_max = [], [], [], []
    for b in range(bblk):                         # static, small
        xb = x4_ref[b].astype(f32)                # (C, H, W)
        xh_avg.append(jnp.mean(xb, axis=2))       # (C, H)   mean over W
        xh_max.append(jnp.max(xb, axis=2))        # (C, H)   max  over W
        xw_avg.append(jnp.mean(xb, axis=1))       # (C, W)   mean over H
        xw_max.append(jnp.max(xb, axis=1))        # (C, W)   max  over H
    Xh = jnp.concatenate(xh_avg + xh_max, axis=1)  # (C, 2*Bblk*H)
    Xw = jnp.concatenate(xw_avg + xw_max, axis=1)  # (C, 2*Bblk*W)
    nh = bblk * h
    nw = bblk * w

    # --- 1x1 conv + folded BN + ReLU (avg & max fused into one matmul) -------
    Hact = jnp.maximum(dot(wh_ref[...], Xh) + bh_ref[...], 0.0)   # (Crp, 2*Nh)
    Wact = jnp.maximum(dot(ww_ref[...], Xw) + bw_ref[...], 0.0)   # (Crp, 2*Nw)
    HA = jnp.concatenate([Hact[:, :nh], Hact[:, nh:]], axis=0)    # (2Crp, Nh)
    WA = jnp.concatenate([Wact[:, :nw], Wact[:, nw:]], axis=0)    # (2Crp, Nw)

    # --- 7-tap spatial conv: one matmul over stacked shifted activations -----
    mh = mh_ref[...]                               # (7, Nh) validity masks
    mw = mw_ref[...]                               # (7, Nw)
    zpad_h = jnp.zeros((HA.shape[0], half), f32)
    zpad_w = jnp.zeros((WA.shape[0], half), f32)
    HAp = jnp.concatenate([zpad_h, HA, zpad_h], axis=1)   # (2Crp, Nh + 2*half)
    WAp = jnp.concatenate([zpad_w, WA, zpad_w], axis=1)   # (2Crp, Nw + 2*half)
    ha_parts, wa_parts = [], []
    for k in range(n_taps):                        # static taps
        s = k - half
        ha_parts.append(HAp[:, half + s: half + s + nh] * mh[k:k + 1, :])
        wa_parts.append(WAp[:, half + s: half + s + nw] * mw[k:k + 1, :])
    HA_stack = jnp.concatenate(ha_parts, axis=0)   # (7*2Crp, Nh)
    WA_stack = jnp.concatenate(wa_parts, axis=0)   # (7*2Crp, Nw)
    h_sp = dot(kbh_ref[...], HA_stack)             # (Crp, Nh)
    w_sp = dot(kbw_ref[...], WA_stack)             # (Crp, Nw)

    # --- gating ---------------------------------------------------------------
    # Per-batch H/W broadcast via small batch-shared selector matmuls, then one
    # lane-dense (C, Crp) x (Crp, Bblk*H*W) gating matmul + full-width stores.
    rh = rh_ref[...]                               # (H, HW)  y-selector
    rw = rw_ref[...]                               # (W, HW)  x-selector
    parts = []
    for b in range(bblk):
        hb = dot(h_sp[:, b * h:(b + 1) * h], rh)   # (Crp, HW)
        wb = dot(w_sp[:, b * w:(b + 1) * w], rw)   # (Crp, HW)
        parts.append(hb * wb)
    P = jnp.concatenate(parts, axis=1)             # (Crp, Bblk*HW), HW-aligned
    g = dot(wg_ref[...], P)                        # (C,   Bblk*HW)
    sig = jax.nn.sigmoid(g)
    for b in range(bblk):
        xb = xf_ref[b].astype(f32)                 # (C, H*W) lane-dense
        o_ref[b] = (xb * sig[:, b * hw:(b + 1) * hw]).astype(o_ref.dtype)


# ----------------------------------------------------------------------------
# Wrapper
# ----------------------------------------------------------------------------
def quater_attention_pallas(x, kparams, block_b=None):
    wh, bh, ww, bw, kbh, kbw, wg = kparams
    B, C, H, W = x.shape
    HW = H * W
    crp = wh.shape[0]
    n_taps = kbh.shape[1] // (2 * crp)
    f32 = jnp.float32

    if block_b is None:
        block_b = min(B, 8)
        while B % block_b:
            block_b -= 1
    assert B % block_b == 0

    # small, batch-shared selector matrices for the h/w broadcasts
    col = jnp.arange(HW)
    cy, cx = col // W, col % W
    Rh = (jnp.arange(H)[:, None] == cy[None, :]).astype(f32)   # (H, HW)
    Rw = (jnp.arange(W)[:, None] == cx[None, :]).astype(f32)   # (W, HW)

    # per-tap validity masks for the in-block +/-3 shifts (zero-padding effect)
    def shift_mask(n_pos):
        pos = jnp.arange(block_b * n_pos) % n_pos
        sh = jnp.arange(n_taps)[:, None] - n_taps // 2
        return ((pos[None, :] + sh >= 0) & (pos[None, :] + sh < n_pos)).astype(f32)

    Mh = shift_mask(H)                              # (7, block_b*H)
    Mw = shift_mask(W)                              # (7, block_b*W)

    x_flat = x.reshape(B, C, HW)                    # lane-dense view for gating

    def const_spec(a):
        z = (0,) * a.ndim
        return pl.BlockSpec(a.shape, lambda g, z=z: z)

    out = pl.pallas_call(
        _quater_attention_kernel,
        out_shape=jax.ShapeDtypeStruct((B, C, HW), x.dtype),
        grid=(B // block_b,),
        in_specs=[
            pl.BlockSpec((block_b, C, H, W), lambda g: (g, 0, 0, 0)),  # x (NCHW view)
            pl.BlockSpec((block_b, C, HW), lambda g: (g, 0, 0)),       # x (lane-dense)
            const_spec(wh), const_spec(bh), const_spec(ww), const_spec(bw),
            const_spec(kbh), const_spec(kbw), const_spec(wg),
            const_spec(Rh), const_spec(Rw), const_spec(Mh), const_spec(Mw),
        ],
        out_specs=pl.BlockSpec((block_b, C, HW), lambda g: (g, 0, 0)),
        compiler_params=pltpu.CompilerParams(
            dimension_semantics=("parallel",)),
    )(x, x_flat, wh, bh, ww, bw, kbh, kbw, wg, Rh, Rw, Mh, Mw)
    return out.reshape(B, C, H, W)


# ----------------------------------------------------------------------------
# Deterministic parameter construction (mirrors QUATER_ATTENTION.__init__)
# ----------------------------------------------------------------------------
def init_params(key, in_planes, ratio, pad_to=8):
    cr = in_planes // ratio
    crp = ((cr + pad_to - 1) // pad_to) * pad_to
    eps = 1e-5
    ks = jax.random.split(key, 13)
    f32 = jnp.float32

    def rnd(k, shape, scale=0.1):
        return (scale * jax.random.normal(k, shape)).astype(f32)

    # raw module parameters
    fc_h_w = rnd(ks[0], (cr, in_planes))              # Conv2d(C, Cr, 1).weight[:,:,0,0]
    fc_w_w = rnd(ks[1], (cr, in_planes))
    conv_h_w = rnd(ks[2], (cr, 2 * cr, 7, 7))         # conv_h_sptial.weight
    conv_w_w = rnd(ks[3], (cr, 2 * cr, 7, 7))         # conv_w_sptial.weight
    fc_gen_w = rnd(ks[4], (in_planes, cr))            # fc_general.weight[:,:,0,0]

    gamma_h = (1.0 + 0.1 * jax.random.normal(ks[5], (cr,))).astype(f32)
    beta_h = rnd(ks[6], (cr,))
    mean_h = rnd(ks[7], (cr,))
    var_h = jax.random.uniform(ks[8], (cr,), minval=0.5, maxval=1.5).astype(f32)

    gamma_w = (1.0 + 0.1 * jax.random.normal(ks[9], (cr,))).astype(f32)
    beta_w = rnd(ks[10], (cr,))
    mean_w = rnd(ks[11], (cr,))
    var_w = jax.random.uniform(ks[12], (cr,), minval=0.5, maxval=1.5).astype(f32)

    # fold BN (inference mode) into the bias-free 1x1 convs; pad Cr -> Crp
    scale_h = gamma_h / jnp.sqrt(var_h + eps)
    shift_h = beta_h - mean_h * scale_h
    scale_w = gamma_w / jnp.sqrt(var_w + eps)
    shift_w = beta_w - mean_w * scale_w

    wh = jnp.zeros((crp, in_planes), f32).at[:cr].set(scale_h[:, None] * fc_h_w)
    bh = jnp.zeros((crp, 1), f32).at[:cr, 0].set(shift_h)
    ww = jnp.zeros((crp, in_planes), f32).at[:cr].set(scale_w[:, None] * fc_w_w)
    bw = jnp.zeros((crp, 1), f32).at[:cr, 0].set(shift_w)

    # 7x7 conv on (H,1)/(1,W) collapses to 7 center-column/row taps.
    # Pack all taps: Kbig[:, k*2Crp:(k+1)*2Crp] = [K_avg_k | K_max_k] (zero-padded).
    def pack_taps(conv_w, collapse_width):
        taps = conv_w[:, :, :, 3] if collapse_width else conv_w[:, :, 3, :]  # (cr, 2cr, 7)
        blocks = []
        for k in range(7):
            blk = jnp.zeros((crp, 2 * crp), f32)
            blk = blk.at[:cr, :cr].set(taps[:, :cr, k])
            blk = blk.at[:cr, crp:crp + cr].set(taps[:, cr:, k])
            blocks.append(blk)
        return jnp.concatenate(blocks, axis=1)        # (crp, 7*2*crp)

    kbh = pack_taps(conv_h_w, collapse_width=True)    # h-branch: input (H,1), kx=3 only
    kbw = pack_taps(conv_w_w, collapse_width=False)   # w-branch: input (1,W), ky=3 only

    wg = jnp.zeros((in_planes, crp), f32).at[:, :cr].set(fc_gen_w)

    kparams = (wh, bh, ww, bw, kbh, kbw, wg)
    raw = (fc_h_w, scale_h, shift_h, fc_w_w, scale_w, shift_w,
           conv_h_w, conv_w_w, fc_gen_w)
    return kparams, raw


# ----------------------------------------------------------------------------
# Pure-JAX reference (faithful to the PyTorch forward, inference-mode BN)
# ----------------------------------------------------------------------------
def quater_attention_ref(x, raw):
    (fc_h_w, scale_h, shift_h, fc_w_w, scale_w, shift_w,
     conv_h_w, conv_w_w, fc_gen_w) = raw

    def fc_bn_relu(t, w2, scale, shift):
        y = jnp.einsum('oc,bchw->bohw', w2, t, precision='highest')
        y = y * scale[None, :, None, None] + shift[None, :, None, None]
        return jnp.maximum(y, 0.0)

    xh_avg = jnp.mean(x, axis=3, keepdims=True)
    xh_max = jnp.max(x, axis=3, keepdims=True)
    xw_avg = jnp.mean(x, axis=2, keepdims=True)
    xw_max = jnp.max(x, axis=2, keepdims=True)

    h_avg = fc_bn_relu(xh_avg, fc_h_w, scale_h, shift_h)
    h_max = fc_bn_relu(xh_max, fc_h_w, scale_h, shift_h)
    w_avg = fc_bn_relu(xw_avg, fc_w_w, scale_w, shift_w)
    w_max = fc_bn_relu(xw_max, fc_w_w, scale_w, shift_w)

    def conv7(t, w):
        return jax.lax.conv_general_dilated(
            t, w, window_strides=(1, 1), padding=((3, 3), (3, 3)),
            dimension_numbers=('NCHW', 'OIHW', 'NCHW'),
            precision=jax.lax.Precision.HIGHEST)

    h_sp = conv7(jnp.concatenate([h_avg, h_max], axis=1), conv_h_w)  # (B,Cr,H,1)
    w_sp = conv7(jnp.concatenate([w_avg, w_max], axis=1), conv_w_w)  # (B,Cr,1,W)

    hw = h_sp * w_sp                                                  # (B,Cr,H,W)
    gen = jnp.einsum('oc,bchw->bohw', fc_gen_w, hw, precision='highest')
    return x * jax.nn.sigmoid(gen)


# ----------------------------------------------------------------------------
if __name__ == "__main__":
    B, in_planes, ratio, H, W = 2, 32, 8, 16, 16

    key = jax.random.PRNGKey(0)
    kx, kp = jax.random.split(key)
    x = jax.random.normal(kx, (B, in_planes, H, W), dtype=jnp.float32)

    kparams, raw = init_params(kp, in_planes, ratio)

    out = jax.block_until_ready(quater_attention_pallas(x, kparams))
    ref = jax.block_until_ready(quater_attention_ref(x, raw))

    assert out.shape == (B, in_planes, H, W)
    err = float(jnp.max(jnp.abs(out - ref)))
    assert jnp.allclose(out, ref, atol=1e-2, rtol=1e-2), err

    print("KERNEL_OK")
</pallas_src>

<mosaic_0001>
module attributes {stable_mosaic.version = 11 : i64} {
  func.func @_quater_attention_kernel(%arg0: i32, %arg1: memref<2x32x16x16xf32, #tpu.memory_space<vmem>>, %arg2: memref<2x32x256xf32, #tpu.memory_space<vmem>>, %arg3: memref<8x32xf32, #tpu.memory_space<vmem>>, %arg4: memref<8x1xf32, #tpu.memory_space<vmem>>, %arg5: memref<8x32xf32, #tpu.memory_space<vmem>>, %arg6: memref<8x1xf32, #tpu.memory_space<vmem>>, %arg7: memref<8x112xf32, #tpu.memory_space<vmem>>, %arg8: memref<8x112xf32, #tpu.memory_space<vmem>>, %arg9: memref<32x8xf32, #tpu.memory_space<vmem>>, %arg10: memref<16x256xf32, #tpu.memory_space<vmem>>, %arg11: memref<16x256xf32, #tpu.memory_space<vmem>>, %arg12: memref<7x32xf32, #tpu.memory_space<vmem>>, %arg13: memref<7x32xf32, #tpu.memory_space<vmem>>, %arg14: memref<2x32x256xf32, #tpu.memory_space<vmem>>) attributes {dimension_semantics = [#tpu.dimension_semantics<parallel>], iteration_bounds = array<i64: 1>, scalar_prefetch = 0 : i64, scratch_operands = 0 : i64, tpu.core_type = #tpu.core_type<tc>, window_params = [{transform_indices = @transform_0, window_bounds = array<i64: 2, 32, 16, 16>}, {transform_indices = @transform_1, window_bounds = array<i64: 2, 32, 256>}, {pipeline_mode = #tpu.pipeline_mode<synchronous>, transform_indices = @transform_2, window_bounds = array<i64: 8, 32>}, {pipeline_mode = #tpu.pipeline_mode<synchronous>, transform_indices = @transform_3, window_bounds = array<i64: 8, 1>}, {pipeline_mode = #tpu.pipeline_mode<synchronous>, transform_indices = @transform_4, window_bounds = array<i64: 8, 32>}, {pipeline_mode = #tpu.pipeline_mode<synchronous>, transform_indices = @transform_5, window_bounds = array<i64: 8, 1>}, {pipeline_mode = #tpu.pipeline_mode<synchronous>, transform_indices = @transform_6, window_bounds = array<i64: 8, 112>}, {pipeline_mode = #tpu.pipeline_mode<synchronous>, transform_indices = @transform_7, window_bounds = array<i64: 8, 112>}, {pipeline_mode = #tpu.pipeline_mode<synchronous>, transform_indices = @transform_8, window_bounds = array<i64: 32, 8>}, {pipeline_mode = #tpu.pipeline_mode<synchronous>, transform_indices = @transform_9, window_bounds = array<i64: 16, 256>}, {pipeline_mode = #tpu.pipeline_mode<synchronous>, transform_indices = @transform_10, window_bounds = array<i64: 16, 256>}, {pipeline_mode = #tpu.pipeline_mode<synchronous>, transform_indices = @transform_11, window_bounds = array<i64: 7, 32>}, {pipeline_mode = #tpu.pipeline_mode<synchronous>, transform_indices = @transform_12, window_bounds = array<i64: 7, 32>}, {transform_indices = @transform_13, window_bounds = array<i64: 2, 32, 256>}]} {
    %c0 = arith.constant 0 : index
    %c0_0 = arith.constant 0 : index
    %c0_1 = arith.constant 0 : index
    %c0_2 = arith.constant 0 : index
    %0 = vector.load %arg1[%c0, %c0_0, %c0_1, %c0_2] : memref<2x32x16x16xf32, #tpu.memory_space<vmem>>, vector<1x32x16x16xf32>
    %1 = vector.shape_cast %0 : vector<1x32x16x16xf32> to vector<32x16x16xf32>
    %cst = arith.constant dense<0.000000e+00> : vector<32x16xf32>
    %2 = vector.multi_reduction <add>, %1, %cst [2] : vector<32x16x16xf32> to vector<32x16xf32>
    %cst_3 = arith.constant 1.600000e+01 : f32
    %3 = vector.broadcast %cst_3 : f32 to vector<32x16xf32>
    %4 = arith.divf %2, %3 : vector<32x16xf32>
    %cst_4 = arith.constant dense<0xFF800000> : vector<32x16xf32>
    %5 = vector.multi_reduction <maximumf>, %1, %cst_4 [2] : vector<32x16x16xf32> to vector<32x16xf32>
    %cst_5 = arith.constant dense<0.000000e+00> : vector<32x16xf32>
    %6 = vector.multi_reduction <add>, %1, %cst_5 [1] : vector<32x16x16xf32> to vector<32x16xf32>
    %cst_6 = arith.constant 1.600000e+01 : f32
    %7 = vector.broadcast %cst_6 : f32 to vector<32x16xf32>
    %8 = arith.divf %6, %7 : vector<32x16xf32>
    %cst_7 = arith.constant dense<0xFF800000> : vector<32x16xf32>
    %9 = vector.multi_reduction <maximumf>, %1, %cst_7 [1] : vector<32x16x16xf32> to vector<32x16xf32>
    %c1 = arith.constant 1 : index
    %c0_8 = arith.constant 0 : index
    %c0_9 = arith.constant 0 : index
    %c0_10 = arith.constant 0 : index
    %10 = vector.load %arg1[%c1, %c0_8, %c0_9, %c0_10] : memref<2x32x16x16xf32, #tpu.memory_space<vmem>>, vector<1x32x16x16xf32>
    %11 = vector.shape_cast %10 : vector<1x32x16x16xf32> to vector<32x16x16xf32>
    %cst_11 = arith.constant dense<0.000000e+00> : vector<32x16xf32>
    %12 = vector.multi_reduction <add>, %11, %cst_11 [2] : vector<32x16x16xf32> to vector<32x16xf32>
    %cst_12 = arith.constant 1.600000e+01 : f32
    %13 = vector.broadcast %cst_12 : f32 to vector<32x16xf32>
    %14 = arith.divf %12, %13 : vector<32x16xf32>
    %cst_13 = arith.constant dense<0xFF800000> : vector<32x16xf32>
    %15 = vector.multi_reduction <maximumf>, %11, %cst_13 [2] : vector<32x16x16xf32> to vector<32x16xf32>
    %cst_14 = arith.constant dense<0.000000e+00> : vector<32x16xf32>
    %16 = vector.multi_reduction <add>, %11, %cst_14 [1] : vector<32x16x16xf32> to vector<32x16xf32>
    %cst_15 = arith.constant 1.600000e+01 : f32
    %17 = vector.broadcast %cst_15 : f32 to vector<32x16xf32>
    %18 = arith.divf %16, %17 : vector<32x16xf32>
    %cst_16 = arith.constant dense<0xFF800000> : vector<32x16xf32>
    %19 = vector.multi_reduction <maximumf>, %11, %cst_16 [1] : vector<32x16x16xf32> to vector<32x16xf32>
    %20 = tpu.concatenate %4, %14, %5, %15 in 1 : vector<32x16xf32>, vector<32x16xf32>, vector<32x16xf32>, vector<32x16xf32> -> vector<32x64xf32>
    %21 = tpu.concatenate %8, %18, %9, %19 in 1 : vector<32x16xf32>, vector<32x16xf32>, vector<32x16xf32>, vector<32x16xf32> -> vector<32x64xf32>
    %c0_17 = arith.constant 0 : index
    %c0_18 = arith.constant 0 : index
    %22 = vector.load %arg3[%c0_17, %c0_18] : memref<8x32xf32, #tpu.memory_space<vmem>>, vector<8x32xf32>
    %cst_19 = arith.constant dense<0.000000e+00> : vector<8x64xf32>
    %23 = tpu.matmul %22, %20, %cst_19 {dimension_numbers = #tpu.dot_dimension_numbers<[1], [0], [0], [1], [0, 0, 1, 1], [], []>} : vector<8x32xf32>, vector<32x64xf32>, vector<8x64xf32> -> vector<8x64xf32>
    %c0_20 = arith.constant 0 : index
    %c0_21 = arith.constant 0 : index
    %24 = vector.load %arg4[%c0_20, %c0_21] : memref<8x1xf32, #tpu.memory_space<vmem>>, vector<8x1xf32>
    %25 = vector.broadcast %24 : vector<8x1xf32> to vector<8x64xf32>
    %26 = arith.addf %23, %25 : vector<8x64xf32>
    %cst_22 = arith.constant 0.000000e+00 : f32
    %27 = vector.broadcast %cst_22 : f32 to vector<8x64xf32>
    %28 = arith.maximumf %26, %27 : vector<8x64xf32>
    %c0_23 = arith.constant 0 : index
    %c0_24 = arith.constant 0 : index
    %29 = vector.load %arg5[%c0_23, %c0_24] : memref<8x32xf32, #tpu.memory_space<vmem>>, vector<8x32xf32>
    %cst_25 = arith.constant dense<0.000000e+00> : vector<8x64xf32>
    %30 = tpu.matmul %29, %21, %cst_25 {dimension_numbers = #tpu.dot_dimension_numbers<[1], [0], [0], [1], [0, 0, 1, 1], [], []>} : vector<8x32xf32>, vector<32x64xf32>, vector<8x64xf32> -> vector<8x64xf32>
    %c0_26 = arith.constant 0 : index
    %c0_27 = arith.constant 0 : index
    %31 = vector.load %arg6[%c0_26, %c0_27] : memref<8x1xf32, #tpu.memory_space<vmem>>, vector<8x1xf32>
    %32 = vector.broadcast %31 : vector<8x1xf32> to vector<8x64xf32>
    %33 = arith.addf %30, %32 : vector<8x64xf32>
    %cst_28 = arith.constant 0.000000e+00 : f32
    %34 = vector.broadcast %cst_28 : f32 to vector<8x64xf32>
    %35 = arith.maximumf %33, %34 : vector<8x64xf32>
    %36 = vector.extract_strided_slice %28 {offsets = [0, 0], sizes = [8, 32], strides = [1, 1]} : vector<8x64xf32> to vector<8x32xf32>
    %37 = vector.extract_strided_slice %28 {offsets = [0, 32], sizes = [8, 32], strides = [1, 1]} : vector<8x64xf32> to vector<8x32xf32>
    %38 = tpu.concatenate %36, %37 in 0 : vector<8x32xf32>, vector<8x32xf32> -> vector<16x32xf32>
    %39 = vector.extract_strided_slice %35 {offsets = [0, 0], sizes = [8, 32], strides = [1, 1]} : vector<8x64xf32> to vector<8x32xf32>
    %40 = vector.extract_strided_slice %35 {offsets = [0, 32], sizes = [8, 32], strides = [1, 1]} : vector<8x64xf32> to vector<8x32xf32>
    %41 = tpu.concatenate %39, %40 in 0 : vector<8x32xf32>, vector<8x32xf32> -> vector<16x32xf32>
    %c0_29 = arith.constant 0 : index
    %c0_30 = arith.constant 0 : index
    %42 = vector.load %arg12[%c0_29, %c0_30] : memref<7x32xf32, #tpu.memory_space<vmem>>, vector<7x32xf32>
    %c0_31 = arith.constant 0 : index
    %c0_32 = arith.constant 0 : index
    %43 = vector.load %arg13[%c0_31, %c0_32] : memref<7x32xf32, #tpu.memory_space<vmem>>, vector<7x32xf32>
    %cst_33 = arith.constant 0.000000e+00 : f32
    %44 = vector.broadcast %cst_33 : f32 to vector<16x3xf32>
    %cst_34 = arith.constant 0.000000e+00 : f32
    %45 = vector.broadcast %cst_34 : f32 to vector<16x3xf32>
    %46 = tpu.concatenate %44, %38, %44 in 1 : vector<16x3xf32>, vector<16x32xf32>, vector<16x3xf32> -> vector<16x38xf32>
    %47 = tpu.concatenate %45, %41, %45 in 1 : vector<16x3xf32>, vector<16x32xf32>, vector<16x3xf32> -> vector<16x38xf32>
    %48 = vector.extract_strided_slice %46 {offsets = [0, 0], sizes = [16, 32], strides = [1, 1]} : vector<16x38xf32> to vector<16x32xf32>
    %49 = vector.extract_strided_slice %42 {offsets = [0, 0], sizes = [1, 32], strides = [1, 1]} : vector<7x32xf32> to vector<1x32xf32>
    %50 = vector.broadcast %49 : vector<1x32xf32> to vector<16x32xf32>
    %51 = arith.mulf %48, %50 : vector<16x32xf32>
    %52 = vector.extract_strided_slice %47 {offsets = [0, 0], sizes = [16, 32], strides = [1, 1]} : vector<16x38xf32> to vector<16x32xf32>
    %53 = vector.extract_strided_slice %43 {offsets = [0, 0], sizes = [1, 32], strides = [1, 1]} : vector<7x32xf32> to vector<1x32xf32>
    %54 = vector.broadcast %53 : vector<1x32xf32> to vector<16x32xf32>
    %55 = arith.mulf %52, %54 : vector<16x32xf32>
    %56 = vector.extract_strided_slice %46 {offsets = [0, 1], sizes = [16, 32], strides = [1, 1]} : vector<16x38xf32> to vector<16x32xf32>
    %57 = vector.extract_strided_slice %42 {offsets = [1, 0], sizes = [1, 32], strides = [1, 1]} : vector<7x32xf32> to vector<1x32xf32>
    %58 = vector.broadcast %57 : vector<1x32xf32> to vector<16x32xf32>
    %59 = arith.mulf %56, %58 : vector<16x32xf32>
    %60 = vector.extract_strided_slice %47 {offsets = [0, 1], sizes = [16, 32], strides = [1, 1]} : vector<16x38xf32> to vector<16x32xf32>
    %61 = vector.extract_strided_slice %43 {offsets = [1, 0], sizes = [1, 32], strides = [1, 1]} : vector<7x32xf32> to vector<1x32xf32>
    %62 = vector.broadcast %61 : vector<1x32xf32> to vector<16x32xf32>
    %63 = arith.mulf %60, %62 : vector<16x32xf32>
    %64 = vector.extract_strided_slice %46 {offsets = [0, 2], sizes = [16, 32], strides = [1, 1]} : vector<16x38xf32> to vector<16x32xf32>
    %65 = vector.extract_strided_slice %42 {offsets = [2, 0], sizes = [1, 32], strides = [1, 1]} : vector<7x32xf32> to vector<1x32xf32>
    %66 = vector.broadcast %65 : vector<1x32xf32> to vector<16x32xf32>
    %67 = arith.mulf %64, %66 : vector<16x32xf32>
    %68 = vector.extract_strided_slice %47 {offsets = [0, 2], sizes = [16, 32], strides = [1, 1]} : vector<16x38xf32> to vector<16x32xf32>
    %69 = vector.extract_strided_slice %43 {offsets = [2, 0], sizes = [1, 32], strides = [1, 1]} : vector<7x32xf32> to vector<1x32xf32>
    %70 = vector.broadcast %69 : vector<1x32xf32> to vector<16x32xf32>
    %71 = arith.mulf %68, %70 : vector<16x32xf32>
    %72 = vector.extract_strided_slice %46 {offsets = [0, 3], sizes = [16, 32], strides = [1, 1]} : vector<16x38xf32> to vector<16x32xf32>
    %73 = vector.extract_strided_slice %42 {offsets = [3, 0], sizes = [1, 32], strides = [1, 1]} : vector<7x32xf32> to vector<1x32xf32>
    %74 = vector.broadcast %73 : vector<1x32xf32> to vector<16x32xf32>
    %75 = arith.mulf %72, %74 : vector<16x32xf32>
    %76 = vector.extract_strided_slice %47 {offsets = [0, 3], sizes = [16, 32], strides = [1, 1]} : vector<16x38xf32> to vector<16x32xf32>
    %77 = vector.extract_strided_slice %43 {offsets = [3, 0], sizes = [1, 32], strides = [1, 1]} : vector<7x32xf32> to vector<1x32xf32>
    %78 = vector.broadcast %77 : vector<1x32xf32> to vector<16x32xf32>
    %79 = arith.mulf %76, %78 : vector<16x32xf32>
    %80 = vector.extract_strided_slice %46 {offsets = [0, 4], sizes = [16, 32], strides = [1, 1]} : vector<16x38xf32> to vector<16x32xf32>
    %81 = vector.extract_strided_slice %42 {offsets = [4, 0], sizes = [1, 32], strides = [1, 1]} : vector<7x32xf32> to vector<1x32xf32>
    %82 = vector.broadcast %81 : vector<1x32xf32> to vector<16x32xf32>
    %83 = arith.mulf %80, %82 : vector<16x32xf32>
    %84 = vector.extract_strided_slice %47 {offsets = [0, 4], sizes = [16, 32], strides = [1, 1]} : vector<16x38xf32> to vector<16x32xf32>
    %85 = vector.extract_strided_slice %43 {offsets = [4, 0], sizes = [1, 32], strides = [1, 1]} : vector<7x32xf32> to vector<1x32xf32>
    %86 = vector.broadcast %85 : vector<1x32xf32> to vector<16x32xf32>
    %87 = arith.mulf %84, %86 : vector<16x32xf32>
    %88 = vector.extract_strided_slice %46 {offsets = [0, 5], sizes = [16, 32], strides = [1, 1]} : vector<16x38xf32> to vector<16x32xf32>
    %89 = vector.extract_strided_slice %42 {offsets = [5, 0], sizes = [1, 32], strides = [1, 1]} : vector<7x32xf32> to vector<1x32xf32>
    %90 = vector.broadcast %89 : vector<1x32xf32> to vector<16x32xf32>
    %91 = arith.mulf %88, %90 : vector<16x32xf32>
    %92 = vector.extract_strided_slice %47 {offsets = [0, 5], sizes = [16, 32], strides = [1, 1]} : vector<16x38xf32> to vector<16x32xf32>
    %93 = vector.extract_strided_slice %43 {offsets = [5, 0], sizes = [1, 32], strides = [1, 1]} : vector<7x32xf32> to vector<1x32xf32>
    %94 = vector.broadcast %93 : vector<1x32xf32> to vector<16x32xf32>
    %95 = arith.mulf %92, %94 : vector<16x32xf32>
    %96 = vector.extract_strided_slice %46 {offsets = [0, 6], sizes = [16, 32], strides = [1, 1]} : vector<16x38xf32> to vector<16x32xf32>
    %97 = vector.extract_strided_slice %42 {offsets = [6, 0], sizes = [1, 32], strides = [1, 1]} : vector<7x32xf32> to vector<1x32xf32>
    %98 = vector.broadcast %97 : vector<1x32xf32> to vector<16x32xf32>
    %99 = arith.mulf %96, %98 : vector<16x32xf32>
    %100 = vector.extract_strided_slice %47 {offsets = [0, 6], sizes = [16, 32], strides = [1, 1]} : vector<16x38xf32> to vector<16x32xf32>
    %101 = vector.extract_strided_slice %43 {offsets = [6, 0], sizes = [1, 32], strides = [1, 1]} : vector<7x32xf32> to vector<1x32xf32>
    %102 = vector.broadcast %101 : vector<1x32xf32> to vector<16x32xf32>
    %103 = arith.mulf %100, %102 : vector<16x32xf32>
    %104 = tpu.concatenate %51, %59, %67, %75, %83, %91, %99 in 0 : vector<16x32xf32>, vector<16x32xf32>, vector<16x32xf32>, vector<16x32xf32>, vector<16x32xf32>, vector<16x32xf32>, vector<16x32xf32> -> vector<112x32xf32>
    %105 = tpu.concatenate %55, %63, %71, %79, %87, %95, %103 in 0 : vector<16x32xf32>, vector<16x32xf32>, vector<16x32xf32>, vector<16x32xf32>, vector<16x32xf32>, vector<16x32xf32>, vector<16x32xf32> -> vector<112x32xf32>
    %c0_35 = arith.constant 0 : index
    %c0_36 = arith.constant 0 : index
    %106 = vector.load %arg7[%c0_35, %c0_36] : memref<8x112xf32, #tpu.memory_space<vmem>>, vector<8x112xf32>
    %cst_37 = arith.constant dense<0.000000e+00> : vector<8x32xf32>
    %107 = tpu.matmul %106, %104, %cst_37 {dimension_numbers = #tpu.dot_dimension_numbers<[1], [0], [0], [1], [0, 0, 1, 1], [], []>} : vector<8x112xf32>, vector<112x32xf32>, vector<8x32xf32> -> vector<8x32xf32>
    %c0_38 = arith.constant 0 : index
    %c0_39 = arith.constant 0 : index
    %108 = vector.load %arg8[%c0_38, %c0_39] : memref<8x112xf32, #tpu.memory_space<vmem>>, vector<8x112xf32>
    %cst_40 = arith.constant dense<0.000000e+00> : vector<8x32xf32>
    %109 = tpu.matmul %108, %105, %cst_40 {dimension_numbers = #tpu.dot_dimension_numbers<[1], [0], [0], [1], [0, 0, 1, 1], [], []>} : vector<8x112xf32>, vector<112x32xf32>, vector<8x32xf32> -> vector<8x32xf32>
    %c0_41 = arith.constant 0 : index
    %c0_42 = arith.constant 0 : index
    %110 = vector.load %arg10[%c0_41, %c0_42] : memref<16x256xf32, #tpu.memory_space<vmem>>, vector<16x256xf32>
    %c0_43 = arith.constant 0 : index
    %c0_44 = arith.constant 0 : index
    %111 = vector.load %arg11[%c0_43, %c0_44] : memref<16x256xf32, #tpu.memory_space<vmem>>, vector<16x256xf32>
    %112 = vector.extract_strided_slice %107 {offsets = [0, 0], sizes = [8, 16], strides = [1, 1]} : vector<8x32xf32> to vector<8x16xf32>
    %cst_45 = arith.constant dense<0.000000e+00> : vector<8x256xf32>
    %113 = tpu.matmul %112, %110, %cst_45 {dimension_numbers = #tpu.dot_dimension_numbers<[1], [0], [0], [1], [0, 0, 1, 1], [], []>} : vector<8x16xf32>, vector<16x256xf32>, vector<8x256xf32> -> vector<8x256xf32>
    %114 = vector.extract_strided_slice %109 {offsets = [0, 0], sizes = [8, 16], strides = [1, 1]} : vector<8x32xf32> to vector<8x16xf32>
    %cst_46 = arith.constant dense<0.000000e+00> : vector<8x256xf32>
    %115 = tpu.matmul %114, %111, %cst_46 {dimension_numbers = #tpu.dot_dimension_numbers<[1], [0], [0], [1], [0, 0, 1, 1], [], []>} : vector<8x16xf32>, vector<16x256xf32>, vector<8x256xf32> -> vector<8x256xf32>
    %116 = arith.mulf %113, %115 : vector<8x256xf32>
    %117 = vector.extract_strided_slice %107 {offsets = [0, 16], sizes = [8, 16], strides = [1, 1]} : vector<8x32xf32> to vector<8x16xf32>
    %cst_47 = arith.constant dense<0.000000e+00> : vector<8x256xf32>
    %118 = tpu.matmul %117, %110, %cst_47 {dimension_numbers = #tpu.dot_dimension_numbers<[1], [0], [0], [1], [0, 0, 1, 1], [], []>} : vector<8x16xf32>, vector<16x256xf32>, vector<8x256xf32> -> vector<8x256xf32>
    %119 = vector.extract_strided_slice %109 {offsets = [0, 16], sizes = [8, 16], strides = [1, 1]} : vector<8x32xf32> to vector<8x16xf32>
    %cst_48 = arith.constant dense<0.000000e+00> : vector<8x256xf32>
    %120 = tpu.matmul %119, %111, %cst_48 {dimension_numbers = #tpu.dot_dimension_numbers<[1], [0], [0], [1], [0, 0, 1, 1], [], []>} : vector<8x16xf32>, vector<16x256xf32>, vector<8x256xf32> -> vector<8x256xf32>
    %121 = arith.mulf %118, %120 : vector<8x256xf32>
    %122 = tpu.concatenate %116, %121 in 1 : vector<8x256xf32>, vector<8x256xf32> -> vector<8x512xf32>
    %c0_49 = arith.constant 0 : index
    %c0_50 = arith.constant 0 : index
    %123 = vector.load %arg9[%c0_49, %c0_50] : memref<32x8xf32, #tpu.memory_space<vmem>>, vector<32x8xf32>
    %cst_51 = arith.constant dense<0.000000e+00> : vector<32x512xf32>
    %124 = tpu.matmul %123, %122, %cst_51 {dimension_numbers = #tpu.dot_dimension_numbers<[1], [0], [0], [1], [0, 0, 1, 1], [], []>} : vector<32x8xf32>, vector<8x512xf32>, vector<32x512xf32> -> vector<32x512xf32>
    %125 = arith.negf %124 : vector<32x512xf32>
    %126 = math.exp %125 : vector<32x512xf32>
    %cst_52 = arith.constant 1.000000e+00 : f32
    %127 = vector.broadcast %cst_52 : f32 to vector<32x512xf32>
    %128 = arith.addf %127, %126 : vector<32x512xf32>
    %129 = arith.divf %127, %128 : vector<32x512xf32>
    %c0_53 = arith.constant 0 : index
    %c0_54 = arith.constant 0 : index
    %c0_55 = arith.constant 0 : index
    %130 = vector.load %arg2[%c0_53, %c0_54, %c0_55] : memref<2x32x256xf32, #tpu.memory_space<vmem>>, vector<1x32x256xf32>
    %131 = vector.shape_cast %130 : vector<1x32x256xf32> to vector<32x256xf32>
    %132 = vector.extract_strided_slice %129 {offsets = [0, 0], sizes = [32, 256], strides = [1, 1]} : vector<32x512xf32> to vector<32x256xf32>
    %133 = arith.mulf %131, %132 : vector<32x256xf32>
    %c0_56 = arith.constant 0 : index
    %c0_57 = arith.constant 0 : index
    %c0_58 = arith.constant 0 : index
    %134 = vector.load %arg14[%c0_56, %c0_57, %c0_58] : memref<2x32x256xf32, #tpu.memory_space<vmem>>, vector<1x32x256xf32>
    %135 = vector.shape_cast %134 : vector<1x32x256xf32> to vector<32x256xf32>
    %136 = vector.shape_cast %133 : vector<32x256xf32> to vector<1x32x256xf32>
    tpu.vector_store %arg14[%c0_56, %c0_57, %c0_58], %136 {strides = array<i32>} : memref<2x32x256xf32, #tpu.memory_space<vmem>>, vector<1x32x256xf32>,
    %c1_59 = arith.constant 1 : index
    %c0_60 = arith.constant 0 : index
    %c0_61 = arith.constant 0 : index
    %137 = vector.load %arg2[%c1_59, %c0_60, %c0_61] : memref<2x32x256xf32, #tpu.memory_space<vmem>>, vector<1x32x256xf32>
    %138 = vector.shape_cast %137 : vector<1x32x256xf32> to vector<32x256xf32>
    %139 = vector.extract_strided_slice %129 {offsets = [0, 256], sizes = [32, 256], strides = [1, 1]} : vector<32x512xf32> to vector<32x256xf32>
    %140 = arith.mulf %138, %139 : vector<32x256xf32>
    %c1_62 = arith.constant 1 : index
    %c0_63 = arith.constant 0 : index
    %c0_64 = arith.constant 0 : index
    %141 = vector.load %arg14[%c1_62, %c0_63, %c0_64] : memref<2x32x256xf32, #tpu.memory_space<vmem>>, vector<1x32x256xf32>
    %142 = vector.shape_cast %141 : vector<1x32x256xf32> to vector<32x256xf32>
    %143 = vector.shape_cast %140 : vector<32x256xf32> to vector<1x32x256xf32>
    tpu.vector_store %arg14[%c1_62, %c0_63, %c0_64], %143 {strides = array<i32>} : memref<2x32x256xf32, #tpu.memory_space<vmem>>, vector<1x32x256xf32>,
    return
  }
  func.func @transform_0(%arg0: i32) -> (i32, i32, i32, i32) {
    %c0_i32 = arith.constant 0 : i32
    %c0_i32_0 = arith.constant 0 : i32
    %c0_i32_1 = arith.constant 0 : i32
    %c0_i32_2 = arith.constant 0 : i32
    return %arg0, %c0_i32, %c0_i32_0, %c0_i32_1 : i32, i32, i32, i32
  }
  func.func @transform_1(%arg0: i32) -> (i32, i32, i32) {
    %c0_i32 = arith.constant 0 : i32
    %c0_i32_0 = arith.constant 0 : i32
    %c0_i32_1 = arith.constant 0 : i32
    return %arg0, %c0_i32, %c0_i32_0 : i32, i32, i32
  }
  func.func @transform_2(%arg0: i32) -> (i32, i32) {
    %c0_i32 = arith.constant 0 : i32
    %c0_i32_0 = arith.constant 0 : i32
    %c0_i32_1 = arith.constant 0 : i32
    return %c0_i32, %c0_i32_0 : i32, i32
  }
  func.func @transform_3(%arg0: i32) -> (i32, i32) {
    %c0_i32 = arith.constant 0 : i32
    %c0_i32_0 = arith.constant 0 : i32
    %c0_i32_1 = arith.constant 0 : i32
    return %c0_i32, %c0_i32_0 : i32, i32
  }
  func.func @transform_4(%arg0: i32) -> (i32, i32) {
    %c0_i32 = arith.constant 0 : i32
    %c0_i32_0 = arith.constant 0 : i32
    %c0_i32_1 = arith.constant 0 : i32
    return %c0_i32, %c0_i32_0 : i32, i32
  }
  func.func @transform_5(%arg0: i32) -> (i32, i32) {
    %c0_i32 = arith.constant 0 : i32
    %c0_i32_0 = arith.constant 0 : i32
    %c0_i32_1 = arith.constant 0 : i32
    return %c0_i32, %c0_i32_0 : i32, i32
  }
  func.func @transform_6(%arg0: i32) -> (i32, i32) {
    %c0_i32 = arith.constant 0 : i32
    %c0_i32_0 = arith.constant 0 : i32
    %c0_i32_1 = arith.constant 0 : i32
    return %c0_i32, %c0_i32_0 : i32, i32
  }
  func.func @transform_7(%arg0: i32) -> (i32, i32) {
    %c0_i32 = arith.constant 0 : i32
    %c0_i32_0 = arith.constant 0 : i32
    %c0_i32_1 = arith.constant 0 : i32
    return %c0_i32, %c0_i32_0 : i32, i32
  }
  func.func @transform_8(%arg0: i32) -> (i32, i32) {
    %c0_i32 = arith.constant 0 : i32
    %c0_i32_0 = arith.constant 0 : i32
    %c0_i32_1 = arith.constant 0 : i32
    return %c0_i32, %c0_i32_0 : i32, i32
  }
  func.func @transform_9(%arg0: i32) -> (i32, i32) {
    %c0_i32 = arith.constant 0 : i32
    %c0_i32_0 = arith.constant 0 : i32
    %c0_i32_1 = arith.constant 0 : i32
    return %c0_i32, %c0_i32_0 : i32, i32
  }
  func.func @transform_10(%arg0: i32) -> (i32, i32) {
    %c0_i32 = arith.constant 0 : i32
    %c0_i32_0 = arith.constant 0 : i32
    %c0_i32_1 = arith.constant 0 : i32
    return %c0_i32, %c0_i32_0 : i32, i32
  }
  func.func @transform_11(%arg0: i32) -> (i32, i32) {
    %c0_i32 = arith.constant 0 : i32
    %c0_i32_0 = arith.constant 0 : i32
    %c0_i32_1 = arith.constant 0 : i32
    return %c0_i32, %c0_i32_0 : i32, i32
  }
  func.func @transform_12(%arg0: i32) -> (i32, i32) {
    %c0_i32 = arith.constant 0 : i32
    %c0_i32_0 = arith.constant 0 : i32
    %c0_i32_1 = arith.constant 0 : i32
    return %c0_i32, %c0_i32_0 : i32, i32
  }
  func.func @transform_13(%arg0: i32) -> (i32, i32, i32) {
    %c0_i32 = arith.constant 0 : i32
    %c0_i32_0 = arith.constant 0 : i32
    %c0_i32_1 = arith.constant 0 : i32
    return %arg0, %c0_i32, %c0_i32_0 : i32, i32, i32
  }
}

</mosaic_0001>

<bundles_post_ra>
// kernel: tpu_custom_call.1
= control target key start
LH: loop header
LB: loop body
LE: loop exit
PB: predicated region body
PF: predicated region fallthrough
CT: control target
= control target key end

     0   :  { %vm109_vm0 = vcmask 130048   ;;  %vm2388_vm1 = vcmask 1041409   ;;  %s9388_s0 = inlined_call_operand.vmem [shape: f32[2,32,16,16], index: 0, kind: input, shape index: {}]   ;;  %s9389_s1 = inlined_call_operand.vmem [shape: f32[2,32,256], index: 1, kind: input, shape index: {}]   ;;  %s9390_s2 = inlined_call_operand.vmem [shape: f32[8,32], index: 2, kind: input, shape index: {}]   ;;  %s9391_s3 = inlined_call_operand.vmem [shape: f32[8,1], index: 3, kind: input, shape index: {}]   ;;  %s9392_s4 = inlined_call_operand.vmem [shape: f32[8,32], index: 4, kind: input, shape index: {}]   ;;  %s9393_s5 = inlined_call_operand.vmem [shape: f32[8,1], index: 5, kind: input, shape index: {}]   ;;  %s9394_s6 = inlined_call_operand.vmem [shape: f32[8,112], index: 6, kind: input, shape index: {}]   ;;  %s9395_s7 = inlined_call_operand.vmem [shape: f32[8,112], index: 7, kind: input, shape index: {}]   ;;  %s9396_s8 = inlined_call_operand.vmem [shape: f32[32,8], index: 8, kind: input, shape index: {}]   ;;  %s9397_s9 = inlined_call_operand.vmem [shape: f32[16,256], index: 9, kind: input, shape index: {}]   ;;  %s9398_s10 = inlined_call_operand.vmem [shape: f32[16,256], index: 10, kind: input, shape index: {}]   ;;  %s9399_s11 = inlined_call_operand.vmem [shape: f32[7,32], index: 11, kind: input, shape index: {}]   ;;  %s9400_s12 = inlined_call_operand.vmem [shape: f32[7,32], index: 12, kind: input, shape index: {}]   ;;  %s9401_s13 = inlined_call_operand.hbm [shape: f32[2,32,256], index: 13, kind: output, shape index: {}]  }
   0x1   :  { %v5817_v0 = vld [vmem:[%s9388_s0 + $0x10] sm:$0xff]  ;;  %v5822_v1 = vld [vmem:[%s9388_s0] sm:$0xff]  ;;  %v5827_v2 = vld [vmem:[%s9388_s0 + $0x18] sm:$0xff] }
   0x2   :  { %v116_v3 = vsel %vm109_vm0, %v5817_v0, 0.0  ;;  %v110_v4 = vsel %vm109_vm0, %v5822_v1, 0.0  ;;  %v119_v5 = vsel %vm109_vm0, %v5827_v2, 0.0  ;;  %v5838_v6 = vld [vmem:[%s9388_s0 + $0x8] sm:$0xff]  ;;  %v5848_v8 = vld [vmem:[%s9388_s0 + $0x80] sm:$0xff]  ;;  %v5859_v13 = vld [vmem:[%s9388_s0 + $0x98] sm:$0xff] }
   0x3   :  { %v5843_v7 = vld [vmem:[%s9388_s0 + $0x88] sm:$0xff]  ;;  %117 = vadd.xlane.f32.xlu1 %v116_v3  ;;  %111 = vadd.xlane.f32.xlu0 %v110_v4  ;;  %v566_v9 = vadd.f32 %v119_v5, %v116_v3  ;;  %v113_v10 = vsel %vm109_vm0, %v5838_v6, 0.0  ;;  %v158_v12 = vsel %vm109_vm0, %v5848_v8, 0.0  ;;  %v5864_v14 = vld [vmem:[%s9388_s0 + $0x90] sm:$0xff]  ;;  %v167_v18 = vsel %vm109_vm0, %v5859_v13, 0.0  ;;  %v5878_v20 = vld [vmem:[%s9388_s0 + $0x200] sm:$0xff] }
   0x4   :  { %v161_v11 = vsel %vm109_vm0, %v5843_v7, 0.0  ;;  %v5869_v15 = vld [vmem:[%s9388_s0 + $0x208] sm:$0xff]  ;;  %v559_v16 = vadd.f32 %v113_v10, %v110_v4  ;;  %v164_v19 = vsel %vm109_vm0, %v5864_v14, 0.0  ;;  %v5883_v21 = vld [vmem:[%s9388_s0 + $0x218] sm:$0xff]  ;;  %v5888_v22 = vld [vmem:[%s9388_s0 + $0x210] sm:$0xff]  ;;  %v5896_v26 = vsel %vm109_vm0, %v5878_v20, 0.0 }
   0x5   :  { %v615_v17 = vadd.f32 %v161_v11, %v158_v12  ;;  %v567_v23 = vrot.slane %v566_v9, 4  ;;  %v622_v24 = vadd.f32 %v167_v18, %v164_v19  ;;  %v5892_v25 = vsel %vm109_vm0, %v5869_v15, 0.0  ;;  %v5901_v27 = vld [vmem:[%s9388_s0 + $0x288] sm:$0xff]  ;;  %v5912_v32 = vld [vmem:[%s9388_s0 + $0x280] sm:$0xff]  ;;  %v5917_v33 = vld [vmem:[%s9388_s0 + $0x298] sm:$0xff] }
   0x6   :  { %v560_v28 = vrot.slane %v559_v16, 4  ;;  %v1552_v30 = vadd.f32 %v5892_v25, %v5896_v26  ;;  %v5907_v31 = vsel %vm109_vm0, %v5883_v21, 0.0  ;;  %v5921_v36 = vsel %vm109_vm0, %v5888_v22, 0.0  ;;  %v5932_v42 = vld [vmem:[%s9388_s0 + $0x290] sm:$0xff] }
   0x7   :  { %v616_v29 = vrot.slane %v615_v17, 4  ;;  %120 = vadd.xlane.f32.xlu1 %v119_v5  ;;  %v568_v34 = vadd.f32 %v567_v23, %v566_v9  ;;  %114 = vadd.xlane.f32.xlu0 %v113_v10  ;;  %v623_v35 = vrot.slane %v622_v24, 4  ;;  %v5925_v37 = vsel %vm109_vm0, %v5901_v27, 0.0 }
   0x8   :  { %v561_v38 = vadd.f32 %v560_v28, %v559_v16  ;;  %v1553_v40 = vrot.slane %v1552_v30, 4  ;;  %v1559_v41 = vadd.f32 %v5907_v31, %v5921_v36  ;;  %v5936_v45 = vsel %vm109_vm0, %v5912_v32, 0.0  ;;  %v5953_v28 = vld [vmem:[%s9388_s0 + $0x28] sm:$0xff] }
   0x9   :  { %v617_v39 = vadd.f32 %v616_v29, %v615_v17  ;;  %v569_v43 = vrot.slane %v568_v34, 2  ;;  %v624_v44 = vadd.f32 %v623_v35, %v622_v24  ;;  %v5940_v46 = vsel %vm109_vm0, %v5917_v33, 0.0 }
   0xa   :  { %v562_v47 = vrot.slane %v561_v38, 2  ;;  %v1554_v49 = vadd.f32 %v1553_v40, %v1552_v30  ;;  %v1560_v50 = vrot.slane %v1559_v41, 4  ;;  %v1608_v53 = vadd.f32 %v5925_v37, %v5936_v45 }
   0xb   :  { %v618_v48 = vrot.slane %v617_v39, 2  ;;  %v570_v51 = vadd.f32 %v569_v43, %v568_v34  ;;  %162 = vadd.xlane.f32.xlu1 %v161_v11  ;;  %159 = vadd.xlane.f32.xlu0 %v158_v12  ;;  %v625_v52 = vrot.slane %v624_v44, 2  ;;  %v5946_v54 = vsel %vm109_vm0, %v5932_v42, 0.0 }
   0xc   :  { %v563_v55 = vadd.f32 %v562_v47, %v561_v38  ;;  %v1555_v57 = vrot.slane %v1554_v49, 2  ;;  %v1561_v58 = vadd.f32 %v1560_v50, %v1559_v41  ;;  %v1609_v61 = vrot.slane %v1608_v53, 4 }
   0xd   :  { %v619_v56 = vadd.f32 %v618_v48, %v617_v39  ;;  %v571_v59 = vrot.slane %v570_v51, 1  ;;  %v626_v60 = vadd.f32 %v625_v52, %v624_v44  ;;  %v1615_v62 = vadd.f32 %v5940_v46, %v5946_v54  ;;  %v5969_v48 = vld [vmem:[%s9388_s0 + $0xa8] sm:$0xff] }
   0xe   :  { %v564_v63 = vrot.slane %v563_v55, 1  ;;  %v1556_v4 = vadd.f32 %v1555_v57, %v1554_v49  ;;  %v1562_v5 = vrot.slane %v1561_v58, 2  ;;  %v1610_v11 = vadd.f32 %v1609_v61, %v1608_v53  ;;  %v5974_v49 = vld [vmem:[%s9388_s0 + $0xa0] sm:$0xff] }
   0xf   :  { %v620_v3 = vrot.slane %v619_v56, 1  ;;  %v572_v9 = vadd.f32 %v571_v59, %v570_v51  ;;  %168 = vadd.xlane.f32.xlu1 %v167_v18  ;;  %v627_v10 = vrot.slane %v626_v60, 1  ;;  %165 = vadd.xlane.f32.xlu0 %v164_v19  ;;  %v1616_v12 = vrot.slane %v1615_v62, 4  ;;  %v5958_v18 = vld [vmem:[%s9388_s0 + $0x20] sm:$0xff]  ;;  %v5151_v59 = vld [vmem:[%s9388_s0 + $0x2a8] sm:$0xff] }
  0x10   :  { %v565_v16 = vadd.f32 %v564_v63, %v563_v55  ;;  %v1557_v23 = vrot.slane %v1556_v4, 1  ;;  %v1563_v24 = vadd.f32 %v1562_v5, %v1561_v58  ;;  %v1611_v34 = vrot.slane %v1610_v11, 2  ;;  %v5134_v58 = vld [vmem:[%s9388_s0 + $0x220] sm:$0xff] }
  0x11   :  { %v621_v17 = vadd.f32 %v620_v3, %v619_v56  ;;  %v784_v29 = vmul.f32 0.0625, %v572_v9  ;;  %v628_v30 = vadd.f32 %v627_v10, %v626_v60  ;;  %v1617_v35 = vadd.f32 %v1616_v12, %v1615_v62  ;;  %v5150_v60 = vld [vmem:[%s9388_s0 + $0x2a0] sm:$0xff]  ;;  %v51_v12 = vld [vmem:[%s9388_s0 + $0x30] sm:$0xff] }
  0x12   :  { %v783_v19 = vmul.f32 0.0625, %v565_v16  ;;  %v1558_v39 = vadd.f32 %v1557_v23, %v1556_v4  ;;  %v1564_v40 = vrot.slane %v1563_v24, 1  ;;  %v1612_v43 = vadd.f32 %v1611_v34, %v1610_v11  ;;  %v52_v11 = vld [vmem:[%s9388_s0 + $0x38] sm:$0xff] }
  0x13   :  { %v791_v38 = vmul.f32 0.0625, %v621_v17  ;;  %v792_v41 = vmul.f32 0.0625, %v628_v30  ;;  %1108 = vadd.xlane.f32.xlu1 %v5892_v25  ;;  %1105 = vadd.xlane.f32.xlu0 %v5896_v26  ;;  %v1618_v44 = vrot.slane %v1617_v35, 2  ;;  %v5964_v47 = vsel %vm109_vm0, %v5953_v28, 0.0  ;;  %v5135_v25 = vld [vmem:[%s9388_s0 + $0x228] sm:$0xff] }
  0x14   :  { %v5980_v26 = vsel %vm2388_vm1, %v784_v29, %v783_v19  ;;  %v1776_v50 = vmul.f32 0.0625, %v1558_v39  ;;  %v1565_v51 = vadd.f32 %v1564_v40, %v1563_v24  ;;  %v5984_v52 = vsel %vm109_vm0, %v5958_v18, 0.0 }
  0x15   :  { %v5987_v53 = vsel %vm2388_vm1, %v792_v41, %v791_v38  ;;  %v1613_v55 = vrot.slane %v1612_v43, 1  ;;  %v1619_v56 = vadd.f32 %v1618_v44, %v1617_v35  ;;  %v573_v57 = vadd.f32 %v5964_v47, %v5984_v52 }
  0x16   :  { %v1777_v61 = vmul.f32 0.0625, %v1565_v51  ;;  %v6002_v62 = vsel %vm109_vm0, %v5969_v48, 0.0  ;;  %v6006_v63 = vsel %vm109_vm0, %v5974_v49, 0.0  ;;  %v6009_v3 = vsel %vm109_vm0, %v5135_v25, 0.0 }
  0x17   :  { %1114 = vadd.xlane.f32.xlu1 %v5907_v31  ;;  %1111 = vadd.xlane.f32.xlu0 %v5921_v36  ;;  %v1614_v4 = vadd.f32 %v1613_v55, %v1612_v43  ;;  %v1620_v5 = vrot.slane %v1619_v56, 1  ;;  %v574_v9 = vrot.slane %v573_v57, 4  ;;  %v629_v10 = vadd.f32 %v6002_v62, %v6006_v63 }
  0x18   :  { %18 = vsyncpa [#allocation3], 0  ;;  %v6022_v16 = vsel %vm2388_vm1, %v1777_v61, %v1776_v50  ;;  %v6025_v31 = vsel %vm109_vm0, %v5134_v58, 0.0  ;;  %v6028_v36 = vsel %vm109_vm0, %v5151_v59, 0.0  ;;  %v6031_v17 = vsel %vm109_vm0, %v5150_v60, 0.0  ;;  %v68_v34 = vld [vmem:[%s9388_s0 + $0xb8] sm:$0xff] }
  0x19   :  { %v1784_v23 = vmul.f32 0.0625, %v1614_v4  ;;  %v1621_v24 = vadd.f32 %v1620_v5, %v1619_v56  ;;  %v575_v29 = vadd.f32 %v574_v9, %v573_v57  ;;  %v630_v30 = vrot.slane %v629_v10, 4  ;;  %v67_v25 = vld [vmem:[%s9388_s0 + $0xb0] sm:$0xff]  ;;  %v5137_v50 = vld [vmem:[%s9388_s0 + $0x238] sm:$0xff]  ;;  %s5723_s19 = smov 48   ;;  %s5724_s20 = smov 16  }
  0x1a   :  { %v1566_v35 = vadd.f32 %v6009_v3, %v6025_v31  ;;  %v1622_v19 = vadd.f32 %v6028_v36, %v6031_v17  ;;  %v6041_v38 = vsel %vm109_vm0, %v52_v11, 0.0  ;;  %v6044_v39 = vsel %vm109_vm0, %v51_v12, 0.0  ;;  %v5136_v59 = vld [vmem:[%s9388_s0 + $0x230] sm:$0xff]  ;;  %v5153_v60 = vld [vmem:[%s9388_s0 + $0x2b8] sm:$0xff]  ;;  %s5728_s26 = smov 96   ;;  %s5729_s27 = smov 3  }
  0x1b   :  { %1156 = vadd.xlane.f32.xlu1 %v5925_v37  ;;  %1153 = vadd.xlane.f32.xlu0 %v5936_v45  ;;  %v1785_v40 = vmul.f32 0.0625, %v1621_v24  ;;  %v576_v41 = vrot.slane %v575_v29, 2  ;;  %v631_v43 = vadd.f32 %v630_v30, %v629_v10  ;;  %v580_v44 = vadd.f32 %v6041_v38, %v6044_v39  ;;  %v5152_v24 = vld [vmem:[%s9388_s0 + $0x2b0] sm:$0xff]  ;;  %s5730_s29 = smov 1   ;;  %s5731_s30 = smov 2  }
  0x1c   :  { %vm2390_vm2 = vcmask 1042434   ;;  %v1567_v51 = vrot.slane %v1566_v35, 4  ;;  %v1623_v55 = vrot.slane %v1622_v19, 4  ;;  %v6057_v37 = vsel %vm109_vm0, %v68_v34, 0.0  ;;  %s5733_s14 = smov 5   ;;  %s5734_s15 = smov 6  }
  0x1d   :  { %v6060_v45 = vsel %vm2388_vm1, %v1785_v40, %v1784_v23  ;;  %v577_v56 = vadd.f32 %v576_v41, %v575_v29  ;;  %v632_v57 = vrot.slane %v631_v43, 2  ;;  %v581_v58 = vrot.slane %v580_v44, 4  ;;  %s5736_s18 = smov 126   ;;  %s5739_s21 = smov 123  }
  0x1e   :  { %v1568_v61 = vadd.f32 %v1567_v51, %v1566_v35  ;;  %v1624_v4 = vadd.f32 %v1623_v55, %v1622_v19  ;;  %v6069_v5 = vsel %vm109_vm0, %v67_v25, 0.0  ;;  %v6072_v9 = vsel %vm109_vm0, %v5137_v50, 0.0  ;;  %s5740_s22 = smov 122   ;;  %s5742_s25 = smov [#allocation2]  }
  0x1f   :  { %1162 = vadd.xlane.f32.xlu1 %v5940_v46  ;;  %1159 = vadd.xlane.f32.xlu0 %v5946_v54  ;;  %v578_v10 = vrot.slane %v577_v56, 1  ;;  %v633_v11 = vadd.f32 %v632_v57, %v631_v43  ;;  %v582_v12 = vadd.f32 %v581_v58, %v580_v44  ;;  %v636_v23 = vadd.f32 %v6057_v37, %v6069_v5 }
  0x20   :  { %v1569_v29 = vrot.slane %v1568_v61, 2  ;;  %v1625_v30 = vrot.slane %v1624_v4, 2  ;;  %v6082_v34 = vsel %vm109_vm0, %v5136_v59, 0.0  ;;  %v6085_v35 = vsel %vm109_vm0, %v5153_v60, 0.0 }
  0x21   :  { %v579_v46 = vadd.f32 %v578_v10, %v577_v56  ;;  %v634_v54 = vrot.slane %v633_v11, 1  ;;  %v583_v19 = vrot.slane %v582_v12, 2  ;;  %v637_v40 = vrot.slane %v636_v23, 4 }
  0x22   :  { %v1570_v41 = vadd.f32 %v1569_v29, %v1568_v61  ;;  %v1626_v43 = vadd.f32 %v1625_v30, %v1624_v4  ;;  %v1573_v44 = vadd.f32 %v6072_v9, %v6082_v34  ;;  %v6090_v25 = vsel %vm109_vm0, %v5152_v24, 0.0 }
  0x23   :  { %126 = vadd.xlane.f32.xlu1 %v5964_v47  ;;  %v785_v50 = vmul.f32 0.0625, %v579_v46  ;;  %123 = vadd.xlane.f32.xlu0 %v5984_v52  ;;  %v635_v51 = vadd.f32 %v634_v54, %v633_v11  ;;  %v584_v55 = vadd.f32 %v583_v19, %v582_v12  ;;  %v638_v57 = vadd.f32 %v637_v40, %v636_v23  ;;  %v54_v52 = vld [vmem:[%s9388_s0 + $0x48] sm:$0xff]  ;;  %v53_v11 = vld [vmem:[%s9388_s0 + $0x40] sm:$0xff] }
  0x24   :  { %v1571_v56 = vrot.slane %v1570_v41, 1  ;;  %v1627_v58 = vrot.slane %v1626_v43, 1  ;;  %v1574_v59 = vrot.slane %v1573_v44, 4  ;;  %v1629_v60 = vadd.f32 %v6085_v35, %v6090_v25 }
  0x25   :  { %v3635_v61 = vsel %vm2390_vm2, %v785_v50, %v5980_v26  ;;  %v793_v4 = vmul.f32 0.0625, %v635_v51  ;;  %v585_v10 = vrot.slane %v584_v55, 1  ;;  %v639_v24 = vrot.slane %v638_v57, 2 }
  0x26   :  { %v1572_v29 = vadd.f32 %v1571_v56, %v1570_v41  ;;  %v1628_v47 = vadd.f32 %v1627_v58, %v1626_v43  ;;  %v1575_v30 = vadd.f32 %v1574_v59, %v1573_v44  ;;  %v1630_v46 = vrot.slane %v1629_v60, 4  ;;  %v70_v43 = vld [vmem:[%s9388_s0 + $0xc8] sm:$0xff] }
  0x27   :  { %174 = vadd.xlane.f32.xlu1 %v6002_v62  ;;  %v3642_v26 = vsel %vm2390_vm2, %v793_v4, %v5987_v53  ;;  %171 = vadd.xlane.f32.xlu0 %v6006_v63  ;;  %v586_v12 = vadd.f32 %v585_v10, %v584_v55  ;;  %vm2392_vm3 = vcmask 1043459   ;;  %v640_v23 = vadd.f32 %v639_v24, %v638_v57  ;;  %v69_v63 = vld [vmem:[%s9388_s0 + $0xc0] sm:$0xff] }
  0x28   :  { %v1778_v54 = vmul.f32 0.0625, %v1572_v29  ;;  %v1786_v19 = vmul.f32 0.0625, %v1628_v47  ;;  %v1576_v40 = vrot.slane %v1575_v30, 2  ;;  %v1631_v41 = vadd.f32 %v1630_v46, %v1629_v60 }
  0x29   :  { %v786_v44 = vmul.f32 0.0625, %v586_v12  ;;  %v641_v50 = vrot.slane %v640_v23, 1  ;;  %v6112_v62 = vsel %vm109_vm0, %v54_v52, 0.0  ;;  %v6115_v53 = vsel %vm109_vm0, %v53_v11, 0.0 }
  0x2a   :  { %v3699_v51 = vsel %vm2390_vm2, %v1778_v54, %v6022_v16  ;;  %v3706_v55 = vsel %vm2390_vm2, %v1786_v19, %v6060_v45  ;;  %v1577_v57 = vadd.f32 %v1576_v40, %v1575_v30  ;;  %v1632_v56 = vrot.slane %v1631_v41, 2 }
  0x2b   :  { %1120 = vadd.xlane.f32.xlu1 %v6009_v3  ;;  %1117 = vadd.xlane.f32.xlu0 %v6025_v31  ;;  %v6127_v58 = vsel %vm2392_vm3, %v786_v44, %v3635_v61  ;;  %v642_v59 = vadd.f32 %v641_v50, %v640_v23  ;;  %v587_v60 = vadd.f32 %v6112_v62, %v6115_v53  ;;  %v6132_v4 = vsel %vm109_vm0, %v70_v43, 0.0 }
  0x2c   :  { %v1578_v16 = vrot.slane %v1577_v57, 1  ;;  %v1633_v10 = vadd.f32 %v1632_v56, %v1631_v41  ;;  %v6135_v45 = vsel %vm109_vm0, %v69_v63, 0.0  ;;  %v6139_v3 = vsel %vm109_vm0, %v5838_v6, -inf }
  0x2d   :  { %v794_v31 = vmul.f32 0.0625, %v642_v59  ;;  %v588_v24 = vrot.slane %v587_v60, 4  ;;  %v643_v61 = vadd.f32 %v6132_v4, %v6135_v45  ;;  %v6145_v29 = vsel %vm109_vm0, %v5822_v1, -inf }
  0x2e   :  { %v1579_v47 = vadd.f32 %v1578_v16, %v1577_v57  ;;  %v1634_v30 = vrot.slane %v1633_v10, 1  ;;  %v815_v46 = vmax.f32 %v6145_v29, %v6139_v3  ;;  %v6151_v52 = vsel %vm109_vm0, %v5827_v2, -inf  ;;  %v5138_v57 = vld [vmem:[%s9388_s0 + $0x240] sm:$0xff] }
  0x2f   :  { %1168 = vadd.xlane.f32.xlu1 %v6028_v36  ;;  %1165 = vadd.xlane.f32.xlu0 %v6031_v17  ;;  %v6156_v6 = vsel %vm2392_vm3, %v794_v31, %v3642_v26  ;;  %v589_v11 = vadd.f32 %v588_v24, %v587_v60  ;;  %v644_v12 = vrot.slane %v643_v61, 4  ;;  %v6160_v1 = vsel %vm109_vm0, %v5817_v0, -inf  ;;  %v5155_v31 = vld [vmem:[%s9388_s0 + $0x2c8] sm:$0xff] }
  0x30   :  { %v1779_v23 = vmul.f32 0.0625, %v1579_v47  ;;  %v1635_v54 = vadd.f32 %v1634_v30, %v1633_v10  ;;  %v816_v19 = vrot.slane %v815_v46, 4  ;;  %v822_v2 = vmax.f32 %v6160_v1, %v6151_v52 }
  0x31   :  { %v590_v40 = vrot.slane %v589_v11, 2  ;;  %v645_v41 = vadd.f32 %v644_v12, %v643_v61  ;;  %v6166_v36 = vsel %vm109_vm0, %v5843_v7, -inf  ;;  %v6170_v17 = vsel %vm109_vm0, %v5848_v8, -inf  ;;  %v5154_v12 = vld [vmem:[%s9388_s0 + $0x2c0] sm:$0xff] }
  0x32   :  { %v6173_v26 = vsel %vm2392_vm3, %v1779_v23, %v3699_v51  ;;  %v1787_v0 = vmul.f32 0.0625, %v1635_v54  ;;  %vm2394_vm4 = vcmask 1044484   ;;  %v817_v43 = vmax.f32 %v815_v46, %v816_v19  ;;  %v5139_v51 = vld [vmem:[%s9388_s0 + $0x248] sm:$0xff] }
  0x33   :  { %v823_v44 = vrot.slane %v822_v2, 4  ;;  %132 = vadd.xlane.f32.xlu1 %v6041_v38  ;;  %129 = vadd.xlane.f32.xlu0 %v6044_v39  ;;  %v591_v50 = vadd.f32 %v590_v40, %v589_v11  ;;  %v646_v63 = vrot.slane %v645_v41, 2  ;;  %v871_v7 = vmax.f32 %v6170_v17, %v6166_v36 }
  0x34   :  { %v6181_v8 = vsel %vm109_vm0, %v5859_v13, -inf  ;;  %v6190_v38 = vsel %vm2392_vm3, %v1787_v0, %v3706_v55  ;;  %v818_v39 = vrot.slane %v817_v43, 2  ;;  %v6194_v59 = vsel %vm109_vm0, %v5864_v14, -inf  ;;  %v56_v0 = vld [vmem:[%s9388_s0 + $0x58] sm:$0xff] }
  0x35   :  { %v824_v56 = vmax.f32 %v822_v2, %v823_v44  ;;  %v592_v60 = vrot.slane %v591_v50, 1  ;;  %v647_v13 = vadd.f32 %v646_v63, %v645_v41  ;;  %v872_v16 = vrot.slane %v871_v7, 4 }
  0x36   :  { %v878_v10 = vmax.f32 %v6194_v59, %v6181_v8  ;;  %v819_v24 = vmax.f32 %v817_v43, %v818_v39  ;;  %v6202_v55 = vsel %vm109_vm0, %v5139_v51, 0.0  ;;  %v6205_v47 = vsel %vm109_vm0, %v5138_v57, 0.0 }
  0x37   :  { %v825_v61 = vrot.slane %v824_v56, 2  ;;  %180 = vadd.xlane.f32.xlu1 %v6057_v37  ;;  %177 = vadd.xlane.f32.xlu0 %v6069_v5  ;;  %v593_v14 = vadd.f32 %v592_v60, %v591_v50  ;;  %v648_v30 = vrot.slane %v647_v13, 1  ;;  %v873_v46 = vmax.f32 %v871_v7, %v872_v16  ;;  %v55_v7 = vld [vmem:[%s9388_s0 + $0x50] sm:$0xff] }
  0x38   :  { %v879_v11 = vrot.slane %v878_v10, 4  ;;  %v820_v23 = vrot.slane %v819_v24, 1  ;;  %v1580_v19 = vadd.f32 %v6202_v55, %v6205_v47  ;;  %v6215_v2 = vsel %vm109_vm0, %v5155_v31, 0.0 }
  0x39   :  { %v826_v54 = vmax.f32 %v824_v56, %v825_v61  ;;  %v787_v40 = vmul.f32 0.0625, %v593_v14  ;;  %v649_v37 = vadd.f32 %v648_v30, %v647_v13  ;;  %v874_v41 = vrot.slane %v873_v46, 2  ;;  %v71_v61 = vld [vmem:[%s9388_s0 + $0xd0] sm:$0xff] }
  0x3a   :  { %v880_v5 = vmax.f32 %v878_v10, %v879_v11  ;;  %v821_v43 = vmax.f32 %v819_v24, %v820_v23  ;;  %v1581_v50 = vrot.slane %v1580_v19, 4  ;;  %v6221_v63 = vsel %vm109_vm0, %v5154_v12, 0.0  ;;  %v77_v12 = vld [vmem:[%s9388_s0 + $0x100] sm:$0xff] }
  0x3b   :  { %v827_v44 = vrot.slane %v826_v54, 1  ;;  %1126 = vadd.xlane.f32.xlu1 %v6072_v9  ;;  %1123 = vadd.xlane.f32.xlu0 %v6082_v34  ;;  %v6230_v51 = vsel %vm2394_vm4, %v787_v40, %v6127_v58  ;;  %v795_v57 = vmul.f32 0.0625, %v649_v37  ;;  %v875_v39 = vmax.f32 %v873_v46, %v874_v41  ;;  %v72_v9 = vld [vmem:[%s9388_s0 + $0xd8] sm:$0xff] }
  0x3c   :  { %v881_v56 = vrot.slane %v880_v5, 2  ;;  %v1582_v13 = vadd.f32 %v1581_v50, %v1580_v19  ;;  %v1636_v16 = vadd.f32 %v6215_v2, %v6221_v63  ;;  %v6235_v10 = vsel %vm109_vm0, %v56_v0, 0.0  ;;  %v80_v0 = vld [vmem:[%s9388_s0 + $0x118] sm:$0xff] }
  0x3d   :  { %v828_v60 = vmax.f32 %v826_v54, %v827_v44  ;;  %v6242_v34 = vsel %vm2394_vm4, %v795_v57, %v6156_v6  ;;  %v876_v58 = vrot.slane %v875_v39, 1  ;;  %v6245_v24 = vsel %vm109_vm0, %v55_v7, 0.0  ;;  %v78_v6 = vld [vmem:[%s9388_s0 + $0x108] sm:$0xff] }
  0x3e   :  { %v882_v31 = vmax.f32 %v880_v5, %v881_v56  ;;  %v1583_v30 = vrot.slane %v1582_v13, 2  ;;  %v1637_v46 = vrot.slane %v1636_v16, 4  ;;  %v594_v11 = vadd.f32 %v6235_v10, %v6245_v24 }
  0x3f   :  { %v6251_v14 = vsel %vm2388_vm1, %v828_v60, %v821_v43  ;;  %1174 = vadd.xlane.f32.xlu1 %v6085_v35  ;;  %1171 = vadd.xlane.f32.xlu0 %v6090_v25  ;;  %v877_v23 = vmax.f32 %v875_v39, %v876_v58  ;;  %v6264_v19 = vsel %vm109_vm0, %v72_v9, 0.0  ;;  %v6267_v5 = vsel %vm109_vm0, %v71_v61, 0.0  ;;  %v79_v35 = vld [vmem:[%s9388_s0 + $0x110] sm:$0xff]  ;;  %v94_v60 = vld [vmem:[%s9388_s0 + $0x188] sm:$0xff] }
  0x40   :  { %v883_v54 = vrot.slane %v882_v31, 1  ;;  %v1584_v40 = vadd.f32 %v1583_v30, %v1582_v13  ;;  %v1638_v37 = vadd.f32 %v1637_v46, %v1636_v16  ;;  %v595_v41 = vrot.slane %v594_v11, 4  ;;  %v93_v13 = vld [vmem:[%s9388_s0 + $0x180] sm:$0xff] }
  0x41   :  { %v650_v43 = vadd.f32 %v6264_v19, %v6267_v5  ;;  %v6278_v44 = vsel %vm109_vm0, %v78_v6, 0.0  ;;  %v6281_v50 = vsel %vm109_vm0, %v77_v12, 0.0  ;;  %v6297_v58 = vsel %vm109_vm0, %v80_v0, 0.0  ;;  %v95_v0 = vld [vmem:[%s9388_s0 + $0x190] sm:$0xff] }
  0x42   :  { %v884_v25 = vmax.f32 %v882_v31, %v883_v54  ;;  %v1585_v7 = vrot.slane %v1584_v40, 1  ;;  %v1639_v57 = vrot.slane %v1638_v37, 2  ;;  %v596_v39 = vadd.f32 %v595_v41, %v594_v11 }
  0x43   :  { %v671_v56 = vadd.f32 %v6278_v44, %v6281_v50  ;;  %138 = vadd.xlane.f32.xlu1 %v6112_v62  ;;  %135 = vadd.xlane.f32.xlu0 %v6115_v53  ;;  %v651_v9 = vrot.slane %v650_v43, 4  ;;  %v6300_v31 = vsel %vm109_vm0, %v79_v35, 0.0  ;;  %v96_v62 = vld [vmem:[%s9388_s0 + $0x198] sm:$0xff]  ;;  %vm2396_vm5 = vcmask 1045509  }
  0x44   :  { %v6294_v16 = vsel %vm2388_vm1, %v884_v25, %v877_v23  ;;  %v1586_v61 = vadd.f32 %v1585_v7, %v1584_v40  ;;  %v1640_v30 = vadd.f32 %v1639_v57, %v1638_v37  ;;  %v597_v46 = vrot.slane %v596_v39, 2 }
  0x45   :  { %v672_v11 = vrot.slane %v671_v56, 4  ;;  %v652_v53 = vadd.f32 %v651_v9, %v650_v43  ;;  %v678_v6 = vadd.f32 %v6297_v58, %v6300_v31  ;;  %v6308_v12 = vsel %vm109_vm0, %v94_v60, 0.0 }
  0x46   :  { %v6311_v23 = vsel %vm109_vm0, %v93_v13, 0.0  ;;  %v1780_v54 = vmul.f32 0.0625, %v1586_v61  ;;  %v1641_v40 = vrot.slane %v1640_v30, 1  ;;  %v598_v37 = vadd.f32 %v597_v46, %v596_v39 }
  0x47   :  { %v673_v41 = vadd.f32 %v672_v11, %v671_v56  ;;  %186 = vadd.xlane.f32.xlu1 %v6132_v4  ;;  %183 = vadd.xlane.f32.xlu0 %v6135_v45  ;;  %v653_v35 = vrot.slane %v652_v53, 2  ;;  %v679_v25 = vrot.slane %v678_v6, 4  ;;  %v727_v43 = vadd.f32 %v6308_v12, %v6311_v23 }
  0x48   :  { %v6321_v7 = vsel %vm109_vm0, %v96_v62, 0.0  ;;  %v6325_v57 = vsel %vm2394_vm4, %v1780_v54, %v6173_v26  ;;  %v1642_v39 = vadd.f32 %v1641_v40, %v1640_v30  ;;  %v599_v56 = vrot.slane %v598_v37, 1 }
  0x49   :  { %v674_v60 = vrot.slane %v673_v41, 2  ;;  %v654_v13 = vadd.f32 %v653_v35, %v652_v53  ;;  %v680_v9 = vadd.f32 %v679_v25, %v678_v6  ;;  %v728_v4 = vrot.slane %v727_v43, 4 }
  0x4a   :  { %v6328_v45 = vsel %vm109_vm0, %v95_v0, 0.0  ;;  %v1788_v61 = vmul.f32 0.0625, %v1642_v39  ;;  %v600_v46 = vadd.f32 %v599_v56, %v598_v37  ;;  %v6336_v53 = vsel %vm109_vm0, %v5953_v28, -inf }
  0x4b   :  { %v675_v11 = vadd.f32 %v674_v60, %v673_v41  ;;  %v734_v62 = vadd.f32 %v6321_v7, %v6328_v45  ;;  %371 = vmax.xlane.f32.xlu1 %v6139_v3  ;;  %368 = vmax.xlane.f32.xlu0 %v6145_v29  ;;  %v655_v26 = vrot.slane %v654_v13, 1  ;;  %v681_v30 = vrot.slane %v680_v9, 2 }
  0x4c   :  { %v729_v54 = vadd.f32 %v728_v4, %v727_v43  ;;  %v6340_v6 = vsel %vm2394_vm4, %v1788_v61, %v6190_v38  ;;  %v788_v40 = vmul.f32 0.0625, %v600_v46  ;;  %v6344_v3 = vsel %vm109_vm0, %v5958_v18, -inf }
  0x4d   :  { %v676_v37 = vrot.slane %v675_v11, 1  ;;  %v735_v41 = vrot.slane %v734_v62, 4  ;;  %v656_v0 = vadd.f32 %v655_v26, %v654_v13  ;;  %v682_v35 = vadd.f32 %v681_v30, %v680_v9  ;;  %v5140_v13 = vld [vmem:[%s9388_s0 + $0x250] sm:$0xff] }
  0x4e   :  { %v730_v25 = vrot.slane %v729_v54, 2  ;;  %v6348_v29 = vsel %vm2396_vm5, %v788_v40, %v6230_v51  ;;  %v829_v38 = vmax.f32 %v6344_v3, %v6336_v53  ;;  %v6356_v18 = vsel %vm109_vm0, %v5969_v48, -inf  ;;  %v5141_v51 = vld [vmem:[%s9388_s0 + $0x258] sm:$0xff] }
  0x4f   :  { %9514 = vst [vmem:[#allocation5_spill] sm:$0xff] %v6348_v29  ;;  %v677_v28 = vadd.f32 %v676_v37, %v675_v11  ;;  %v736_v43 = vadd.f32 %v735_v41, %v734_v62  ;;  %377 = vmax.xlane.f32.xlu1 %v6151_v52  ;;  %374 = vmax.xlane.f32.xlu0 %v6160_v1  ;;  %v796_v39 = vmul.f32 0.0625, %v656_v0  ;;  %v683_v56 = vrot.slane %v682_v35, 1  ;;  %v5157_v62 = vld [vmem:[%s9388_s0 + $0x2d8] sm:$0xff] }
  0x50   :  { %v731_v60 = vadd.f32 %v730_v25, %v729_v54  ;;  %v830_v52 = vrot.slane %v829_v38, 4  ;;  %v6366_v1 = vsel %vm109_vm0, %v5974_v49, -inf  ;;  %v6378_v54 = vsel %vm109_vm0, %v5141_v51, 0.0 }
  0x51   :  { %v799_v9 = vmul.f32 0.0625, %v677_v28  ;;  %v737_v4 = vrot.slane %v736_v43, 2  ;;  %v6370_v61 = vsel %vm2396_vm5, %v796_v39, %v6242_v34  ;;  %v684_v48 = vadd.f32 %v683_v56, %v682_v35  ;;  %v5156_v34 = vld [vmem:[%s9388_s0 + $0x2d0] sm:$0xff] }
  0x52   :  { %9515 = vst [vmem:[#allocation6_spill] sm:$0xff] %v6370_v61  ;;  %v732_v46 = vrot.slane %v731_v60, 1  ;;  %v885_v11 = vmax.f32 %v6366_v1, %v6356_v18  ;;  %v831_v30 = vmax.f32 %v829_v38, %v830_v52  ;;  %v6381_v49 = vsel %vm109_vm0, %v5140_v13, 0.0  ;;  %v5165_v52 = vld [vmem:[%s9388_s0 + $0x318] sm:$0xff] }
  0x53   :  { %v738_v26 = vadd.f32 %v737_v4, %v736_v43  ;;  %419 = vmax.xlane.f32.xlu1 %v6166_v36  ;;  %416 = vmax.xlane.f32.xlu0 %v6170_v17  ;;  %v800_v40 = vmul.f32 0.0625, %v684_v48  ;;  %v1587_v0 = vadd.f32 %v6378_v54, %v6381_v49  ;;  %v6391_v28 = vsel %vm109_vm0, %v5157_v62, 0.0  ;;  %v5163_v43 = vld [vmem:[%s9388_s0 + $0x308] sm:$0xff]  ;;  %v5162_v36 = vld [vmem:[%s9388_s0 + $0x300] sm:$0xff] }
  0x54   :  { %v733_v37 = vadd.f32 %v732_v46, %v731_v60  ;;  %v886_v41 = vrot.slane %v885_v11, 4  ;;  %v832_v25 = vrot.slane %v831_v30, 2  ;;  %v6403_v56 = vsel %vm109_vm0, %v5156_v34, 0.0 }
  0x55   :  { %v739_v35 = vrot.slane %v738_v26, 1  ;;  %v6400_v17 = vsel %vm2388_vm1, %v800_v40, %v799_v9  ;;  %v1588_v39 = vrot.slane %v1587_v0, 4  ;;  %v1643_v4 = vadd.f32 %v6391_v28, %v6403_v56  ;;  %v5164_v9 = vld [vmem:[%s9388_s0 + $0x310] sm:$0xff] }
  0x56   :  { %v887_v38 = vmax.f32 %v885_v11, %v886_v41  ;;  %v807_v60 = vmul.f32 0.0625, %v733_v37  ;;  %v833_v13 = vmax.f32 %v831_v30, %v832_v25  ;;  %v6416_v11 = vsel %vm109_vm0, %v5163_v43, 0.0 }
  0x57   :  { %v740_v51 = vadd.f32 %v739_v35, %v738_v26  ;;  %425 = vmax.xlane.f32.xlu1 %v6181_v8  ;;  %422 = vmax.xlane.f32.xlu0 %v6194_v59  ;;  %v1589_v46 = vadd.f32 %v1588_v39, %v1587_v0  ;;  %v6419_v62 = vsel %vm109_vm0, %v5162_v36, 0.0  ;;  %v1644_v34 = vrot.slane %v1643_v4, 4 }
  0x58   :  { %v888_v48 = vrot.slane %v887_v38, 2  ;;  %v834_v30 = vrot.slane %v833_v13, 1  ;;  %v1664_v40 = vadd.f32 %v6416_v11, %v6419_v62  ;;  %v6424_v8 = vsel %vm109_vm0, %v5165_v52, 0.0 }
  0x59   :  { %v808_v26 = vmul.f32 0.0625, %v740_v51  ;;  %v1590_v41 = vrot.slane %v1589_v46, 2  ;;  %v6427_v59 = vsel %vm109_vm0, %v5164_v9, 0.0  ;;  %v1645_v25 = vadd.f32 %v1644_v34, %v1643_v4  ;;  %v5179_v51 = vld [vmem:[%s9388_s0 + $0x388] sm:$0xff] }
  0x5a   :  { %v889_v37 = vmax.f32 %v887_v38, %v888_v48  ;;  %v835_v35 = vmax.f32 %v833_v13, %v834_v30  ;;  %v1665_v43 = vrot.slane %v1664_v40, 4  ;;  %v1671_v38 = vadd.f32 %v6424_v8, %v6427_v59  ;;  %v5181_v30 = vld [vmem:[%s9388_s0 + $0x398] sm:$0xff] }
  0x5b   :  { %v6430_v0 = vsel %vm2388_vm1, %v808_v26, %v807_v60  ;;  %1132 = vadd.xlane.f32.xlu1 %v6202_v55  ;;  %1129 = vadd.xlane.f32.xlu0 %v6205_v47  ;;  %v1591_v39 = vadd.f32 %v1590_v41, %v1589_v46  ;;  %v1646_v13 = vrot.slane %v1645_v25, 2  ;;  %v5178_v55 = vld [vmem:[%s9388_s0 + $0x380] sm:$0xff]  ;;  %v6447_v26 = vsel %vm109_vm0, %v5179_v51, 0.0  ;;  %v5180_v41 = vld [vmem:[%s9388_s0 + $0x390] sm:$0xff] }
  0x5c   :  { %v890_v36 = vrot.slane %v889_v37, 1  ;;  %v6441_v60 = vsel %vm2390_vm2, %v835_v35, %v6251_v14  ;;  %v1666_v4 = vadd.f32 %v1665_v43, %v1664_v40  ;;  %v1672_v9 = vrot.slane %v1671_v38, 4 }
  0x5d   :  { %v1592_v52 = vrot.slane %v1591_v39, 1  ;;  %v1647_v48 = vadd.f32 %v1646_v13, %v1645_v25  ;;  %v6470_v51 = vsel %vm109_vm0, %v5180_v41, 0.0  ;;  %v6500_v41 = vsel %vm109_vm0, %v5888_v22, -inf }
  0x5e   :  { %v891_v47 = vmax.f32 %v889_v37, %v890_v36  ;;  %v1667_v46 = vrot.slane %v1666_v4, 2  ;;  %v1673_v40 = vadd.f32 %v1672_v9, %v1671_v38  ;;  %v6459_v37 = vsel %vm109_vm0, %v5178_v55, 0.0 }
  0x5f   :  { %1180 = vadd.xlane.f32.xlu1 %v6215_v2  ;;  %1177 = vadd.xlane.f32.xlu0 %v6221_v63  ;;  %v1593_v34 = vadd.f32 %v1592_v52, %v1591_v39  ;;  %v1648_v35 = vrot.slane %v1647_v48, 1  ;;  %v1720_v2 = vadd.f32 %v6447_v26, %v6459_v37  ;;  %v6467_v36 = vsel %vm109_vm0, %v5181_v30, 0.0 }
  0x60   :  { %v6456_v14 = vsel %vm2390_vm2, %v891_v47, %v6294_v16  ;;  %v1668_v25 = vadd.f32 %v1667_v46, %v1666_v4  ;;  %v1674_v63 = vrot.slane %v1673_v40, 2  ;;  %v1727_v55 = vadd.f32 %v6467_v36, %v6470_v51 }
  0x61   :  { %v1781_v43 = vmul.f32 0.0625, %v1593_v34  ;;  %v1649_v16 = vadd.f32 %v1648_v35, %v1647_v48  ;;  %v1721_v38 = vrot.slane %v1720_v2, 4  ;;  %v6482_v47 = vsel %vm109_vm0, %v5869_v15, -inf }
  0x62   :  { %v1669_v39 = vrot.slane %v1668_v25, 1  ;;  %v1675_v4 = vadd.f32 %v1674_v63, %v1673_v40  ;;  %v1728_v46 = vrot.slane %v1727_v55, 4  ;;  %v6492_v30 = vsel %vm109_vm0, %v5883_v21, -inf }
  0x63   :  { %144 = vadd.xlane.f32.xlu1 %v6235_v10  ;;  %141 = vadd.xlane.f32.xlu0 %v6245_v24  ;;  %v6476_v13 = vsel %vm2396_vm5, %v1781_v43, %v6325_v57  ;;  %v1789_v52 = vmul.f32 0.0625, %v1649_v16  ;;  %v1722_v48 = vadd.f32 %v1721_v38, %v1720_v2  ;;  %v6486_v10 = vsel %vm109_vm0, %v5878_v20, -inf }
  0x64   :  { %9516 = vst [vmem:[#allocation7_spill] sm:$0xff] %v6476_v13  ;;  %v1670_v9 = vadd.f32 %v1669_v39, %v1668_v25  ;;  %v1676_v24 = vrot.slane %v1675_v4, 1  ;;  %v1808_v57 = vmax.f32 %v6486_v10, %v6482_v47  ;;  %v1729_v35 = vadd.f32 %v1728_v46, %v1727_v55  ;;  %v58_v55 = vld [vmem:[%s9388_s0 + $0x68] sm:$0xff] }
  0x65   :  { %v6496_v15 = vsel %vm2396_vm5, %v1789_v52, %v6340_v6  ;;  %v1723_v40 = vrot.slane %v1722_v48, 2  ;;  %v1815_v21 = vmax.f32 %v6500_v41, %v6492_v30  ;;  %v6508_v22 = vsel %vm109_vm0, %v5901_v27, -inf  ;;  %v57_v52 = vld [vmem:[%s9388_s0 + $0x60] sm:$0xff] }
  0x66   :  { %9517 = vst [vmem:[#allocation8_spill] sm:$0xff] %v6496_v15  ;;  %v1792_v34 = vmul.f32 0.0625, %v1670_v9  ;;  %v1677_v20 = vadd.f32 %v1676_v24, %v1675_v4  ;;  %v1809_v25 = vrot.slane %v1808_v57, 4  ;;  %v1730_v6 = vrot.slane %v1729_v35, 2 }
  0x67   :  { %192 = vadd.xlane.f32.xlu1 %v6264_v19  ;;  %189 = vadd.xlane.f32.xlu0 %v6267_v5  ;;  %v1724_v2 = vadd.f32 %v1723_v40, %v1722_v48  ;;  %v1816_v16 = vrot.slane %v1815_v21, 4  ;;  %v6531_v9 = vsel %vm109_vm0, %v5932_v42, -inf  ;;  %v6544_v42 = vsel %vm109_vm0, %v58_v55, 0.0 }
  0x68   :  { %v1793_v43 = vmul.f32 0.0625, %v1677_v20  ;;  %v1810_v63 = vmax.f32 %v1808_v57, %v1809_v25  ;;  %v1731_v5 = vadd.f32 %v1730_v6, %v1729_v35  ;;  %v6547_v20 = vsel %vm109_vm0, %v57_v52, 0.0 }
  0x69   :  { %v1725_v39 = vrot.slane %v1724_v2, 1  ;;  %v1817_v4 = vmax.f32 %v1815_v21, %v1816_v16  ;;  %vm2107_vm6 = vcmask 130112   ;;  %vm2501_vm7 = vcmask 261312  }
  0x6a   :  { %v6513_v19 = vsel %vm2388_vm1, %v1793_v43, %v1792_v34  ;;  %v1811_v38 = vrot.slane %v1810_v63, 2  ;;  %v1732_v48 = vrot.slane %v1731_v5, 1  ;;  %v74_v34 = vld [vmem:[%s9388_s0 + $0xe8] sm:$0xff]  ;;  %vm2888_vm8 = vcmask 392512  }
  0x6b   :  { %210 = vadd.xlane.f32.xlu1 %v6278_v44  ;;  %207 = vadd.xlane.f32.xlu0 %v6281_v50  ;;  %v1726_v27 = vadd.f32 %v1725_v39, %v1724_v2  ;;  %v6523_v44 = vsel %vm109_vm0, %v5912_v32, -inf  ;;  %v6527_v50 = vsel %vm109_vm0, %v5917_v33, -inf  ;;  %v1818_v46 = vrot.slane %v1817_v4, 2  ;;  %v73_v32 = vld [vmem:[%s9388_s0 + $0xe0] sm:$0xff]  ;;  %v82_v43 = vld [vmem:[%s9388_s0 + $0x128] sm:$0xff] }
  0x6c   :  { %v1812_v24 = vmax.f32 %v1810_v63, %v1811_v38  ;;  %v1864_v57 = vmax.f32 %v6523_v44, %v6508_v22  ;;  %v1871_v40 = vmax.f32 %v6531_v9, %v6527_v50  ;;  %v1733_v35 = vadd.f32 %v1732_v48, %v1731_v5 }
  0x6d   :  { %v1800_v33 = vmul.f32 0.0625, %v1726_v27  ;;  %v1819_v21 = vmax.f32 %v1817_v4, %v1818_v46  ;;  %v6556_v63 = vadd.f32 %v6544_v42, %v6547_v20  ;;  %v6559_v16 = vsel %vm109_vm0, %v74_v34, 0.0 }
  0x6e   :  { %v1813_v25 = vrot.slane %v1812_v24, 1  ;;  %v1865_v2 = vrot.slane %v1864_v57, 4  ;;  %v1872_v6 = vrot.slane %v1871_v40, 4  ;;  %v1801_v39 = vmul.f32 0.0625, %v1733_v35 }
  0x6f   :  { %216 = vadd.xlane.f32.xlu1 %v6297_v58  ;;  %213 = vadd.xlane.f32.xlu0 %v6300_v31  ;;  %9518 = vst [vmem:[#allocation9_spill] sm:$0xff] %v6556_v63  ;;  %v6562_v58 = vsel %vm109_vm0, %v73_v32, 0.0  ;;  %v81_v31 = vld [vmem:[%s9388_s0 + $0x120] sm:$0xff]  ;;  %v1820_v38 = vrot.slane %v1819_v21, 1  ;;  %v6572_v27 = vsel %vm109_vm0, %v82_v43, 0.0  ;;  %vm3275_vm9 = vcmask 523712  }
  0x70   :  { %v1814_v5 = vmax.f32 %v1812_v24, %v1813_v25  ;;  %v1866_v4 = vmax.f32 %v1864_v57, %v1865_v2  ;;  %v1873_v55 = vmax.f32 %v1871_v40, %v1872_v6  ;;  %v6569_v52 = vadd.f32 %v6559_v16, %v6562_v58  ;;  %v98_v57 = vld [vmem:[%s9388_s0 + $0x1a8] sm:$0xff]  ;;  %v97_v32 = vld [vmem:[%s9388_s0 + $0x1a0] sm:$0xff] }
  0x71   :  { %v6577_v48 = vsel %vm2388_vm1, %v1801_v39, %v1800_v33  ;;  %v1821_v46 = vmax.f32 %v1819_v21, %v1820_v38  ;;  %v6580_v24 = vsel %vm109_vm0, %v81_v31, 0.0  ;;  %v6594_v21 = vsel %vm109_vm0, %v98_v57, 0.0 }
  0x72   :  { %9519 = vst [vmem:[#allocation10_spill] sm:$0xff] %v6569_v52  ;;  %v1867_v34 = vrot.slane %v1866_v4, 2  ;;  %v1874_v40 = vrot.slane %v1873_v55, 2  ;;  %v6597_v2 = vsel %vm109_vm0, %v97_v32, 0.0  ;;  %vm2398_vm10 = vcmask 1046534  }
  0x73   :  { %258 = vadd.xlane.f32.xlu1 %v6308_v12  ;;  %255 = vadd.xlane.f32.xlu0 %v6311_v23  ;;  %v685_v12 = vadd.f32 %v6572_v27, %v6580_v24  ;;  %v6591_v23 = vsel %vm2388_vm1, %v1821_v46, %v1814_v5  ;;  %v741_v6 = vadd.f32 %v6594_v21, %v6597_v2  ;;  %vm2400_vm11 = vcmask 1047559  }
  0x74   :  { %v1868_v33 = vmax.f32 %v1866_v4, %v1867_v34  ;;  %v1875_v35 = vmax.f32 %v1873_v55, %v1874_v40  ;;  %vm3592_vm12 = vcmask 261120   ;;  %vm5725_vm13 = vmmov 0  }
  0x75   :  { %v686_v25 = vrot.slane %v685_v12, 4  ;;  %v742_v38 = vrot.slane %v741_v6, 4  ;;  %vm3597_vm14 = vcmask 392192   ;;  %vm4070_vm15 = vcmask 23552  }
  0x76   :  { %v1869_v43 = vrot.slane %v1868_v33, 1  ;;  %v1876_v31 = vrot.slane %v1875_v35, 1 }
  0x77   :  { %264 = vadd.xlane.f32.xlu1 %v6321_v7  ;;  %261 = vadd.xlane.f32.xlu0 %v6328_v45  ;;  %v687_v39 = vadd.f32 %v686_v25, %v685_v12  ;;  %v743_v46 = vadd.f32 %v742_v38, %v741_v6 }
  0x78   :  { %v1870_v5 = vmax.f32 %v1868_v33, %v1869_v43  ;;  %v1877_v4 = vmax.f32 %v1875_v35, %v1876_v31 }
  0x79   :  { %v688_v55 = vrot.slane %v687_v39, 2  ;;  %v744_v45 = vrot.slane %v743_v46, 2 }
  0x7a   :  { %v6606_v34 = vsel %vm2388_vm1, %v1877_v4, %v1870_v5 }
  0x7b   :  { %383 = vmax.xlane.f32.xlu1 %v6336_v53  ;;  %380 = vmax.xlane.f32.xlu0 %v6344_v3  ;;  %v689_v7 = vadd.f32 %v688_v55, %v687_v39  ;;  %v745_v32 = vadd.f32 %v744_v45, %v743_v46 }
  0x7d   :  { %v690_v57 = vrot.slane %v689_v7, 1  ;;  %v746_v12 = vrot.slane %v745_v32, 1 }
  0x7f   :  { %431 = vmax.xlane.f32.xlu1 %v6356_v18  ;;  %428 = vmax.xlane.f32.xlu0 %v6366_v1  ;;  %v691_v40 = vadd.f32 %v690_v57, %v689_v7  ;;  %v747_v53 = vadd.f32 %v746_v12, %v745_v32  ;;  %v2096_v1 = vlaneseq }
  0x81   :  { %v801_v33 = vmul.f32 0.0625, %v691_v40  ;;  %v809_v35 = vmul.f32 0.0625, %v747_v53 }
  0x83   :  { %1138 = vadd.xlane.f32.xlu1 %v6378_v54  ;;  %1135 = vadd.xlane.f32.xlu0 %v6381_v49  ;;  %v6614_v3 = vsel %vm2390_vm2, %v801_v33, %v6400_v17  ;;  %v6620_v18 = vsel %vm2390_vm2, %v809_v35, %v6430_v0  ;;  %v6624_v54 = vand.u32 127, %v2096_v1  ;;  %v6628_v49 = vshrl.u32 %v2096_v1, 7 }
  0x84   :  { %9520 = vst [vmem:[#allocation11_spill] sm:$0xff] %v6614_v3  ;;  %9521 = vst [vmem:[#allocation12_spill] sm:$0xff] %v6620_v18 }
  0x85   :  { %9522 = vst [vmem:[#allocation13_spill] sm:$0xff] %v6628_v49  ;;  %v6633_v0 = vsub.s32 %v6624_v54, %v6628_v49  ;;  %v2496_v57 = vadd.s32 4294967272, %v6624_v54 }
  0x87   :  { %1186 = vadd.xlane.f32.xlu1 %v6391_v28  ;;  %1183 = vadd.xlane.f32.xlu0 %v6403_v56  ;;  %v2102_v28 = vadd.s32 4294967288, %v6624_v54  ;;  %9523 = vst [vmem:[#allocation14_spill] sm:$0xff] %v6633_v0  ;;  %v6659_v1 = vsub.s32 %v2496_v57, %v6628_v49 }
  0x89   :  { %9525 = vst [vmem:[#allocation16_spill] sm:$0xff] %v6659_v1 }
  0x8b   :  { %1204 = vadd.xlane.f32.xlu1 %v6416_v11  ;;  %1201 = vadd.xlane.f32.xlu0 %v6419_v62  ;;  %v6638_v62 = vsub.s32 %v2102_v28, %v6628_v49 }
  0x8d   :  { %9524 = vst [vmem:[#allocation15_spill] sm:$0xff] %v6638_v62 }
  0x8f   :  { %1210 = vadd.xlane.f32.xlu1 %v6424_v8  ;;  %1207 = vadd.xlane.f32.xlu0 %v6427_v59 }
  0x90   :  { %v118_v17 = vpop.xlane.xlu1 %117  ;;  %v112_v56 = vpop.xlane.xlu0 %111 }
  0x91   :  { %v303_v25 = vmul.f32 0.0625, %v112_v56  ;;  %v305_v11 = vmul.f32 0.0625, %v118_v17 }
  0x93   :  { %1252 = vadd.xlane.f32.xlu1 %v6447_v26  ;;  %1249 = vadd.xlane.f32.xlu0 %v6459_v37  ;;  %v2101_v43 = vrot.slane %v303_v25, %v6633_v0  ;;  %v2112_v39 = vrot.slane %v305_v11, %v6633_v0 }
  0x94   :  { %v121_v8 = vpop.xlane.xlu1 %120  ;;  %v115_v59 = vpop.xlane.xlu0 %114 }
  0x95   :  { %v306_v6 = vmul.f32 0.0625, %v121_v8  ;;  %v304_v31 = vmul.f32 0.0625, %v115_v59 }
  0x97   :  { %v2116_v5 = vrot.slane %v306_v6, %v6638_v62  ;;  %v2106_v38 = vrot.slane %v304_v31, %v6638_v62  ;;  %1258 = vadd.xlane.f32.xlu1 %v6467_v36  ;;  %1255 = vadd.xlane.f32.xlu0 %v6470_v51  ;;  %v2491_v36 = vadd.s32 4294967280, %v6624_v54 }
  0x98   :  { %v163_v26 = vpop.xlane.xlu1 %162  ;;  %v160_v37 = vpop.xlane.xlu0 %159 }
  0x99   :  { %v2117_v4 = vsel %vm2107_vm6, %v2116_v5, %v2112_v39  ;;  %v2108_v55 = vsel %vm2107_vm6, %v2106_v38, %v2101_v43  ;;  %v320_v46 = vmul.f32 0.0625, %v163_v26  ;;  %v319_v7 = vmul.f32 0.0625, %v160_v37 }
  0x9a   :  { %v6649_v45 = vsel %vm2388_vm1, %v2117_v4, %v2108_v55 }
  0x9b   :  { %v2179_v32 = vrot.slane %v320_v46, %v6638_v62  ;;  %v2175_v40 = vrot.slane %v319_v7, %v6633_v0  ;;  %1364 = vmax.xlane.f32.xlu1 %v6482_v47  ;;  %1361 = vmax.xlane.f32.xlu0 %v6486_v10  ;;  %v6666_v47 = vsub.s32 %v2491_v36, %v6628_v49 }
  0x9c   :  { %v169_v51 = vpop.xlane.xlu1 %168  ;;  %v166_v12 = vpop.xlane.xlu0 %165 }
  0x9d   :  { %v2180_v33 = vsel %vm2107_vm6, %v2179_v32, %v2175_v40  ;;  %v322_v53 = vmul.f32 0.0625, %v169_v51  ;;  %v321_v35 = vmul.f32 0.0625, %v166_v12  ;;  %9526 = vst [vmem:[#allocation17_spill] sm:$0xff] %v6666_v47 }
  0x9f   :  { %v2188_v28 = vrot.slane %v322_v53, %v6638_v62  ;;  %v2184_v17 = vrot.slane %v321_v35, %v6633_v0  ;;  %1370 = vmax.xlane.f32.xlu1 %v6492_v30  ;;  %1367 = vmax.xlane.f32.xlu0 %v6500_v41 }
  0xa0   :  { %v1109_v10 = vpop.xlane.xlu1 %1108  ;;  %v1106_v56 = vpop.xlane.xlu0 %1105 }
  0xa1   :  { %v2189_v25 = vsel %vm2107_vm6, %v2188_v28, %v2184_v17  ;;  %v1297_v11 = vmul.f32 0.0625, %v1109_v10  ;;  %v1296_v8 = vmul.f32 0.0625, %v1106_v56 }
  0xa2   :  { %v6670_v59 = vsel %vm2388_vm1, %v2189_v25, %v2180_v33 }
  0xa3   :  { %v2500_v43 = vrot.slane %v1297_v11, %v6659_v1  ;;  %v2495_v6 = vrot.slane %v1296_v8, %v6666_v47  ;;  %1412 = vmax.xlane.f32.xlu1 %v6508_v22  ;;  %1409 = vmax.xlane.f32.xlu0 %v6523_v44 }
  0xa4   :  { %v1115_v30 = vpop.xlane.xlu1 %1114  ;;  %v1112_v41 = vpop.xlane.xlu0 %1111 }
  0xa5   :  { %v2502_v31 = vsel %vm2501_vm7, %v2500_v43, %v2495_v6  ;;  %v1299_v39 = vmul.f32 0.0625, %v1115_v30  ;;  %v1298_v5 = vmul.f32 0.0625, %v1112_v41 }
  0xa7   :  { %v2510_v38 = vrot.slane %v1299_v39, %v6659_v1  ;;  %v2506_v26 = vrot.slane %v1298_v5, %v6666_v47  ;;  %1418 = vmax.xlane.f32.xlu1 %v6527_v50  ;;  %1415 = vmax.xlane.f32.xlu0 %v6531_v9 }
  0xa8   :  { %v1157_v37 = vpop.xlane.xlu1 %1156  ;;  %v1154_v4 = vpop.xlane.xlu0 %1153 }
  0xa9   :  { %v2511_v22 = vsel %vm2501_vm7, %v2510_v38, %v2506_v26  ;;  %v1313_v55 = vmul.f32 0.0625, %v1157_v37  ;;  %v1312_v44 = vmul.f32 0.0625, %v1154_v4 }
  0xaa   :  { %v2782_v46 = vsel %vm2388_vm1, %v2511_v22, %v2502_v31  ;;  %v5609_v22 = vld [vmem:[%s9388_s0 + $0xb8] sm:$0xff] }
  0xab   :  { %v2573_v7 = vrot.slane %v1313_v55, %v6659_v1  ;;  %v2569_v57 = vrot.slane %v1312_v44, %v6666_v47  ;;  %150 = vadd.xlane.f32.xlu1 %v6544_v42  ;;  %147 = vadd.xlane.f32.xlu0 %v6547_v20  ;;  %v6728_v55 = vsel %vm109_vm0, %v5609_v22, -inf }
  0xac   :  { %v1163_v32 = vpop.xlane.xlu1 %1162  ;;  %v1160_v50 = vpop.xlane.xlu0 %1159 }
  0xad   :  { %v2574_v9 = vsel %vm2501_vm7, %v2573_v7, %v2569_v57  ;;  %v1315_v40 = vmul.f32 0.0625, %v1163_v32  ;;  %v1314_v36 = vmul.f32 0.0625, %v1160_v50  ;;  %v5143_v50 = vld [vmem:[%s9388_s0 + $0x268] sm:$0xff] }
  0xaf   :  { %v2582_v51 = vrot.slane %v1315_v40, %v6659_v1  ;;  %v2578_v12 = vrot.slane %v1314_v36, %v6666_v47  ;;  %198 = vadd.xlane.f32.xlu1 %v6559_v16  ;;  %195 = vadd.xlane.f32.xlu0 %v6562_v58 }
  0xb0   :  { %v127_v33 = vpop.xlane.xlu1 %126  ;;  %v124_v53 = vpop.xlane.xlu0 %123 }
  0xb1   :  { %v2583_v42 = vsel %vm2501_vm7, %v2582_v51, %v2578_v12  ;;  %v308_v35 = vmul.f32 0.0625, %v127_v33  ;;  %v307_v20 = vmul.f32 0.0625, %v124_v53  ;;  %v1143_v53 = vsel %vm109_vm0, %v5143_v50, 0.0 }
  0xb2   :  { %v2789_v28 = vsel %vm2388_vm1, %v2583_v42, %v2574_v9  ;;  %v5142_v9 = vld [vmem:[%s9388_s0 + $0x260] sm:$0xff] }
  0xb3   :  { %v2125_v17 = vrot.slane %v308_v35, %v6638_v62  ;;  %v2121_v10 = vrot.slane %v307_v20, %v6633_v0  ;;  %222 = vadd.xlane.f32.xlu1 %v6572_v27  ;;  %219 = vadd.xlane.f32.xlu0 %v6580_v24  ;;  %v5607_v24 = vld [vmem:[%s9388_s0 + $0x38] sm:$0xff]  ;;  %v1140_v42 = vsel %vm109_vm0, %v5142_v9, 0.0 }
  0xb4   :  { %v175_v56 = vpop.xlane.xlu1 %174  ;;  %v172_v16 = vpop.xlane.xlu0 %171  ;;  %v6709_v41 = vsel %vm109_vm0, %v5607_v24, -inf }
  0xb5   :  { %v2126_v58 = vsel %vm2107_vm6, %v2125_v17, %v2121_v10  ;;  %v324_v25 = vmul.f32 0.0625, %v175_v56  ;;  %v323_v11 = vmul.f32 0.0625, %v172_v16  ;;  %v5158_v10 = vld [vmem:[%s9388_s0 + $0x2e0] sm:$0xff] }
  0xb6   :  { %v2391_v8 = vsel %vm2390_vm2, %v2126_v58, %v6649_v45  ;;  %v5608_v45 = vld [vmem:[%s9388_s0 + $0x30] sm:$0xff] }
  0xb7   :  { %v2197_v43 = vrot.slane %v324_v25, %v6638_v62  ;;  %v2193_v6 = vrot.slane %v323_v11, %v6633_v0  ;;  %270 = vadd.xlane.f32.xlu1 %v6594_v21  ;;  %267 = vadd.xlane.f32.xlu0 %v6597_v2  ;;  %v6715_v31 = vsel %vm109_vm0, %v5608_v45, -inf  ;;  %v5166_v45 = vld [vmem:[%s9388_s0 + $0x320] sm:$0xff] }
  0xb8   :  { %v1121_v27 = vpop.xlane.xlu1 %1120  ;;  %v1118_v30 = vpop.xlane.xlu0 %1117 }
  0xb9   :  { %v2198_v21 = vsel %vm2107_vm6, %v2197_v43, %v2193_v6  ;;  %v1301_v39 = vmul.f32 0.0625, %v1121_v27  ;;  %v1300_v2 = vmul.f32 0.0625, %v1118_v30  ;;  %v1188_v6 = vsel %vm109_vm0, %v5158_v10, 0.0 }
  0xba   :  { %v2403_v5 = vsel %vm2390_vm2, %v2198_v21, %v6670_v59  ;;  %v5610_v59 = vld [vmem:[%s9388_s0 + $0xb0] sm:$0xff]  ;;  %v1594_v10 = vadd.f32 %v1143_v53, %v1140_v42 }
  0xbb   :  { %v2519_v38 = vrot.slane %v1301_v39, %v6659_v1  ;;  %v2515_v26 = vrot.slane %v1300_v2, %v6666_v47  ;;  %389 = vmax.xlane.f32.xlu1 %v6709_v41  ;;  %386 = vmax.xlane.f32.xlu0 %v6715_v31  ;;  %v433_v44 = vsel %vm109_vm0, %v5610_v59, -inf }
  0xbc   :  { %v1169_v37 = vpop.xlane.xlu1 %1168  ;;  %v1166_v4 = vpop.xlane.xlu0 %1165 }
  0xbd   :  { %v2520_v7 = vsel %vm2501_vm7, %v2519_v38, %v2515_v26  ;;  %v1317_v57 = vmul.f32 0.0625, %v1169_v37  ;;  %v1316_v32 = vmul.f32 0.0625, %v1166_v4  ;;  %v6777_v4 = vsel %vm109_vm0, %v5166_v45, 0.0 }
  0xbe   :  { %v2783_v40 = vsel %vm2390_vm2, %v2520_v7, %v2782_v46  ;;  %v5159_v46 = vld [vmem:[%s9388_s0 + $0x2e8] sm:$0xff]  ;;  %v1595_v45 = vrot.slane %v1594_v10, 4 }
  0xbf   :  { %v2591_v36 = vrot.slane %v1317_v57, %v6659_v1  ;;  %v2587_v51 = vrot.slane %v1316_v32, %v6666_v47  ;;  %437 = vmax.xlane.f32.xlu1 %v6728_v55  ;;  %434 = vmax.xlane.f32.xlu0 %v433_v44  ;;  %v1191_v43 = vsel %vm109_vm0, %v5159_v46, 0.0  ;;  %v5182_v57 = vld [vmem:[%s9388_s0 + $0x3a0] sm:$0xff]  ;;  %v892_v46 = vmax.f32 %v433_v44, %v6728_v55 }
  0xc0   :  { %v133_v12 = vpop.xlane.xlu1 %132  ;;  %v130_v33 = vpop.xlane.xlu0 %129  ;;  %v5612_v55 = vld [vmem:[%s9388_s0 + $0x220] sm:$0xff] }
  0xc1   :  { %v2592_v35 = vsel %vm2501_vm7, %v2591_v36, %v2587_v51  ;;  %v310_v20 = vmul.f32 0.0625, %v133_v12  ;;  %v309_v17 = vmul.f32 0.0625, %v130_v33  ;;  %v6797_v33 = vsel %vm109_vm0, %v5182_v57, 0.0 }
  0xc2   :  { %v6755_v56 = vsel %vm2390_vm2, %v2592_v35, %v2789_v28  ;;  %v5167_v28 = vld [vmem:[%s9388_s0 + $0x328] sm:$0xff]  ;;  %v6820_v44 = vsel %vm109_vm0, %v5612_v55, -inf }
  0xc3   :  { %v2134_v16 = vrot.slane %v310_v20, %v6638_v62  ;;  %v2130_v58 = vrot.slane %v309_v17, %v6633_v0  ;;  %1144 = vadd.xlane.f32.xlu1 %v1143_v53  ;;  %1141 = vadd.xlane.f32.xlu0 %v1140_v42  ;;  %v6774_v37 = vsel %vm109_vm0, %v5167_v28, 0.0  ;;  %v836_v17 = vmax.f32 %v6715_v31, %v6709_v41  ;;  %v5611_v41 = vld [vmem:[%s9388_s0 + $0x228] sm:$0xff] }
  0xc4   :  { %v181_v25 = vpop.xlane.xlu1 %180  ;;  %v178_v11 = vpop.xlane.xlu0 %177  ;;  %v6814_v31 = vsel %vm109_vm0, %v5611_v41, -inf  ;;  %v893_v28 = vrot.slane %v892_v46, 4  ;;  %v1678_v41 = vadd.f32 %v6774_v37, %v6777_v4 }
  0xc5   :  { %v2135_v27 = vsel %vm2107_vm6, %v2134_v16, %v2130_v58  ;;  %v326_v30 = vmul.f32 0.0625, %v181_v25  ;;  %v325_v24 = vmul.f32 0.0625, %v178_v11  ;;  %v1650_v11 = vadd.f32 %v1191_v43, %v1188_v6 }
  0xc6   :  { %v6769_v21 = vsel %vm2392_vm3, %v2135_v27, %v2391_v8  ;;  %v5183_v8 = vld [vmem:[%s9388_s0 + $0x3a8] sm:$0xff] }
  0xc7   :  { %v2206_v39 = vrot.slane %v326_v30, %v6638_v62  ;;  %v2202_v2 = vrot.slane %v325_v24, %v6633_v0  ;;  %1192 = vadd.xlane.f32.xlu1 %v1191_v43  ;;  %1189 = vadd.xlane.f32.xlu0 %v1188_v6  ;;  %v6794_v12 = vsel %vm109_vm0, %v5183_v8, 0.0  ;;  %v2878_v6 = vadd.s32 4294967264, %v6624_v54 }
  0xc8   :  { %v1127_v38 = vpop.xlane.xlu1 %1126  ;;  %v1124_v26 = vpop.xlane.xlu0 %1123  ;;  %v837_v24 = vrot.slane %v836_v17, 4 }
  0xc9   :  { %v2207_v22 = vsel %vm2107_vm6, %v2206_v39, %v2202_v2  ;;  %v1303_v59 = vmul.f32 0.0625, %v1127_v38  ;;  %v1302_v7 = vmul.f32 0.0625, %v1124_v26  ;;  %v1651_v26 = vrot.slane %v1650_v11, 4 }
  0xca   :  { %v6787_v32 = vsel %vm2392_vm3, %v2207_v22, %v2403_v5 }
  0xcb   :  { %v2528_v50 = vrot.slane %v1303_v59, %v6659_v1  ;;  %v2524_v9 = vrot.slane %v1302_v7, %v6666_v47  ;;  %1216 = vadd.xlane.f32.xlu1 %v6774_v37  ;;  %1213 = vadd.xlane.f32.xlu0 %v6777_v4  ;;  %v5613_v7 = vld [vmem:[%s9388_s0 + $0x2a8] sm:$0xff] }
  0xcc   :  { %v1175_v36 = vpop.xlane.xlu1 %1174  ;;  %v1172_v51 = vpop.xlane.xlu0 %1171  ;;  %v6837_v8 = vsel %vm109_vm0, %v5613_v7, -inf }
  0xcd   :  { %v2529_v35 = vsel %vm2501_vm7, %v2528_v50, %v2524_v9  ;;  %v1319_v5 = vmul.f32 0.0625, %v1175_v36  ;;  %v1318_v20 = vmul.f32 0.0625, %v1172_v51 }
  0xce   :  { %v6804_v16 = vsel %vm2392_vm3, %v2529_v35, %v2783_v40  ;;  %v2883_v40 = vadd.s32 4294967256, %v6624_v54  ;;  %v6850_v35 = vsub.s32 %v2878_v6, %v6628_v49 }
  0xcf   :  { %v2600_v58 = vrot.slane %v1319_v5, %v6659_v1  ;;  %v2596_v25 = vrot.slane %v1318_v20, %v6666_v47  ;;  %1264 = vadd.xlane.f32.xlu1 %v6794_v12  ;;  %1261 = vadd.xlane.f32.xlu0 %v6797_v33  ;;  %v60_v5 = vld [vmem:[%s9388_s0 + $0x78] sm:$0xff]  ;;  %v59_v20 = vld [vmem:[%s9388_s0 + $0x70] sm:$0xff] }
  0xd0   :  { %v139_v27 = vpop.xlane.xlu1 %138  ;;  %v136_v30 = vpop.xlane.xlu0 %135  ;;  %v6846_v50 = vsub.s32 %v2883_v40, %v6628_v49 }
  0xd1   :  { %v2601_v53 = vsel %vm2501_vm7, %v2600_v58, %v2596_v25  ;;  %v312_v42 = vmul.f32 0.0625, %v139_v27  ;;  %v311_v43 = vmul.f32 0.0625, %v136_v30  ;;  %v838_v58 = vmax.f32 %v836_v17, %v837_v24 }
  0xd2   :  { %v6827_v39 = vsel %vm2392_vm3, %v2601_v53, %v6755_v56  ;;  %v5614_v56 = vld [vmem:[%s9388_s0 + $0x2a0] sm:$0xff]  ;;  %v894_v25 = vmax.f32 %v892_v46, %v893_v28  ;;  %v1596_v27 = vadd.f32 %v1595_v45, %v1594_v10  ;;  %v1652_v53 = vadd.f32 %v1651_v26, %v1650_v11  ;;  %v75_v11 = vld [vmem:[%s9388_s0 + $0xf0] sm:$0xff] }
  0xd3   :  { %v2143_v2 = vrot.slane %v312_v42, %v6638_v62  ;;  %v2139_v38 = vrot.slane %v311_v43, %v6633_v0  ;;  %1376 = vmax.xlane.f32.xlu1 %v6814_v31  ;;  %1373 = vmax.xlane.f32.xlu0 %v6820_v44  ;;  %v6843_v57 = vsel %vm109_vm0, %v5614_v56, -inf  ;;  %v6869_v46 = vsel %vm109_vm0, %v60_v5, 0.0  ;;  %v76_v43 = vld [vmem:[%s9388_s0 + $0xf8] sm:$0xff] }
  0xd4   :  { %v187_v22 = vpop.xlane.xlu1 %186  ;;  %v184_v59 = vpop.xlane.xlu0 %183  ;;  %9527 = vst [vmem:[#allocation18_spill] sm:$0xff] %v6869_v46  ;;  %v839_v6 = vrot.slane %v838_v58, 2  ;;  %v895_v24 = vrot.slane %v894_v25, 2  ;;  %v1597_v45 = vrot.slane %v1596_v27, 2  ;;  %v1653_v26 = vrot.slane %v1652_v53, 2 }
  0xd5   :  { %v2144_v9 = vsel %vm2107_vm6, %v2143_v2, %v2139_v38  ;;  %v328_v36 = vmul.f32 0.0625, %v187_v22  ;;  %v327_v51 = vmul.f32 0.0625, %v184_v59  ;;  %v1679_v2 = vrot.slane %v1678_v41, 4 }
  0xd6   :  { %v6860_v30 = vsel %vm2394_vm4, %v2144_v9, %v6769_v21  ;;  %v6872_v21 = vsel %vm109_vm0, %v59_v20, 0.0  ;;  %v6891_v7 = vsel %vm109_vm0, %v76_v43, 0.0  ;;  %v6894_v56 = vsel %vm109_vm0, %v75_v11, 0.0 }
  0xd7   :  { %v2215_v55 = vrot.slane %v328_v36, %v6638_v62  ;;  %v2211_v40 = vrot.slane %v327_v51, %v6633_v0  ;;  %1424 = vmax.xlane.f32.xlu1 %v6837_v8  ;;  %1421 = vmax.xlane.f32.xlu0 %v6843_v57  ;;  %9528 = vst [vmem:[#allocation19_spill] sm:$0xff] %v6872_v21  ;;  %9529 = vst [vmem:[#allocation20_spill] sm:$0xff] %v6891_v7  ;;  %v84_v36 = vld [vmem:[%s9388_s0 + $0x138] sm:$0xff]  ;;  %v83_v51 = vld [vmem:[%s9388_s0 + $0x130] sm:$0xff] }
  0xd8   :  { %v372_v42 = vpop.xlane.xlu1 %371  ;;  %v369_v17 = vpop.xlane.xlu0 %368  ;;  %9530 = vst [vmem:[#allocation21_spill] sm:$0xff] %v6894_v56  ;;  %v840_v5 = vmax.f32 %v838_v58, %v839_v6  ;;  %v896_v20 = vmax.f32 %v894_v25, %v895_v24  ;;  %v6913_v58 = vsel %vm109_vm0, %v84_v36, 0.0  ;;  %v6916_v25 = vsel %vm109_vm0, %v83_v51, 0.0 }
  0xd9   :  { %v2216_v37 = vsel %vm2107_vm6, %v2215_v55, %v2211_v40  ;;  %v2887_v4 = vrot.slane %v372_v42, %v6846_v50  ;;  %v2882_v10 = vrot.slane %v369_v17, %v6850_v35  ;;  %v1734_v55 = vadd.f32 %v6794_v12, %v6797_v33  ;;  %9531 = vst [vmem:[#allocation22_spill] sm:$0xff] %v6913_v58 }
  0xda   :  { %v6885_v28 = vsel %vm2394_vm4, %v2216_v37, %v6787_v32  ;;  %v1598_v40 = vadd.f32 %v1597_v45, %v1596_v27  ;;  %v1680_v42 = vadd.f32 %v1679_v2, %v1678_v41  ;;  %v1654_v37 = vadd.f32 %v1653_v26, %v1652_v53  ;;  %9532 = vst [vmem:[#allocation23_spill] sm:$0xff] %v6916_v25  ;;  %v100_v41 = vld [vmem:[%s9388_s0 + $0x1b8] sm:$0xff]  ;;  %v99_v53 = vld [vmem:[%s9388_s0 + $0x1b0] sm:$0xff] }
  0xdb   :  { %v2889_v38 = vsel %vm2888_vm8, %v2887_v4, %v2882_v10  ;;  %156 = vadd.xlane.f32.xlu1 %v6869_v46  ;;  %153 = vadd.xlane.f32.xlu0 %v6872_v21  ;;  %v1822_v12 = vmax.f32 %v6820_v44, %v6814_v31  ;;  %v841_v11 = vrot.slane %v840_v5, 1  ;;  %v897_v6 = vrot.slane %v896_v20, 1 }
  0xdc   :  { %v378_v22 = vpop.xlane.xlu1 %377  ;;  %v375_v59 = vpop.xlane.xlu0 %374  ;;  %v1735_v24 = vrot.slane %v1734_v55, 4  ;;  %v1599_v45 = vrot.slane %v1598_v40, 1  ;;  %v1681_v2 = vrot.slane %v1680_v42, 2  ;;  %v1655_v31 = vrot.slane %v1654_v37, 1 }
  0xdd   :  { %v2897_v32 = vrot.slane %v378_v22, %v6846_v50  ;;  %v2893_v9 = vrot.slane %v375_v59, %v6850_v35  ;;  %v6932_v22 = vsel %vm109_vm0, %v100_v41, 0.0  ;;  %v6935_v59 = vsel %vm109_vm0, %v99_v53, 0.0 }
  0xde   :  { %9533 = vst [vmem:[#allocation24_spill] sm:$0xff] %v6932_v22  ;;  %9534 = vst [vmem:[#allocation25_spill] sm:$0xff] %v6935_v59  ;;  %v842_v51 = vmax.f32 %v840_v5, %v841_v11  ;;  %v1656_v41 = vadd.f32 %v1655_v31, %v1654_v37  ;;  %v5615_v5 = vld [vmem:[%s9388_s0 + $0x48] sm:$0xff] }
  0xdf   :  { %v2898_v17 = vsel %vm2888_vm8, %v2897_v32, %v2893_v9  ;;  %204 = vadd.xlane.f32.xlu1 %v6891_v7  ;;  %201 = vadd.xlane.f32.xlu0 %v6894_v56  ;;  %v1823_v32 = vrot.slane %v1822_v12, 4 }
  0xe0   :  { %v6910_v4 = vsel %vm2388_vm1, %v2898_v17, %v2889_v38  ;;  %v420_v10 = vpop.xlane.xlu1 %419  ;;  %v417_v43 = vpop.xlane.xlu0 %416  ;;  %v898_v17 = vmax.f32 %v896_v20, %v897_v6 }
  0xe1   :  { %v2960_v33 = vrot.slane %v420_v10, %v6846_v50  ;;  %v2956_v27 = vrot.slane %v417_v43, %v6850_v35  ;;  %v1736_v10 = vadd.f32 %v1735_v24, %v1734_v55  ;;  %v1878_v43 = vmax.f32 %v6843_v57, %v6837_v8  ;;  %v5616_v57 = vld [vmem:[%s9388_s0 + $0x40] sm:$0xff] }
  0xe2   :  { %v394_v8 = vsel %vm109_vm0, %v5615_v5, -inf  ;;  %v391_v20 = vsel %vm109_vm0, %v5616_v57, -inf  ;;  %v1824_v55 = vmax.f32 %v1822_v12, %v1823_v32  ;;  %v6961_v24 = vsel %vm2392_vm3, %v898_v17, %v6456_v14  ;;  %v5169_v17 = vld [vmem:[%s9388_s0 + $0x338] sm:$0xff]  ;;  %v5144_v57 = vld [vmem:[%s9388_s0 + $0x270] sm:$0xff] }
  0xe3   :  { %v2961_v38 = vsel %vm2888_vm8, %v2960_v33, %v2956_v27  ;;  %228 = vadd.xlane.f32.xlu1 %v6913_v58  ;;  %225 = vadd.xlane.f32.xlu0 %v6916_v25  ;;  %v1600_v33 = vadd.f32 %v1599_v45, %v1598_v40  ;;  %v1682_v27 = vadd.f32 %v1681_v2, %v1680_v42  ;;  %v1737_v37 = vrot.slane %v1736_v10, 2 }
  0xe4   :  { %v426_v44 = vpop.xlane.xlu1 %425  ;;  %v423_v26 = vpop.xlane.xlu0 %422  ;;  %v1879_v11 = vrot.slane %v1878_v43, 4  ;;  %v843_v6 = vmax.f32 %v391_v20, %v394_v8  ;;  %v6967_v12 = vmul.f32 0.0625, %v1656_v41  ;;  %v1825_v41 = vrot.slane %v1824_v55, 2 }
  0xe5   :  { %v2969_v9 = vrot.slane %v426_v44, %v6846_v50  ;;  %v2965_v36 = vrot.slane %v423_v26, %v6850_v35  ;;  %v6963_v45 = vmul.f32 0.0625, %v1600_v33  ;;  %v1683_v31 = vrot.slane %v1682_v27, 1  ;;  %v5168_v33 = vld [vmem:[%s9388_s0 + $0x330] sm:$0xff] }
  0xe6   :  { %9536 = vst [vmem:[#allocation27_spill] sm:$0xff] %v6967_v12 }
  0xe7   :  { %v2970_v18 = vsel %vm2888_vm8, %v2969_v9, %v2965_v36  ;;  %276 = vadd.xlane.f32.xlu1 %v6932_v22  ;;  %273 = vadd.xlane.f32.xlu0 %v6935_v59  ;;  %9535 = vst [vmem:[#allocation26_spill] sm:$0xff] %v6963_v45  ;;  %v5617_v9 = vld [vmem:[%s9388_s0 + $0xc8] sm:$0xff]  ;;  %v5618_v36 = vld [vmem:[%s9388_s0 + $0xc0] sm:$0xff] }
  0xe8   :  { %v6945_v53 = vsel %vm2388_vm1, %v2970_v18, %v2961_v38  ;;  %v1133_v44 = vpop.xlane.xlu1 %1132  ;;  %v1130_v26 = vpop.xlane.xlu0 %1129  ;;  %v6957_v18 = vsel %vm2392_vm3, %v842_v51, %v6441_v60  ;;  %v442_v14 = vsel %vm109_vm0, %v5617_v9, -inf  ;;  %v439_v51 = vsel %vm109_vm0, %v5618_v36, -inf }
  0xe9   :  { %v1305_v40 = vmul.f32 0.0625, %v1133_v44  ;;  %v1304_v42 = vmul.f32 0.0625, %v1130_v26  ;;  %v844_v9 = vrot.slane %v843_v6, 4 }
  0xeb   :  { %v2537_v2 = vrot.slane %v1305_v40, %v6659_v1  ;;  %v2533_v38 = vrot.slane %v1304_v42, %v6666_v47  ;;  %395 = vmax.xlane.f32.xlu1 %v394_v8  ;;  %392 = vmax.xlane.f32.xlu0 %v391_v20  ;;  %v5145_v8 = vld [vmem:[%s9388_s0 + $0x278] sm:$0xff]  ;;  %v1738_v20 = vadd.f32 %v1737_v37, %v1736_v10 }
  0xec   :  { %v1181_v60 = vpop.xlane.xlu1 %1180  ;;  %v1178_v32 = vpop.xlane.xlu0 %1177  ;;  %v1880_v40 = vmax.f32 %v1878_v43, %v1879_v11  ;;  %v1149_v37 = vsel %vm109_vm0, %v5145_v8, 0.0  ;;  %v845_v8 = vmax.f32 %v843_v6, %v844_v9 }
  0xed   :  { %v2538_v44 = vsel %vm2501_vm7, %v2537_v2, %v2533_v38  ;;  %v1321_v26 = vmul.f32 0.0625, %v1181_v60  ;;  %v1320_v5 = vmul.f32 0.0625, %v1178_v32  ;;  %v6997_v38 = vsel %vm109_vm0, %v5169_v17, 0.0  ;;  %v5161_v17 = vld [vmem:[%s9388_s0 + $0x2f8] sm:$0xff] }
  0xee   :  { %v6992_v42 = vsel %vm2394_vm4, %v2538_v44, %v6804_v16  ;;  %v7000_v60 = vsel %vm109_vm0, %v5168_v33, 0.0  ;;  %v1684_v32 = vadd.f32 %v1683_v31, %v1682_v27  ;;  %v1146_v16 = vsel %vm109_vm0, %v5144_v57, 0.0  ;;  %v5160_v27 = vld [vmem:[%s9388_s0 + $0x2f0] sm:$0xff]  ;;  %v5185_v31 = vld [vmem:[%s9388_s0 + $0x3b8] sm:$0xff] }
  0xef   :  { %v2609_v36 = vrot.slane %v1321_v26, %v6659_v1  ;;  %v2605_v2 = vrot.slane %v1320_v5, %v6666_v47  ;;  %443 = vmax.xlane.f32.xlu1 %v442_v14  ;;  %440 = vmax.xlane.f32.xlu0 %v439_v51  ;;  %v1685_v11 = vadd.f32 %v6997_v38, %v7000_v60  ;;  %v1881_v33 = vrot.slane %v1880_v40, 2  ;;  %v5184_v57 = vld [vmem:[%s9388_s0 + $0x3b0] sm:$0xff] }
  0xf0   :  { %v145_v10 = vpop.xlane.xlu1 %144  ;;  %v142_v43 = vpop.xlane.xlu0 %141  ;;  %v1826_v44 = vmax.f32 %v1824_v55, %v1825_v41  ;;  %v899_v41 = vmax.f32 %v439_v51, %v442_v14  ;;  %v1197_v6 = vsel %vm109_vm0, %v5161_v17, 0.0  ;;  %v1269_v14 = vsel %vm109_vm0, %v5185_v31, 0.0 }
  0xf1   :  { %v2610_v26 = vsel %vm2501_vm7, %v2609_v36, %v2605_v2  ;;  %v314_v5 = vmul.f32 0.0625, %v145_v10  ;;  %v313_v3 = vmul.f32 0.0625, %v142_v43  ;;  %v1739_v36 = vrot.slane %v1738_v20, 1 }
  0xf2   :  { %v7018_v55 = vsel %vm2394_vm4, %v2610_v26, %v6827_v39  ;;  %v1601_v43 = vadd.f32 %v1149_v37, %v1146_v16  ;;  %v1194_v39 = vsel %vm109_vm0, %v5160_v27, 0.0  ;;  %v1686_v9 = vrot.slane %v1685_v11, 4 }
  0xf3   :  { %v2152_v2 = vrot.slane %v314_v5, %v6638_v62  ;;  %v2148_v10 = vrot.slane %v313_v3, %v6633_v0  ;;  %1150 = vadd.xlane.f32.xlu1 %v1149_v37  ;;  %1147 = vadd.xlane.f32.xlu0 %v1146_v16  ;;  %v1266_v5 = vsel %vm109_vm0, %v5184_v57, 0.0  ;;  %v1827_v21 = vrot.slane %v1826_v44, 1 }
  0xf4   :  { %v193_v7 = vpop.xlane.xlu1 %192  ;;  %v190_v56 = vpop.xlane.xlu0 %189  ;;  %v900_v3 = vrot.slane %v899_v41, 4  ;;  %v1741_v16 = vadd.f32 %v1269_v14, %v1266_v5  ;;  %v1602_v22 = vrot.slane %v1601_v43, 4  ;;  %v1657_v31 = vadd.f32 %v1197_v6, %v1194_v39 }
  0xf5   :  { %v2153_v51 = vsel %vm2107_vm6, %v2152_v2, %v2148_v10  ;;  %v330_v26 = vmul.f32 0.0625, %v193_v7  ;;  %v329_v46 = vmul.f32 0.0625, %v190_v56  ;;  %v1794_v2 = vmul.f32 0.0625, %v1684_v32 }
  0xf6   :  { %v7032_v37 = vsel %vm2396_vm5, %v2153_v51, %v6860_v30  ;;  %v1740_v7 = vadd.f32 %v1739_v36, %v1738_v20  ;;  %v846_v56 = vrot.slane %v845_v8, 2  ;;  %v1687_v59 = vadd.f32 %v1686_v9, %v1685_v11 }
  0xf7   :  { %v2224_v17 = vrot.slane %v330_v26, %v6638_v62  ;;  %v2220_v27 = vrot.slane %v329_v46, %v6633_v0  ;;  %1198 = vadd.xlane.f32.xlu1 %v1197_v6  ;;  %1195 = vadd.xlane.f32.xlu0 %v1194_v39  ;;  %v1882_v58 = vmax.f32 %v1880_v40, %v1881_v33  ;;  %v1742_v46 = vrot.slane %v1741_v16, 4 }
  0xf8   :  { %v211_v10 = vpop.xlane.xlu1 %210  ;;  %v208_v57 = vpop.xlane.xlu0 %207  ;;  %v1828_v29 = vmax.f32 %v1826_v44, %v1827_v21  ;;  %v901_v61 = vmax.f32 %v899_v41, %v900_v3  ;;  %v1603_v6 = vadd.f32 %v1602_v22, %v1601_v43  ;;  %v1658_v39 = vrot.slane %v1657_v31, 4 }
  0xf9   :  { %v2225_v25 = vsel %vm2107_vm6, %v2224_v17, %v2220_v27  ;;  %v336_v30 = vmul.f32 0.0625, %v211_v10  ;;  %v335_v51 = vmul.f32 0.0625, %v208_v57  ;;  %v1802_v40 = vmul.f32 0.0625, %v1740_v7 }
  0xfa   :  { %v7039_v26 = vsel %vm2396_vm5, %v2225_v25, %v6885_v28  ;;  %v847_v11 = vmax.f32 %v845_v8, %v846_v56  ;;  %v1688_v33 = vrot.slane %v1687_v59, 2  ;;  %v5619_v28 = vld [vmem:[%s9388_s0 + $0x238] sm:$0xff]  ;;  %v7056_v8 = vsel %vm2390_vm2, %v1794_v2, %v6513_v19 }
  0xfb   :  { %v2251_v20 = vrot.slane %v336_v30, %v6638_v62  ;;  %v2247_v32 = vrot.slane %v335_v51, %v6633_v0  ;;  %1222 = vadd.xlane.f32.xlu1 %v6997_v38  ;;  %1219 = vadd.xlane.f32.xlu0 %v7000_v60  ;;  %v1381_v25 = vsel %vm109_vm0, %v5619_v28, -inf  ;;  %v5620_v38 = vld [vmem:[%s9388_s0 + $0x230] sm:$0xff]  ;;  %v902_v43 = vrot.slane %v901_v61, 2 }
  0xfc   :  { %v217_v21 = vpop.xlane.xlu1 %216  ;;  %v214_v44 = vpop.xlane.xlu0 %213  ;;  %v1378_v60 = vsel %vm109_vm0, %v5620_v38, -inf  ;;  %v1743_v9 = vadd.f32 %v1742_v46, %v1741_v16  ;;  %v1604_v17 = vrot.slane %v1603_v6, 2  ;;  %v1659_v27 = vadd.f32 %v1658_v39, %v1657_v31  ;;  %v86_v38 = vld [vmem:[%s9388_s0 + $0x148] sm:$0xff] }
  0xfd   :  { %v2252_v22 = vsel %vm2107_vm6, %v2251_v20, %v2247_v32  ;;  %v338_v41 = vmul.f32 0.0625, %v217_v21  ;;  %v337_v36 = vmul.f32 0.0625, %v214_v44  ;;  %v1829_v3 = vmax.f32 %v1378_v60, %v1381_v25 }
  0xfe   :  { %v7062_v10 = vsel %vm2390_vm2, %v1802_v40, %v6577_v48  ;;  %v7066_v57 = vsel %vm2390_vm2, %v1828_v29, %v6591_v23  ;;  %v1883_v19 = vrot.slane %v1882_v58, 1  ;;  %v1689_v2 = vadd.f32 %v1688_v33, %v1687_v59 }
  0xff   :  { %v2260_v7 = vrot.slane %v338_v41, %v6638_v62  ;;  %v2256_v56 = vrot.slane %v337_v36, %v6633_v0  ;;  %1270 = vadd.xlane.f32.xlu1 %v1269_v14  ;;  %1267 = vadd.xlane.f32.xlu0 %v1266_v5  ;;  %v848_v51 = vrot.slane %v847_v11, 1  ;;  %v903_v20 = vmax.f32 %v901_v61, %v902_v43  ;;  %v5621_v61 = vld [vmem:[%s9388_s0 + $0x2b8] sm:$0xff] }
 0x100   :  { %v259_v16 = vpop.xlane.xlu1 %258  ;;  %v256_v30 = vpop.xlane.xlu0 %255  ;;  %v1744_v5 = vrot.slane %v1743_v9, 2  ;;  %v1830_v48 = vrot.slane %v1829_v3, 4  ;;  %v1605_v32 = vadd.f32 %v1604_v17, %v1603_v6  ;;  %v1660_v40 = vrot.slane %v1659_v27, 2  ;;  %v5622_v6 = vld [vmem:[%s9388_s0 + $0x2b0] sm:$0xff] }
 0x101   :  { %v2261_v31 = vsel %vm2107_vm6, %v2260_v7, %v2256_v56  ;;  %v352_v46 = vmul.f32 0.0625, %v259_v16  ;;  %v351_v39 = vmul.f32 0.0625, %v256_v30  ;;  %v1884_v59 = vmax.f32 %v1882_v58, %v1883_v19 }
 0x102   :  { %v7070_v14 = vsel %vm2388_vm1, %v2261_v31, %v2252_v22  ;;  %v1690_v33 = vrot.slane %v1689_v2, 1  ;;  %v1429_v28 = vsel %vm109_vm0, %v5621_v61, -inf  ;;  %v1426_v22 = vsel %vm109_vm0, %v5622_v6, -inf }
 0x103   :  { %v2323_v29 = vrot.slane %v352_v46, %v6638_v62  ;;  %v2319_v23 = vrot.slane %v351_v39, %v6633_v0  ;;  %1382 = vmax.xlane.f32.xlu1 %v1381_v25  ;;  %1379 = vmax.xlane.f32.xlu0 %v1378_v60  ;;  %v849_v41 = vmax.f32 %v847_v11, %v848_v51  ;;  %v85_v60 = vld [vmem:[%s9388_s0 + $0x140] sm:$0xff]  ;;  %v904_v43 = vrot.slane %v903_v20, 1 }
 0x104   :  { %v265_v21 = vpop.xlane.xlu1 %264  ;;  %v262_v44 = vpop.xlane.xlu0 %261  ;;  %v1745_v17 = vadd.f32 %v1744_v5, %v1743_v9  ;;  %v1831_v7 = vmax.f32 %v1829_v3, %v1830_v48  ;;  %v1885_v56 = vmax.f32 %v1426_v22, %v1429_v28  ;;  %v1606_v19 = vrot.slane %v1605_v32, 1 }
 0x105   :  { %v2324_v25 = vsel %vm2107_vm6, %v2323_v29, %v2319_v23  ;;  %v354_v36 = vmul.f32 0.0625, %v265_v21  ;;  %v353_v58 = vmul.f32 0.0625, %v262_v44  ;;  %v7089_v16 = vadd.f32 %v1660_v40, %v1659_v27  ;;  %v101_v40 = vld [vmem:[%s9388_s0 + $0x1c0] sm:$0xff] }
 0x106   :  { %v7095_v51 = vsel %vm2390_vm2, %v1884_v59, %v6606_v34  ;;  %v1691_v31 = vadd.f32 %v1690_v33, %v1689_v2  ;;  %v7098_v9 = vsel %vm109_vm0, %v86_v38, 0.0  ;;  %v7101_v3 = vsel %vm109_vm0, %v85_v60, 0.0  ;;  %v102_v2 = vld [vmem:[%s9388_s0 + $0x1c8] sm:$0xff]  ;;  %v5623_v38 = vld [vmem:[%s9388_s0 + $0x58] sm:$0xff] }
 0x107   :  { %v2332_v11 = vrot.slane %v354_v36, %v6638_v62  ;;  %v2328_v30 = vrot.slane %v353_v58, %v6633_v0  ;;  %1430 = vmax.xlane.f32.xlu1 %v1429_v28  ;;  %1427 = vmax.xlane.f32.xlu0 %v1426_v22  ;;  %9537 = vst [vmem:[#allocation28_spill] sm:$0xff] %v7098_v9  ;;  %9538 = vst [vmem:[#allocation29_spill] sm:$0xff] %v7101_v3  ;;  %v1746_v29 = vrot.slane %v1745_v17, 1  ;;  %v5170_v36 = vld [vmem:[%s9388_s0 + $0x340] sm:$0xff] }
 0x108   :  { %v384_v46 = vpop.xlane.xlu1 %383  ;;  %v381_v39 = vpop.xlane.xlu0 %380  ;;  %v7105_v27 = vsel %vm2394_vm4, %v849_v41, %v6957_v18  ;;  %v1832_v23 = vrot.slane %v1831_v7, 2  ;;  %v1886_v18 = vrot.slane %v1885_v56, 4  ;;  %v905_v33 = vmax.f32 %v903_v20, %v904_v43  ;;  %v5624_v43 = vld [vmem:[%s9388_s0 + $0x50] sm:$0xff] }
 0x109   :  { %9539 = vst [vmem:[#allocation30_spill] sm:$0xff] %v7105_v27  ;;  %v2333_v5 = vsel %vm2107_vm6, %v2332_v11, %v2328_v30  ;;  %v2906_v48 = vrot.slane %v384_v46, %v6846_v50  ;;  %v2902_v34 = vrot.slane %v381_v39, %v6850_v35  ;;  %v1607_v21 = vadd.f32 %v1606_v19, %v1605_v32  ;;  %v5171_v32 = vld [vmem:[%s9388_s0 + $0x348] sm:$0xff]  ;;  %v5186_v30 = vld [vmem:[%s9388_s0 + $0x3c0] sm:$0xff] }
 0x10a   :  { %v7117_v59 = vsel %vm2388_vm1, %v2333_v5, %v2324_v25  ;;  %v1662_v44 = vrot.slane %v7089_v16, 1  ;;  %v1795_v28 = vmul.f32 0.0625, %v1691_v31  ;;  %v7128_v25 = vsel %vm109_vm0, %v102_v2, 0.0  ;;  %v5187_v11 = vld [vmem:[%s9388_s0 + $0x3c8] sm:$0xff] }
 0x10b   :  { %v2907_v61 = vsel %vm2888_vm8, %v2906_v48, %v2902_v34  ;;  %234 = vadd.xlane.f32.xlu1 %v7098_v9  ;;  %231 = vadd.xlane.f32.xlu0 %v7101_v3  ;;  %9540 = vst [vmem:[#allocation31_spill] sm:$0xff] %v7128_v25  ;;  %v7131_v20 = vsel %vm109_vm0, %v101_v40, 0.0  ;;  %v400_v60 = vsel %vm109_vm0, %v5623_v38, -inf  ;;  %v397_v19 = vsel %vm109_vm0, %v5624_v43, -inf  ;;  %v5625_v34 = vld [vmem:[%s9388_s0 + $0xd8] sm:$0xff] }
 0x10c   :  { %v7125_v6 = vsel %vm2390_vm2, %v2907_v61, %v6910_v4  ;;  %v432_v22 = vpop.xlane.xlu1 %431  ;;  %v429_v41 = vpop.xlane.xlu0 %428  ;;  %9541 = vst [vmem:[#allocation32_spill] sm:$0xff] %v7131_v20  ;;  %v1747_v31 = vadd.f32 %v1746_v29, %v1745_v17  ;;  %v1833_v46 = vmax.f32 %v1831_v7, %v1832_v23  ;;  %v1887_v39 = vmax.f32 %v1885_v56, %v1886_v18 }
 0x10d   :  { %v2978_v58 = vrot.slane %v432_v22, %v6846_v50  ;;  %v2974_v4 = vrot.slane %v429_v41, %v6850_v35  ;;  %v850_v5 = vmax.f32 %v397_v19, %v400_v60  ;;  %v448_v2 = vsel %vm109_vm0, %v5625_v34, -inf }
 0x10e   :  { %v7163_v40 = vsel %vm109_vm0, %v5171_v32, 0.0  ;;  %v7166_v17 = vsel %vm109_vm0, %v5170_v36, 0.0  ;;  %v7175_v18 = vsel %vm109_vm0, %v5187_v11, 0.0  ;;  %v7178_v61 = vsel %vm109_vm0, %v5186_v30, 0.0  ;;  %v5626_v32 = vld [vmem:[%s9388_s0 + $0xd0] sm:$0xff] }
 0x10f   :  { %v2979_v48 = vsel %vm2888_vm8, %v2978_v58, %v2974_v4  ;;  %282 = vadd.xlane.f32.xlu1 %v7128_v25  ;;  %279 = vadd.xlane.f32.xlu0 %v7131_v20  ;;  %v1692_v23 = vadd.f32 %v7163_v40, %v7166_v17  ;;  %v1748_v36 = vadd.f32 %v7175_v18, %v7178_v61  ;;  %v1834_v4 = vrot.slane %v1833_v46, 1 }
 0x110   :  { %v7170_v7 = vsel %vm2390_vm2, %v2979_v48, %v6945_v53  ;;  %v1139_v56 = vpop.xlane.xlu1 %1138  ;;  %v1136_v29 = vpop.xlane.xlu0 %1135  ;;  %v445_v53 = vsel %vm109_vm0, %v5626_v32, -inf  ;;  %v7188_v58 = vsel %vm2394_vm4, %v905_v33, %v6961_v24  ;;  %v1888_v38 = vrot.slane %v1887_v39, 2 }
 0x111   :  { %v1307_v22 = vmul.f32 0.0625, %v1139_v56  ;;  %v1306_v41 = vmul.f32 0.0625, %v1136_v29  ;;  %9542 = vst [vmem:[#allocation33_spill] sm:$0xff] %v7188_v58  ;;  %v906_v43 = vmax.f32 %v445_v53, %v448_v2  ;;  %v7190_v11 = vmul.f32 0.0625, %v1607_v21 }
 0x112   :  { %v851_v34 = vrot.slane %v850_v5, 4  ;;  %v7195_v56 = vadd.f32 %v1662_v44, %v7089_v16  ;;  %v7199_v29 = vsel %vm2392_vm3, %v1795_v28, %v7056_v8  ;;  %v7201_v24 = vmul.f32 0.0625, %v1747_v31 }
 0x113   :  { %9543 = vst [vmem:[#allocation34_spill] sm:$0xff] %v7190_v11  ;;  %v2546_v30 = vrot.slane %v1307_v22, %v6659_v1  ;;  %v2542_v48 = vrot.slane %v1306_v41, %v6666_v47  ;;  %401 = vmax.xlane.f32.xlu1 %v400_v60  ;;  %398 = vmax.xlane.f32.xlu0 %v397_v19  ;;  %v1693_v21 = vrot.slane %v1692_v23, 4  ;;  %v1749_v41 = vrot.slane %v1748_v36, 4 }
 0x114   :  { %v1187_v33 = vpop.xlane.xlu1 %1186  ;;  %v1184_v32 = vpop.xlane.xlu0 %1183  ;;  %v7204_v60 = vmax.f32 %v1833_v46, %v1834_v4  ;;  %v1889_v19 = vmax.f32 %v1887_v39, %v1888_v38  ;;  %v907_v44 = vrot.slane %v906_v43, 4  ;;  %v852_v8 = vmax.f32 %v850_v5, %v851_v34 }
 0x115   :  { %v2547_v25 = vsel %vm2501_vm7, %v2546_v30, %v2542_v48  ;;  %v1323_v22 = vmul.f32 0.0625, %v1187_v33  ;;  %v1322_v20 = vmul.f32 0.0625, %v1184_v32  ;;  %v5627_v30 = vld [vmem:[%s9388_s0 + $0x108] sm:$0xff]  ;;  %v1694_v5 = vadd.f32 %v1693_v21, %v1692_v23 }
 0x116   :  { %v7208_v16 = vsel %vm2396_vm5, %v2547_v25, %v6992_v42  ;;  %v7216_v46 = vsel %vm109_vm0, %v5627_v30, -inf  ;;  %v5628_v42 = vld [vmem:[%s9388_s0 + $0x100] sm:$0xff]  ;;  %v1750_v32 = vadd.f32 %v1749_v41, %v1748_v36  ;;  %v1890_v23 = vrot.slane %v1889_v19, 1  ;;  %v5631_v36 = vld [vmem:[%s9388_s0 + $0x118] sm:$0xff] }
 0x117   :  { %v2618_v28 = vrot.slane %v1323_v22, %v6659_v1  ;;  %v2614_v31 = vrot.slane %v1322_v20, %v6666_v47  ;;  %449 = vmax.xlane.f32.xlu1 %v448_v2  ;;  %446 = vmax.xlane.f32.xlu0 %v445_v53  ;;  %9544 = vst [vmem:[#allocation35_spill] sm:$0xff] %v7216_v46  ;;  %v7222_v25 = vsel %vm109_vm0, %v5628_v42, -inf  ;;  %v5629_v20 = vld [vmem:[%s9388_s0 + $0x248] sm:$0xff]  ;;  %v5630_v53 = vld [vmem:[%s9388_s0 + $0x240] sm:$0xff]  ;;  %v853_v42 = vrot.slane %v852_v8, 2 }
 0x118   :  { %v1205_v39 = vpop.xlane.xlu1 %1204  ;;  %v1202_v4 = vpop.xlane.xlu0 %1201  ;;  %9545 = vst [vmem:[#allocation36_spill] sm:$0xff] %v7222_v25  ;;  %v7228_v2 = vsel %vm109_vm0, %v5629_v20, -inf  ;;  %v7234_v38 = vsel %vm109_vm0, %v5630_v53, -inf  ;;  %v908_v22 = vmax.f32 %v906_v43, %v907_v44  ;;  %v5632_v44 = vld [vmem:[%s9388_s0 + $0x110] sm:$0xff]  ;;  %v1751_v9 = vrot.slane %v1750_v32, 2 }
 0x119   :  { %v2619_v48 = vsel %vm2501_vm7, %v2618_v28, %v2614_v31  ;;  %v1329_v34 = vmul.f32 0.0625, %v1205_v39  ;;  %v1328_v33 = vmul.f32 0.0625, %v1202_v4  ;;  %v1836_v30 = vmax.f32 %v7234_v38, %v7228_v2  ;;  %v5633_v39 = vld [vmem:[%s9388_s0 + $0x2c8] sm:$0xff] }
 0x11a   :  { %v7239_v21 = vsel %vm2396_vm5, %v2619_v48, %v7018_v55  ;;  %v7251_v55 = vsel %vm109_vm0, %v5631_v36, -inf  ;;  %v7257_v28 = vsel %vm109_vm0, %v5632_v44, -inf  ;;  %v1695_v31 = vrot.slane %v1694_v5, 2  ;;  %v5634_v48 = vld [vmem:[%s9388_s0 + $0x2c0] sm:$0xff] }
 0x11b   :  { %v2645_v20 = vrot.slane %v1329_v34, %v6659_v1  ;;  %v2641_v53 = vrot.slane %v1328_v33, %v6666_v47  ;;  %467 = vmax.xlane.f32.xlu1 %v7216_v46  ;;  %464 = vmax.xlane.f32.xlu0 %v7222_v25  ;;  %9546 = vst [vmem:[#allocation37_spill] sm:$0xff] %v7251_v55  ;;  %9547 = vst [vmem:[#allocation38_spill] sm:$0xff] %v7257_v28  ;;  %v7263_v4 = vsel %vm109_vm0, %v5633_v39, -inf }
 0x11c   :  { %v1211_v43 = vpop.xlane.xlu1 %1210  ;;  %v1208_v41 = vpop.xlane.xlu0 %1207  ;;  %v7269_v34 = vsel %vm109_vm0, %v5634_v48, -inf  ;;  %v1891_v3 = vmax.f32 %v1889_v19, %v1890_v23  ;;  %v909_v52 = vrot.slane %v908_v22, 2  ;;  %v1837_v63 = vrot.slane %v1836_v30, 4 }
 0x11d   :  { %v2646_v33 = vsel %vm2501_vm7, %v2645_v20, %v2641_v53  ;;  %v1331_v36 = vmul.f32 0.0625, %v1211_v43  ;;  %v1330_v44 = vmul.f32 0.0625, %v1208_v41  ;;  %v1892_v25 = vmax.f32 %v7269_v34, %v7263_v4  ;;  %v5635_v20 = vld [vmem:[%s9388_s0 + $0x188] sm:$0xff] }
 0x11e   :  { %v854_v39 = vmax.f32 %v852_v8, %v853_v42  ;;  %v7282_v19 = vsel %vm109_vm0, %v5635_v20, -inf  ;;  %v5636_v8 = vld [vmem:[%s9388_s0 + $0x180] sm:$0xff]  ;;  %v3270_v43 = vadd.s32 4294967240, %v6624_v54  ;;  %v3265_v41 = vadd.s32 4294967248, %v6624_v54  ;;  %v5637_v54 = vld [vmem:[%s9388_s0 + $0x198] sm:$0xff] }
 0x11f   :  { %v2654_v46 = vrot.slane %v1331_v36, %v6659_v1  ;;  %v2650_v11 = vrot.slane %v1330_v44, %v6666_v47  ;;  %473 = vmax.xlane.f32.xlu1 %v7251_v55  ;;  %470 = vmax.xlane.f32.xlu0 %v7257_v28  ;;  %9548 = vst [vmem:[#allocation39_spill] sm:$0xff] %v7282_v19  ;;  %v7288_v42 = vsel %vm109_vm0, %v5636_v8, -inf  ;;  %v1893_v45 = vrot.slane %v1892_v25, 4 }
 0x120   :  { %v1253_v23 = vpop.xlane.xlu1 %1252  ;;  %v1250_v53 = vpop.xlane.xlu0 %1249  ;;  %9549 = vst [vmem:[#allocation40_spill] sm:$0xff] %v7288_v42  ;;  %v1696_v48 = vadd.f32 %v1695_v31, %v1694_v5  ;;  %v1752_v20 = vadd.f32 %v1751_v9, %v1750_v32  ;;  %v910_v55 = vmax.f32 %v908_v22, %v909_v52  ;;  %v1838_v15 = vmax.f32 %v1836_v30, %v1837_v63  ;;  %v5638_v63 = vld [vmem:[%s9388_s0 + $0x190] sm:$0xff] }
 0x121   :  { %v2655_v36 = vsel %vm2501_vm7, %v2654_v46, %v2650_v11  ;;  %v1345_v44 = vmul.f32 0.0625, %v1253_v23  ;;  %v1344_v28 = vmul.f32 0.0625, %v1250_v53  ;;  %v855_v13 = vrot.slane %v854_v39, 1 }
 0x122   :  { %v7294_v12 = vsel %vm2388_vm1, %v2655_v36, %v2646_v33  ;;  %v7304_v52 = vsel %vm109_vm0, %v5637_v54, -inf  ;;  %v7310_v46 = vsel %vm109_vm0, %v5638_v63, -inf  ;;  %v7313_v5 = vsub.s32 %v3270_v43, %v6628_v49  ;;  %v7361_v54 = vld [vmem:[%s9388_s0 + $0x3d8] sm:$0xff] }
 0x123   :  { %v2717_v8 = vrot.slane %v1345_v44, %v6659_v1  ;;  %v2713_v58 = vrot.slane %v1344_v28, %v6666_v47  ;;  %515 = vmax.xlane.f32.xlu1 %v7282_v19  ;;  %512 = vmax.xlane.f32.xlu0 %v7288_v42  ;;  %9550 = vst [vmem:[#allocation41_spill] sm:$0xff] %v7304_v52  ;;  %9551 = vst [vmem:[#allocation42_spill] sm:$0xff] %v7310_v46  ;;  %v1697_v22 = vrot.slane %v1696_v48, 1  ;;  %v5644_v19 = vld [vmem:[%s9388_s0 + $0x250] sm:$0xff] }
 0x124   :  { %v1259_v9 = vpop.xlane.xlu1 %1258  ;;  %v1256_v11 = vpop.xlane.xlu0 %1255  ;;  %9552 = vst [vmem:[#allocation43_spill] sm:$0xff] %v7313_v5  ;;  %v7316_v32 = vsub.s32 %v3265_v41, %v6628_v49  ;;  %v1753_v33 = vrot.slane %v1752_v20, 1  ;;  %v7322_v23 = vsel %vm2392_vm3, %v7201_v24, %v7062_v10  ;;  %v911_v53 = vrot.slane %v910_v55, 1  ;;  %9558 = vst [vmem:[#allocation49_spill] sm:$0xff] %v7361_v54 }
 0x125   :  { %v2718_v30 = vsel %vm2501_vm7, %v2717_v8, %v2713_v58  ;;  %v1347_v28 = vmul.f32 0.0625, %v1259_v9  ;;  %v1346_v31 = vmul.f32 0.0625, %v1256_v11  ;;  %v1839_v36 = vrot.slane %v1838_v15, 2  ;;  %v7366_v9 = vld [vmem:[%s9388_s0 + $0x3d0] sm:$0xff] }
 0x126   :  { %9553 = vst [vmem:[#allocation44_spill] sm:$0xff] %v7316_v32  ;;  %v1894_v44 = vmax.f32 %v1892_v25, %v1893_v45  ;;  %v7325_v43 = vmul.f32 0.0625, %v7195_v56  ;;  %v7330_v41 = vsel %vm2392_vm3, %v7204_v60, %v7066_v57  ;;  %v7338_v10 = vsel %vm2392_vm3, %v1891_v3, %v7095_v51  ;;  %v88_v57 = vld [vmem:[%s9388_s0 + $0x158] sm:$0xff]  ;;  %v7353_v51 = vld [vmem:[%s9388_s0 + $0x350] sm:$0xff]  ;;  %9559 = vst [vmem:[#allocation50_spill] sm:$0xff] %v7366_v9 }
 0x127   :  { %v2726_v58 = vrot.slane %v1347_v28, %v6659_v1  ;;  %v2722_v8 = vrot.slane %v1346_v31, %v6666_v47  ;;  %521 = vmax.xlane.f32.xlu1 %v7304_v52  ;;  %518 = vmax.xlane.f32.xlu0 %v7310_v46  ;;  %v7340_v45 = vmax.f32 %v854_v39, %v855_v13  ;;  %v7348_v60 = vld [vmem:[%s9388_s0 + $0x358] sm:$0xff] }
 0x128   :  { %9554 = vst [vmem:[#allocation45_spill] sm:$0xff] %v7325_v43  ;;  %v1365_v56 = vpop.xlane.xlu1 %1364  ;;  %v1362_v24 = vpop.xlane.xlu0 %1361  ;;  %v1698_v25 = vadd.f32 %v1697_v22, %v1696_v48  ;;  %9556 = vst [vmem:[#allocation47_spill] sm:$0xff] %v7348_v60  ;;  %v1754_v48 = vadd.f32 %v1753_v33, %v1752_v20  ;;  %v7368_v11 = vmax.f32 %v910_v55, %v911_v53  ;;  %v1895_v28 = vrot.slane %v1894_v44, 2 }
 0x129   :  { %9555 = vst [vmem:[#allocation46_spill] sm:$0xff] %v7340_v45  ;;  %9557 = vst [vmem:[#allocation48_spill] sm:$0xff] %v7353_v51  ;;  %v2727_v13 = vsel %vm2501_vm7, %v2726_v58, %v2722_v8  ;;  %v3274_v3 = vrot.slane %v1365_v56, %v7313_v5  ;;  %v3269_v39 = vrot.slane %v1362_v24, %v7316_v32  ;;  %v7377_v20 = vsel %vm109_vm0, %v88_v57, 0.0  ;;  %v5646_v45 = vld [vmem:[%s9388_s0 + $0x2d0] sm:$0xff] }
 0x12a   :  { %9560 = vst [vmem:[#allocation51_spill] sm:$0xff] %v7368_v11  ;;  %v7371_v63 = vsel %vm2388_vm1, %v2727_v13, %v2718_v30  ;;  %v1840_v22 = vmax.f32 %v1838_v15, %v1839_v36  ;;  %9562 = vst [vmem:[#allocation53_spill] sm:$0xff] %v7377_v20  ;;  %v7381_v33 = vsel %vm109_vm0, %v7348_v60, 0.0  ;;  %v7385_v55 = vsel %vm109_vm0, %v7353_v51, 0.0  ;;  %v5639_v13 = vld [vmem:[%s9388_s0 + $0x68] sm:$0xff] }
 0x12b   :  { %9561 = vst [vmem:[#allocation52_spill] sm:$0xff] %v7371_v63  ;;  %v3276_v31 = vsel %vm3275_vm9, %v3274_v3, %v3269_v39  ;;  %1228 = vadd.xlane.f32.xlu1 %v7163_v40  ;;  %1225 = vadd.xlane.f32.xlu0 %v7166_v17  ;;  %v1796_v30 = vmul.f32 0.0625, %v1698_v25  ;;  %v1699_v36 = vadd.f32 %v7381_v33, %v7385_v55  ;;  %v7391_v40 = vsel %vm109_vm0, %v7361_v54, 0.0  ;;  %v5640_v39 = vld [vmem:[%s9388_s0 + $0x60] sm:$0xff] }
 0x12c   :  { %v1371_v15 = vpop.xlane.xlu1 %1370  ;;  %v1368_v53 = vpop.xlane.xlu0 %1367  ;;  %v7395_v17 = vsel %vm109_vm0, %v7366_v9, 0.0  ;;  %v1804_v56 = vmul.f32 0.0625, %v1754_v48  ;;  %v1841_v25 = vrot.slane %v1840_v22, 1  ;;  %v1896_v57 = vmax.f32 %v1894_v44, %v1895_v28  ;;  %v5641_v28 = vld [vmem:[%s9388_s0 + $0xe8] sm:$0xff] }
 0x12d   :  { %v3284_v58 = vrot.slane %v1371_v15, %v7313_v5  ;;  %v3280_v8 = vrot.slane %v1368_v53, %v7316_v32  ;;  %v1755_v24 = vadd.f32 %v7391_v40, %v7395_v17  ;;  %v7405_v3 = vsel %vm109_vm0, %v5639_v13, -inf  ;;  %v5642_v13 = vld [vmem:[%s9388_s0 + $0xe0] sm:$0xff] }
 0x12e   :  { %v7411_v15 = vsel %vm109_vm0, %v5640_v39, -inf  ;;  %v7422_v53 = vsel %vm109_vm0, %v5641_v28, -inf  ;;  %v1700_v49 = vrot.slane %v1699_v36, 4  ;;  %v5643_v28 = vld [vmem:[%s9388_s0 + $0x258] sm:$0xff]  ;;  %v1897_v43 = vrot.slane %v1896_v57, 1 }
 0x12f   :  { %v3285_v48 = vsel %vm3275_vm9, %v3284_v58, %v3280_v8  ;;  %1276 = vadd.xlane.f32.xlu1 %v7175_v18  ;;  %1273 = vadd.xlane.f32.xlu0 %v7178_v61  ;;  %v857_v44 = vmax.f32 %v7411_v15, %v7405_v3  ;;  %v7428_v58 = vsel %vm109_vm0, %v5642_v13, -inf  ;;  %v7439_v46 = vsel %vm109_vm0, %v5643_v28, -inf }
 0x130   :  { %v7431_v18 = vsel %vm2388_vm1, %v3285_v48, %v3276_v31  ;;  %v1413_v61 = vpop.xlane.xlu1 %1412  ;;  %v1410_v8 = vpop.xlane.xlu0 %1409  ;;  %v913_v39 = vmax.f32 %v7428_v58, %v7422_v53  ;;  %v87_v31 = vld [vmem:[%s9388_s0 + $0x150] sm:$0xff]  ;;  %v104_v48 = vld [vmem:[%s9388_s0 + $0x1d8] sm:$0xff]  ;;  %v1756_v42 = vrot.slane %v1755_v24, 4  ;;  %v7453_v28 = vsel %vm109_vm0, %v5644_v19, -inf }
 0x131   :  { %9563 = vst [vmem:[#allocation54_spill] sm:$0xff] %v7431_v18  ;;  %v3347_v52 = vrot.slane %v1413_v61, %v7313_v5  ;;  %v3343_v13 = vrot.slane %v1410_v8, %v7316_v32  ;;  %v1843_v61 = vmax.f32 %v7453_v28, %v7439_v46  ;;  %v5645_v8 = vld [vmem:[%s9388_s0 + $0x2d8] sm:$0xff]  ;;  %v7467_v27 = vsel %vm109_vm0, %v5646_v45, -inf }
 0x132   :  { %v7461_v11 = vsel %vm109_vm0, %v5645_v8, -inf  ;;  %9565 = vst [vmem:[#allocation56_spill] sm:$0xff] %v7467_v27  ;;  %v1842_v9 = vmax.f32 %v1840_v22, %v1841_v25  ;;  %v103_v8 = vld [vmem:[%s9388_s0 + $0x1d0] sm:$0xff]  ;;  %v858_v54 = vrot.slane %v857_v44, 4  ;;  %v7478_v45 = vsel %vm109_vm0, %v87_v31, 0.0 }
 0x133   :  { %9564 = vst [vmem:[#allocation55_spill] sm:$0xff] %v7461_v11  ;;  %v3348_v19 = vsel %vm3275_vm9, %v3347_v52, %v3343_v13  ;;  %1388 = vmax.xlane.f32.xlu1 %v7228_v2  ;;  %1385 = vmax.xlane.f32.xlu0 %v7234_v38  ;;  %v1899_v51 = vmax.f32 %v7467_v27, %v7461_v11  ;;  %9566 = vst [vmem:[#allocation57_spill] sm:$0xff] %v7478_v45  ;;  %v7481_v52 = vsel %vm109_vm0, %v104_v48, 0.0 }
 0x134   :  { %v1419_v60 = vpop.xlane.xlu1 %1418  ;;  %v1416_v18 = vpop.xlane.xlu0 %1415  ;;  %9567 = vst [vmem:[#allocation58_spill] sm:$0xff] %v7481_v52  ;;  %v914_v2 = vrot.slane %v913_v39, 4  ;;  %v1701_v22 = vadd.f32 %v1700_v49, %v1699_v36  ;;  %v7485_v38 = vsel %vm2394_vm4, %v1796_v30, %v7199_v29  ;;  %v1757_v63 = vadd.f32 %v1756_v42, %v1755_v24  ;;  %v5648_v24 = vld [vmem:[%s9388_s0 + $0x300] sm:$0xff] }
 0x135   :  { %9568 = vst [vmem:[#allocation59_spill] sm:$0xff] %v7485_v38  ;;  %v3356_v25 = vrot.slane %v1419_v60, %v7313_v5  ;;  %v3352_v13 = vrot.slane %v1416_v18, %v7316_v32  ;;  %v7491_v27 = vsel %vm2394_vm4, %v1804_v56, %v7322_v23  ;;  %v1898_v31 = vmax.f32 %v1896_v57, %v1897_v43  ;;  %v5649_v18 = vld [vmem:[%s9388_s0 + $0x128] sm:$0xff] }
 0x136   :  { %9569 = vst [vmem:[#allocation60_spill] sm:$0xff] %v7491_v27  ;;  %v7494_v11 = vsel %vm109_vm0, %v103_v8, 0.0  ;;  %v1844_v48 = vrot.slane %v1843_v61, 4  ;;  %v7498_v49 = vsel %vm2394_vm4, %v1842_v9, %v7330_v41  ;;  %v7503_v42 = vmax.f32 %v857_v44, %v858_v54  ;;  %v5647_v41 = vld [vmem:[%s9388_s0 + $0x308] sm:$0xff] }
 0x137   :  { %9570 = vst [vmem:[#allocation61_spill] sm:$0xff] %v7494_v11  ;;  %9571 = vst [vmem:[#allocation62_spill] sm:$0xff] %v7498_v49  ;;  %v3357_v29 = vsel %vm3275_vm9, %v3356_v25, %v3352_v13  ;;  %1436 = vmax.xlane.f32.xlu1 %v7263_v4  ;;  %1433 = vmax.xlane.f32.xlu0 %v7269_v34  ;;  %v1900_v60 = vrot.slane %v1899_v51, 4  ;;  %v7508_v36 = vmax.f32 %v913_v39, %v914_v2 }
 0x138   :  { %v7506_v23 = vsel %vm2388_vm1, %v3357_v29, %v3348_v19  ;;  %v151_v43 = vpop.xlane.xlu1 %150  ;;  %v148_v30 = vpop.xlane.xlu0 %147  ;;  %v1702_v56 = vrot.slane %v1701_v22, 2  ;;  %v7514_v9 = vsel %vm109_vm0, %v5647_v41, -inf  ;;  %v1758_v54 = vrot.slane %v1757_v63, 2 }
 0x139   :  { %v316_v4 = vmul.f32 0.0625, %v151_v43  ;;  %v315_v34 = vmul.f32 0.0625, %v148_v30  ;;  %v7520_v57 = vsel %vm109_vm0, %v5648_v24, -inf  ;;  %v7524_v44 = vsel %vm2394_vm4, %v1898_v31, %v7338_v10  ;;  %v5650_v10 = vld [vmem:[%s9388_s0 + $0x120] sm:$0xff]  ;;  %v5651_v30 = vld [vmem:[%s9388_s0 + $0x1a8] sm:$0xff] }
 0x13a   :  { %9572 = vst [vmem:[#allocation63_spill] sm:$0xff] %v7524_v44  ;;  %v7530_v39 = vsel %vm109_vm0, %v5649_v18, -inf  ;;  %v1845_v19 = vmax.f32 %v1843_v61, %v1844_v48  ;;  %v1920_v8 = vmax.f32 %v7520_v57, %v7514_v9  ;;  %v7542_v13 = vsel %vm109_vm0, %v5650_v10, -inf }
 0x13b   :  { %9573 = vst [vmem:[#allocation64_spill] sm:$0xff] %v7530_v39  ;;  %v2161_v2 = vrot.slane %v316_v4, %v6638_v62  ;;  %v2157_v25 = vrot.slane %v315_v34, %v6633_v0  ;;  %240 = vadd.xlane.f32.xlu1 %v7377_v20  ;;  %237 = vadd.xlane.f32.xlu0 %v7478_v45  ;;  %9574 = vst [vmem:[#allocation65_spill] sm:$0xff] %v7542_v13  ;;  %v860_v29 = vrot.slane %v7503_v42, 2  ;;  %v5652_v45 = vld [vmem:[%s9388_s0 + $0x318] sm:$0xff] }
 0x13c   :  { %v1901_v31 = vmax.f32 %v1899_v51, %v1900_v60  ;;  %v199_v61 = vpop.xlane.xlu1 %198  ;;  %v196_v48 = vpop.xlane.xlu0 %195  ;;  %v916_v43 = vrot.slane %v7508_v36, 2  ;;  %v7550_v41 = vsel %vm109_vm0, %v5651_v30, -inf  ;;  %v1703_v4 = vadd.f32 %v1702_v56, %v1701_v22  ;;  %v5655_v30 = vld [vmem:[%s9388_s0 + $0x380] sm:$0xff] }
 0x13d   :  { %9575 = vst [vmem:[#allocation66_spill] sm:$0xff] %v7550_v41  ;;  %v2162_v34 = vsel %vm2107_vm6, %v2161_v2, %v2157_v25  ;;  %v332_v24 = vmul.f32 0.0625, %v199_v61  ;;  %v331_v18 = vmul.f32 0.0625, %v196_v48  ;;  %v1759_v10 = vadd.f32 %v1758_v54, %v1757_v63  ;;  %v5654_v61 = vld [vmem:[%s9388_s0 + $0x388] sm:$0xff] }
 0x13e   :  { %v7555_v51 = vsel %vm2398_vm10, %v2162_v34, %v7032_v37  ;;  %v1846_v60 = vrot.slane %v1845_v19, 2  ;;  %v1921_v20 = vrot.slane %v1920_v8, 4  ;;  %v7561_v27 = vsel %vm109_vm0, %v5652_v45, -inf  ;;  %v5653_v37 = vld [vmem:[%s9388_s0 + $0x310] sm:$0xff] }
 0x13f   :  { %9576 = vst [vmem:[#allocation67_spill] sm:$0xff] %v7555_v51  ;;  %v2233_v22 = vrot.slane %v332_v24, %v6638_v62  ;;  %v2229_v56 = vrot.slane %v331_v18, %v6633_v0  ;;  %288 = vadd.xlane.f32.xlu1 %v7481_v52  ;;  %285 = vadd.xlane.f32.xlu0 %v7494_v11  ;;  %v1902_v63 = vrot.slane %v1901_v31, 2  ;;  %v7571_v54 = vsel %vm109_vm0, %v5653_v37, -inf  ;;  %v5656_v24 = vld [vmem:[%s9388_s0 + $0x398] sm:$0xff] }
 0x140   :  { %v223_v2 = vpop.xlane.xlu1 %222  ;;  %v220_v25 = vpop.xlane.xlu0 %219  ;;  %v1927_v45 = vmax.f32 %v7571_v54, %v7561_v27  ;;  %v7579_v48 = vsel %vm109_vm0, %v5654_v61, -inf  ;;  %v7585_v34 = vsel %vm109_vm0, %v5655_v30, -inf  ;;  %v7591_v18 = vsel %vm109_vm0, %v5656_v24, -inf  ;;  %v5657_v61 = vld [vmem:[%s9388_s0 + $0x390] sm:$0xff] }
 0x141   :  { %9577 = vst [vmem:[#allocation68_spill] sm:$0xff] %v7585_v34  ;;  %9578 = vst [vmem:[#allocation69_spill] sm:$0xff] %v7591_v18  ;;  %v2234_v37 = vsel %vm2107_vm6, %v2233_v22, %v2229_v56  ;;  %v340_v52 = vmul.f32 0.0625, %v223_v2  ;;  %v339_v11 = vmul.f32 0.0625, %v220_v25  ;;  %v7598_v38 = vsel %vm109_vm0, %v5657_v61, -inf }
 0x142   :  { %9579 = vst [vmem:[#allocation70_spill] sm:$0xff] %v7598_v38  ;;  %v7602_v30 = vsel %vm2398_vm10, %v2234_v37, %v7039_v26  ;;  %v861_v44 = vmax.f32 %v7503_v42, %v860_v29  ;;  %v1976_v24 = vmax.f32 %v7585_v34, %v7579_v48  ;;  %v1983_v22 = vmax.f32 %v7598_v38, %v7591_v18 }
 0x143   :  { %9580 = vst [vmem:[#allocation71_spill] sm:$0xff] %v7602_v30  ;;  %v2269_v56 = vrot.slane %v340_v52, %v6638_v62  ;;  %v2265_v2 = vrot.slane %v339_v11, %v6633_v0  ;;  %407 = vmax.xlane.f32.xlu1 %v7405_v3  ;;  %404 = vmax.xlane.f32.xlu0 %v7411_v15  ;;  %v1704_v26 = vrot.slane %v1703_v4, 1  ;;  %v1760_v42 = vrot.slane %v1759_v10, 1 }
 0x144   :  { %v917_v25 = vmax.f32 %v7508_v36, %v916_v43  ;;  %v271_v37 = vpop.xlane.xlu1 %270  ;;  %v268_v61 = vpop.xlane.xlu0 %267  ;;  %v1847_v29 = vmax.f32 %v1845_v19, %v1846_v60  ;;  %v1903_v49 = vmax.f32 %v1901_v31, %v1902_v63  ;;  %v1922_v30 = vmax.f32 %v1920_v8, %v1921_v20 }
 0x145   :  { %v2270_v51 = vsel %vm2107_vm6, %v2269_v56, %v2265_v2  ;;  %v356_v38 = vmul.f32 0.0625, %v271_v37  ;;  %v355_v18 = vmul.f32 0.0625, %v268_v61  ;;  %v1928_v52 = vrot.slane %v1927_v45, 4 }
 0x146   :  { %v7617_v11 = vsel %vm2390_vm2, %v2270_v51, %v7070_v14  ;;  %v862_v3 = vrot.slane %v861_v44, 1  ;;  %v1977_v15 = vrot.slane %v1976_v24, 4  ;;  %v1984_v34 = vrot.slane %v1983_v22, 4 }
 0x147   :  { %v2341_v36 = vrot.slane %v356_v38, %v6638_v62  ;;  %v2337_v43 = vrot.slane %v355_v18, %v6633_v0  ;;  %455 = vmax.xlane.f32.xlu1 %v7422_v53  ;;  %v918_v19 = vrot.slane %v917_v25, 1  ;;  %452 = vmax.xlane.f32.xlu0 %v7428_v58  ;;  %v1705_v20 = vadd.f32 %v1704_v26, %v1703_v4  ;;  %v5658_v58 = vld [vmem:[%s9388_s0 + $0x1a0] sm:$0xff] }
 0x148   :  { %v390_v8 = vpop.xlane.xlu1 %389  ;;  %v387_v31 = vpop.xlane.xlu0 %386  ;;  %v1761_v60 = vadd.f32 %v1760_v42, %v1759_v10  ;;  %v1848_v63 = vrot.slane %v1847_v29, 1  ;;  %v1904_v56 = vrot.slane %v1903_v49, 1  ;;  %v1923_v14 = vrot.slane %v1922_v30, 2 }
 0x149   :  { %v2342_v51 = vsel %vm2107_vm6, %v2341_v36, %v2337_v43  ;;  %v2915_v2 = vrot.slane %v390_v8, %v6846_v50  ;;  %v2911_v38 = vrot.slane %v387_v31, %v6850_v35  ;;  %v1929_v37 = vmax.f32 %v1927_v45, %v1928_v52  ;;  %v5660_v8 = vld [vmem:[%s9388_s0 + $0x70] sm:$0xff] }
 0x14a   :  { %v7628_v53 = vsel %vm2390_vm2, %v2342_v51, %v7117_v59  ;;  %v7634_v4 = vsel %vm109_vm0, %v5658_v58, -inf  ;;  %v1978_v10 = vmax.f32 %v1976_v24, %v1977_v15  ;;  %v1985_v18 = vmax.f32 %v1983_v22, %v1984_v34  ;;  %v7658_v22 = vld [vmem:[%s9388_s0 + $0x368] sm:$0xff] }
 0x14b   :  { %9581 = vst [vmem:[#allocation72_spill] sm:$0xff] %v7634_v4  ;;  %v7636_v26 = vmax.f32 %v861_v44, %v862_v3  ;;  %v7638_v61 = vmax.f32 %v917_v25, %v918_v19  ;;  %v2916_v42 = vsel %vm2888_vm8, %v2915_v2, %v2911_v38  ;;  %479 = vmax.xlane.f32.xlu1 %v7530_v39  ;;  %v7643_v59 = vmul.f32 0.0625, %v1705_v20  ;;  %v7663_v25 = vld [vmem:[%s9388_s0 + $0x360] sm:$0xff]  ;;  %v5659_v19 = vld [vmem:[%s9388_s0 + $0x78] sm:$0xff] }
 0x14c   :  { %476 = vmax.xlane.f32.xlu0 %v7542_v13  ;;  %v7647_v45 = vsel %vm2392_vm3, %v2916_v42, %v7125_v6  ;;  %v438_v52 = vpop.xlane.xlu1 %437  ;;  %v435_v36 = vpop.xlane.xlu0 %434  ;;  %v7649_v24 = vmul.f32 0.0625, %v1761_v60  ;;  %v7651_v44 = vmax.f32 %v1847_v29, %v1848_v63  ;;  %v7653_v34 = vmax.f32 %v1903_v49, %v1904_v56  ;;  %9588 = vst [vmem:[#allocation79_spill] sm:$0xff] %v7658_v22  ;;  %v7689_v60 = vld [vmem:[%s9388_s0 + $0x3e0] sm:$0xff]  ;;  %v90_v56 = vld [vmem:[%s9388_s0 + $0x168] sm:$0xff] }
 0x14d   :  { %9582 = vst [vmem:[#allocation73_spill] sm:$0xff] %v7636_v26  ;;  %9583 = vst [vmem:[#allocation74_spill] sm:$0xff] %v7638_v61  ;;  %v2987_v6 = vrot.slane %v438_v52, %v6846_v50  ;;  %v2983_v3 = vrot.slane %v435_v36, %v6850_v35  ;;  %v7667_v15 = vmax.f32 %v1922_v30, %v1923_v14  ;;  %v1930_v29 = vrot.slane %v1929_v37, 2  ;;  %v7684_v30 = vld [vmem:[%s9388_s0 + $0x3e8] sm:$0xff]  ;;  %v5661_v52 = vld [vmem:[%s9388_s0 + $0xf8] sm:$0xff] }
 0x14e   :  { %9584 = vst [vmem:[#allocation75_spill] sm:$0xff] %v7643_v59  ;;  %9585 = vst [vmem:[#allocation76_spill] sm:$0xff] %v7649_v24  ;;  %v1979_v43 = vrot.slane %v1978_v10, 2  ;;  %v1986_v49 = vrot.slane %v1985_v18, 2  ;;  %v7673_v20 = vsel %vm109_vm0, %v5659_v19, -inf  ;;  %v7679_v31 = vsel %vm109_vm0, %v5660_v8, -inf }
 0x14f   :  { %9586 = vst [vmem:[#allocation77_spill] sm:$0xff] %v7651_v44  ;;  %9587 = vst [vmem:[#allocation78_spill] sm:$0xff] %v7653_v34  ;;  %v2988_v63 = vsel %vm2888_vm8, %v2987_v6, %v2983_v3  ;;  %527 = vmax.xlane.f32.xlu1 %v7550_v41  ;;  %v864_v14 = vmax.f32 %v7679_v31, %v7673_v20  ;;  %v7701_v51 = vsel %vm109_vm0, %v7658_v22, 0.0  ;;  %v7705_v2 = vsel %vm109_vm0, %v7663_v25, 0.0  ;;  %v5662_v6 = vld [vmem:[%s9388_s0 + $0xf0] sm:$0xff]  ;;  %v5663_v44 = vld [vmem:[%s9388_s0 + $0x268] sm:$0xff] }
 0x150   :  { %9589 = vst [vmem:[#allocation80_spill] sm:$0xff] %v7663_v25  ;;  %9590 = vst [vmem:[#allocation81_spill] sm:$0xff] %v7684_v30  ;;  %524 = vmax.xlane.f32.xlu0 %v7634_v4  ;;  %v7709_v38 = vsel %vm2392_vm3, %v2988_v63, %v7170_v7  ;;  %v1145_v58 = vpop.xlane.xlu1 %1144  ;;  %v1142_v42 = vpop.xlane.xlu0 %1141  ;;  %v7715_v36 = vsel %vm109_vm0, %v5661_v52, -inf  ;;  %v7721_v3 = vsel %vm109_vm0, %v5662_v6, -inf  ;;  %v1706_v7 = vadd.f32 %v7701_v51, %v7705_v2 }
 0x151   :  { %9591 = vst [vmem:[#allocation82_spill] sm:$0xff] %v7689_v60  ;;  %v1309_v19 = vmul.f32 0.0625, %v1145_v58  ;;  %v1308_v8 = vmul.f32 0.0625, %v1142_v42  ;;  %v7727_v63 = vsel %vm109_vm0, %v7684_v30, 0.0  ;;  %v7731_v52 = vsel %vm109_vm0, %v7689_v60, 0.0 }
 0x152   :  { %v7733_v4 = vmax.f32 %v1929_v37, %v1930_v29  ;;  %v7736_v41 = vsel %vm109_vm0, %v90_v56, 0.0  ;;  %v920_v6 = vmax.f32 %v7721_v3, %v7715_v36  ;;  %v1762_v58 = vadd.f32 %v7727_v63, %v7731_v52 }
 0x153   :  { %9592 = vst [vmem:[#allocation83_spill] sm:$0xff] %v7736_v41  ;;  %v2555_v42 = vrot.slane %v1309_v19, %v6659_v1  ;;  %v2551_v13 = vrot.slane %v1308_v8, %v6666_v47  ;;  %1234 = vadd.xlane.f32.xlu1 %v7381_v33  ;;  %v1925_v37 = vrot.slane %v7667_v15, 1  ;;  %v1980_v29 = vmax.f32 %v1978_v10, %v1979_v43  ;;  %v5664_v10 = vld [vmem:[%s9388_s0 + $0x260] sm:$0xff] }
 0x154   :  { %1231 = vadd.xlane.f32.xlu0 %v7385_v55  ;;  %v1193_v39 = vpop.xlane.xlu1 %1192  ;;  %v1190_v56 = vpop.xlane.xlu0 %1189  ;;  %v1987_v24 = vmax.f32 %v1985_v18, %v1986_v49  ;;  %v865_v59 = vrot.slane %v864_v14, 4  ;;  %v1707_v34 = vrot.slane %v1706_v7, 4  ;;  %v7751_v19 = vsel %vm109_vm0, %v5663_v44, -inf  ;;  %v89_v55 = vld [vmem:[%s9388_s0 + $0x160] sm:$0xff] }
 0x155   :  { %9593 = vst [vmem:[#allocation84_spill] sm:$0xff] %v7751_v19  ;;  %v2556_v8 = vsel %vm2501_vm7, %v2555_v42, %v2551_v13  ;;  %v1325_v33 = vmul.f32 0.0625, %v1193_v39  ;;  %v1324_v61 = vmul.f32 0.0625, %v1190_v56  ;;  %v7761_v18 = vsel %vm109_vm0, %v5664_v10, -inf  ;;  %v5665_v56 = vld [vmem:[%s9388_s0 + $0x2e8] sm:$0xff] }
 0x156   :  { %9594 = vst [vmem:[#allocation85_spill] sm:$0xff] %v7761_v18  ;;  %v7765_v43 = vsel %vm2398_vm10, %v2556_v8, %v7208_v16  ;;  %v921_v44 = vrot.slane %v920_v6, 4  ;;  %v1763_v49 = vrot.slane %v1762_v58, 4  ;;  %v1850_v39 = vmax.f32 %v7761_v18, %v7751_v19  ;;  %v5666_v8 = vld [vmem:[%s9388_s0 + $0x2e0] sm:$0xff] }
 0x157   :  { %9595 = vst [vmem:[#allocation86_spill] sm:$0xff] %v7765_v43  ;;  %v2627_v13 = vrot.slane %v1325_v33, %v6659_v1  ;;  %v2623_v42 = vrot.slane %v1324_v61, %v6666_v47  ;;  %1282 = vadd.xlane.f32.xlu1 %v7391_v40  ;;  %v7777_v16 = vsel %vm109_vm0, %v5665_v56, -inf  ;;  %v7783_v10 = vsel %vm109_vm0, %v5666_v8, -inf }
 0x158   :  { %1279 = vadd.xlane.f32.xlu0 %v7395_v17  ;;  %v1217_v33 = vpop.xlane.xlu1 %1216  ;;  %v1214_v61 = vpop.xlane.xlu0 %1213  ;;  %v7786_v40 = vsel %vm109_vm0, %v89_v55, 0.0  ;;  %v866_v17 = vmax.f32 %v864_v14, %v865_v59  ;;  %v1708_v43 = vadd.f32 %v1707_v34, %v1706_v7  ;;  %v1906_v26 = vmax.f32 %v7783_v10, %v7777_v16 }
 0x159   :  { %9596 = vst [vmem:[#allocation87_spill] sm:$0xff] %v7786_v40  ;;  %v2628_v56 = vsel %vm2501_vm7, %v2627_v13, %v2623_v42  ;;  %v1333_v60 = vmul.f32 0.0625, %v1217_v33  ;;  %v1332_v30 = vmul.f32 0.0625, %v1214_v61  ;;  %v1932_v25 = vrot.slane %v7733_v4, 1 }
 0x15a   :  { %v7794_v8 = vsel %vm2398_vm10, %v2628_v56, %v7239_v21  ;;  %v1981_v22 = vrot.slane %v1980_v29, 1  ;;  %v1764_v18 = vadd.f32 %v1763_v49, %v1762_v58  ;;  %v1851_v19 = vrot.slane %v1850_v39, 4 }
 0x15b   :  { %9597 = vst [vmem:[#allocation88_spill] sm:$0xff] %v7794_v8  ;;  %v2663_v55 = vrot.slane %v1333_v60, %v6659_v1  ;;  %v2659_v59 = vrot.slane %v1332_v30, %v6666_v47  ;;  %1394 = vmax.xlane.f32.xlu1 %v7439_v46  ;;  %v1988_v34 = vrot.slane %v1987_v24, 1  ;;  %v922_v14 = vmax.f32 %v920_v6, %v921_v44  ;;  %v9599_v8 = vld [vmem:[#allocation56_spill] sm:$0xff] }
 0x15c   :  { %1391 = vmax.xlane.f32.xlu0 %v7453_v28  ;;  %v1265_v7 = vpop.xlane.xlu1 %1264  ;;  %v1262_v13 = vpop.xlane.xlu0 %1261  ;;  %v1926_v42 = vmax.f32 %v7667_v15, %v1925_v37  ;;  %v867_v33 = vrot.slane %v866_v17, 2  ;;  %v1709_v21 = vrot.slane %v1708_v43, 2  ;;  %v1907_v61 = vrot.slane %v1906_v26, 4  ;;  %v9598_v37 = vld [vmem:[#allocation55_spill] sm:$0xff] }
 0x15d   :  { %v2664_v58 = vsel %vm2501_vm7, %v2663_v55, %v2659_v59  ;;  %v1349_v49 = vmul.f32 0.0625, %v1265_v7  ;;  %v1348_v56 = vmul.f32 0.0625, %v1262_v13  ;;  %v1933_v60 = vmax.f32 %v7733_v4, %v1932_v25  ;;  %v7819_v4 = vld [vmem:[%s9388_s0 + $0x1e0] sm:$0xff] }
 0x15e   :  { %v7805_v46 = vsel %vm2390_vm2, %v2664_v58, %v7294_v12  ;;  %v1982_v28 = vmax.f32 %v1980_v29, %v1981_v22  ;;  %v1765_v30 = vrot.slane %v1764_v18, 2  ;;  %v1852_v6 = vmax.f32 %v1850_v39, %v1851_v19  ;;  %v7814_v12 = vld [vmem:[%s9388_s0 + $0x1e8] sm:$0xff]  ;;  %9601 = vst [vmem:[#allocation56_spill] sm:$0xff] %v7819_v4  ;;  %v5668_v58 = vld [vmem:[%s9388_s0 + $0x320] sm:$0xff] }
 0x15f   :  { %v2735_v44 = vrot.slane %v1349_v49, %v6659_v1  ;;  %v2731_v15 = vrot.slane %v1348_v56, %v6666_v47  ;;  %1442 = vmax.xlane.f32.xlu1 %v9598_v37  ;;  %v1989_v55 = vmax.f32 %v1987_v24, %v1988_v34  ;;  %v923_v59 = vrot.slane %v922_v14, 2  ;;  %9600 = vst [vmem:[#allocation55_spill] sm:$0xff] %v7814_v12  ;;  %v5667_v24 = vld [vmem:[%s9388_s0 + $0x328] sm:$0xff] }
 0x160   :  { %1439 = vmax.xlane.f32.xlu0 %v9599_v8  ;;  %v1377_v7 = vpop.xlane.xlu1 %1376  ;;  %v1374_v13 = vpop.xlane.xlu0 %1373  ;;  %v868_v22 = vmax.f32 %v866_v17, %v867_v33  ;;  %v1710_v25 = vadd.f32 %v1709_v21, %v1708_v43  ;;  %v1908_v29 = vmax.f32 %v1906_v26, %v1907_v61  ;;  %v7825_v19 = vsel %vm109_vm0, %v5667_v24, -inf  ;;  %v9602_v26 = vld [vmem:[#allocation52_spill] sm:$0xff] }
 0x161   :  { %v2736_v39 = vsel %vm2501_vm7, %v2735_v44, %v2731_v15  ;;  %v3293_v8 = vrot.slane %v1377_v7, %v7313_v5  ;;  %v3289_v34 = vrot.slane %v1374_v13, %v7316_v32  ;;  %v7834_v43 = vsel %vm109_vm0, %v5668_v58, -inf }
 0x162   :  { %v7838_v17 = vsel %vm2390_vm2, %v2736_v39, %v9602_v26  ;;  %v1766_v33 = vadd.f32 %v1765_v30, %v1764_v18  ;;  %v1853_v21 = vrot.slane %v1852_v6, 2  ;;  %v1934_v61 = vmax.f32 %v7834_v43, %v7825_v19  ;;  %v9605_v18 = vld [vmem:[#allocation54_spill] sm:$0xff] }
 0x163   :  { %v3294_v49 = vsel %vm3275_vm9, %v3293_v8, %v3289_v34  ;;  %1460 = vmax.xlane.f32.xlu1 %v7514_v9  ;;  %v7847_v56 = vsel %vm109_vm0, %v7814_v12, 0.0  ;;  %v7851_v44 = vsel %vm109_vm0, %v7819_v4, 0.0  ;;  %v924_v15 = vmax.f32 %v922_v14, %v923_v59  ;;  %v5669_v14 = vld [vmem:[%s9388_s0 + $0x138] sm:$0xff] }
 0x164   :  { %1457 = vmax.xlane.f32.xlu0 %v7520_v57  ;;  %9603 = vst [vmem:[#allocation52_spill] sm:$0xff] %v7847_v56  ;;  %9604 = vst [vmem:[#allocation89_spill] sm:$0xff] %v7851_v44  ;;  %v7855_v30 = vsel %vm2390_vm2, %v3294_v49, %v9605_v18  ;;  %v1425_v37 = vpop.xlane.xlu1 %1424  ;;  %v1422_v7 = vpop.xlane.xlu0 %1421  ;;  %v7858_v13 = vsel %vm2388_vm1, %v1933_v60, %v1926_v42  ;;  %v1711_v9 = vrot.slane %v1710_v25, 1  ;;  %v1909_v57 = vrot.slane %v1908_v29, 2  ;;  %v5671_v18 = vld [vmem:[%s9388_s0 + $0x3a0] sm:$0xff]  ;;  %v7947_v12 = vld [vmem:[%s9388_s0 + $0x378] sm:$0xff] }
 0x165   :  { %v3365_v24 = vrot.slane %v1425_v37, %v7313_v5  ;;  %v3361_v39 = vrot.slane %v1422_v7, %v7316_v32  ;;  %v7863_v8 = vsel %vm2388_vm1, %v1989_v55, %v1982_v28  ;;  %v7869_v59 = vsel %vm109_vm0, %v5669_v14, -inf  ;;  %v5670_v28 = vld [vmem:[%s9388_s0 + $0x3a8] sm:$0xff] }
 0x166   :  { %9606 = vst [vmem:[#allocation54_spill] sm:$0xff] %v7869_v59  ;;  %v869_v34 = vrot.slane %v868_v22, 1  ;;  %v1767_v58 = vrot.slane %v1766_v33, 1  ;;  %v1854_v42 = vmax.f32 %v1852_v6, %v1853_v21  ;;  %v1935_v60 = vrot.slane %v1934_v61, 4 }
 0x167   :  { %v3366_v26 = vsel %vm3275_vm9, %v3365_v24, %v3361_v39  ;;  %1466 = vmax.xlane.f32.xlu1 %v7561_v27  ;;  %v925_v49 = vrot.slane %v924_v15, 1  ;;  %v7878_v55 = vsel %vm109_vm0, %v5670_v28, -inf  ;;  %v7884_v6 = vsel %vm109_vm0, %v5671_v18, -inf  ;;  %v5672_v28 = vld [vmem:[%s9388_s0 + $0x130] sm:$0xff] }
 0x168   :  { %1463 = vmax.xlane.f32.xlu0 %v7571_v54  ;;  %9607 = vst [vmem:[#allocation90_spill] sm:$0xff] %v7884_v6  ;;  %v7888_v27 = vsel %vm2390_vm2, %v3366_v26, %v7506_v23  ;;  %v157_v54 = vpop.xlane.xlu1 %156  ;;  %v154_v21 = vpop.xlane.xlu0 %153  ;;  %v1712_v37 = vadd.f32 %v1711_v9, %v1710_v25  ;;  %v1910_v7 = vmax.f32 %v1908_v29, %v1909_v57  ;;  %v7896_v18 = vsel %vm109_vm0, %v5672_v28, -inf  ;;  %v5673_v23 = vld [vmem:[%s9388_s0 + $0x1b8] sm:$0xff] }
 0x169   :  { %v1990_v24 = vmax.f32 %v7884_v6, %v7878_v55  ;;  %v318_v39 = vmul.f32 0.0625, %v157_v54  ;;  %v317_v14 = vmul.f32 0.0625, %v154_v21  ;;  %9608 = vst [vmem:[#allocation91_spill] sm:$0xff] %v7896_v18  ;;  %v7902_v26 = vsel %vm109_vm0, %v5673_v23, -inf  ;;  %v9611_v28 = vld [vmem:[#allocation68_spill] sm:$0xff]  ;;  %v5674_v23 = vld [vmem:[%s9388_s0 + $0x1b0] sm:$0xff] }
 0x16a   :  { %9609 = vst [vmem:[#allocation92_spill] sm:$0xff] %v7902_v26  ;;  %v7904_v25 = vmax.f32 %v868_v22, %v869_v34  ;;  %v1768_v29 = vadd.f32 %v1767_v58, %v1766_v33  ;;  %v1855_v9 = vrot.slane %v1854_v42, 1  ;;  %v1936_v57 = vmax.f32 %v1934_v61, %v1935_v60 }
 0x16b   :  { %v2170_v54 = vrot.slane %v318_v39, %v6638_v62  ;;  %v2166_v21 = vrot.slane %v317_v14, %v6633_v0  ;;  %1508 = vmax.xlane.f32.xlu1 %v7579_v48  ;;  %v7910_v4 = vmax.f32 %v924_v15, %v925_v49  ;;  %v7916_v22 = vsel %vm109_vm0, %v5674_v23, -inf  ;;  %v7923_v48 = vld [vmem:[%s9388_s0 + $0x178] sm:$0xff]  ;;  %v7928_v15 = vld [vmem:[%s9388_s0 + $0x170] sm:$0xff] }
 0x16c   :  { %9610 = vst [vmem:[#allocation93_spill] sm:$0xff] %v7904_v25  ;;  %1505 = vmax.xlane.f32.xlu0 %v9611_v28  ;;  %9613 = vst [vmem:[#allocation94_spill] sm:$0xff] %v7916_v22  ;;  %v205_v33 = vpop.xlane.xlu1 %204  ;;  %v202_v34 = vpop.xlane.xlu0 %201  ;;  %v7918_v61 = vmul.f32 0.0625, %v1712_v37  ;;  %v1911_v58 = vrot.slane %v1910_v7, 1  ;;  %v1991_v60 = vrot.slane %v1990_v24, 4  ;;  %v5675_v49 = vld [vmem:[%s9388_s0 + $0x3b8] sm:$0xff] }
 0x16d   :  { %9612 = vst [vmem:[#allocation68_spill] sm:$0xff] %v7910_v4  ;;  %9615 = vst [vmem:[#allocation96_spill] sm:$0xff] %v7923_v48  ;;  %v7934_v39 = vsel %vm109_vm0, %v5675_v49, -inf  ;;  %v7937_v37 = vsel %vm2107_vm6, %v2170_v54, %v2166_v21  ;;  %v334_v14 = vmul.f32 0.0625, %v205_v33  ;;  %v333_v28 = vmul.f32 0.0625, %v202_v34  ;;  %v7942_v23 = vld [vmem:[%s9388_s0 + $0x1f8] sm:$0xff] }
 0x16e   :  { %9614 = vst [vmem:[#allocation95_spill] sm:$0xff] %v7918_v61  ;;  %9616 = vst [vmem:[#allocation97_spill] sm:$0xff] %v7928_v15  ;;  %v5676_v49 = vld [vmem:[%s9388_s0 + $0x3b0] sm:$0xff]  ;;  %v7955_v54 = vmul.f32 0.0625, %v1768_v29  ;;  %v7957_v21 = vmax.f32 %v1854_v42, %v1855_v9  ;;  %v1937_v33 = vrot.slane %v1936_v57, 2  ;;  %v9624_v29 = vld [vmem:[#allocation70_spill] sm:$0xff] }
 0x16f   :  { %9617 = vst [vmem:[#allocation98_spill] sm:$0xff] %v7934_v39  ;;  %9618 = vst [vmem:[#allocation99_spill] sm:$0xff] %v7937_v37  ;;  %v7953_v61 = vsel %vm109_vm0, %v5676_v49, -inf  ;;  %v7962_v34 = vld [vmem:[%s9388_s0 + $0x370] sm:$0xff]  ;;  %v2242_v25 = vrot.slane %v334_v14, %v6638_v62  ;;  %v2238_v37 = vrot.slane %v333_v28, %v6633_v0  ;;  %v9623_v49 = vld [vmem:[#allocation69_spill] sm:$0xff]  ;;  %v7974_v42 = vsel %vm109_vm0, %v7923_v48, 0.0 }
 0x170   :  { %9619 = vst [vmem:[#allocation100_spill] sm:$0xff] %v7942_v23  ;;  %9620 = vst [vmem:[#allocation101_spill] sm:$0xff] %v7953_v61  ;;  %v7966_v4 = vmax.f32 %v7953_v61, %v7934_v39  ;;  %1514 = vmax.xlane.f32.xlu1 %v9623_v49  ;;  %1511 = vmax.xlane.f32.xlu0 %v9624_v29  ;;  %v7978_v9 = vsel %vm109_vm0, %v7928_v15, 0.0  ;;  %v7983_v61 = vld [vmem:[%s9388_s0 + $0x3f8] sm:$0xff]  ;;  %v7988_v14 = vld [vmem:[%s9388_s0 + $0x3f0] sm:$0xff]  ;;  %v229_v28 = vpop.xlane.xlu1 %228  ;;  %v226_v49 = vpop.xlane.xlu0 %225  ;;  %v7990_v29 = vmax.f32 %v1910_v7, %v1911_v58 }
 0x171   :  { %9621 = vst [vmem:[#allocation102_spill] sm:$0xff] %v7955_v54  ;;  %9622 = vst [vmem:[#allocation103_spill] sm:$0xff] %v7957_v21  ;;  %v1992_v48 = vmax.f32 %v1990_v24, %v1991_v60  ;;  %v7994_v39 = vsel %vm109_vm0, %v7942_v23, 0.0  ;;  %v7998_v15 = vsel %vm109_vm0, %v7947_v12, 0.0  ;;  %v8001_v54 = vsel %vm2107_vm6, %v2242_v25, %v2238_v37 }
 0x172   :  { %9625 = vst [vmem:[#allocation69_spill] sm:$0xff] %v7974_v42  ;;  %9626 = vst [vmem:[#allocation70_spill] sm:$0xff] %v7978_v9  ;;  %v342_v21 = vmul.f32 0.0625, %v229_v28  ;;  %v341_v9 = vmul.f32 0.0625, %v226_v49  ;;  %v8006_v42 = vld [vmem:[%s9388_s0 + $0x1f0] sm:$0xff]  ;;  %v8010_v7 = vsel %vm109_vm0, %v7962_v34, 0.0  ;;  %v8012_v24 = vmax.f32 %v1936_v57, %v1937_v33 }
 0x173   :  { %9627 = vst [vmem:[#allocation104_spill] sm:$0xff] %v7990_v29  ;;  %9628 = vst [vmem:[#allocation105_spill] sm:$0xff] %v7994_v39  ;;  %v1713_v58 = vadd.f32 %v7998_v15, %v8010_v7  ;;  %v8018_v25 = vsel %vm109_vm0, %v7983_v61, 0.0  ;;  %v8022_v60 = vsel %vm109_vm0, %v7988_v14, 0.0  ;;  %v5677_v57 = vld [vmem:[%s9388_s0 + $0x338] sm:$0xff]  ;;  %v5678_v49 = vld [vmem:[%s9388_s0 + $0x330] sm:$0xff] }
 0x174   :  { %9629 = vst [vmem:[#allocation106_spill] sm:$0xff] %v7998_v15  ;;  %9630 = vst [vmem:[#allocation107_spill] sm:$0xff] %v8001_v54  ;;  %v2278_v37 = vrot.slane %v342_v21, %v6638_v62  ;;  %v2274_v28 = vrot.slane %v341_v9, %v6633_v0  ;;  %246 = vadd.xlane.f32.xlu1 %v7736_v41  ;;  %243 = vadd.xlane.f32.xlu0 %v7786_v40  ;;  %v8032_v33 = vsel %vm109_vm0, %v5677_v57, -inf  ;;  %v277_v21 = vpop.xlane.xlu1 %276  ;;  %v274_v9 = vpop.xlane.xlu0 %273 }
 0x175   :  { %9631 = vst [vmem:[#allocation108_spill] sm:$0xff] %v8006_v42  ;;  %9632 = vst [vmem:[#allocation109_spill] sm:$0xff] %v8010_v7  ;;  %v8038_v23 = vsel %vm109_vm0, %v5678_v49, -inf  ;;  %v1993_v7 = vrot.slane %v1992_v48, 2  ;;  %v8042_v41 = vsel %vm109_vm0, %v8006_v42, 0.0  ;;  %v1769_v40 = vadd.f32 %v8018_v25, %v8022_v60  ;;  %v5679_v49 = vld [vmem:[%s9388_s0 + $0x148] sm:$0xff] }
 0x176   :  { %9633 = vst [vmem:[#allocation110_spill] sm:$0xff] %v8018_v25  ;;  %9634 = vst [vmem:[#allocation111_spill] sm:$0xff] %v8022_v60  ;;  %v1941_v57 = vmax.f32 %v8038_v23, %v8032_v33  ;;  %v2279_v15 = vsel %vm2107_vm6, %v2278_v37, %v2274_v28  ;;  %v358_v29 = vmul.f32 0.0625, %v277_v21  ;;  %v357_v39 = vmul.f32 0.0625, %v274_v9  ;;  %v5681_v28 = vld [vmem:[%s9388_s0 + $0x270] sm:$0xff] }
 0x177   :  { %9635 = vst [vmem:[#allocation112_spill] sm:$0xff] %v8032_v33  ;;  %9636 = vst [vmem:[#allocation113_spill] sm:$0xff] %v8038_v23  ;;  %v8053_v54 = vsel %vm109_vm0, %v5679_v49, -inf  ;;  %v8057_v42 = vsel %vm2392_vm3, %v2279_v15, %v7617_v11  ;;  %v1939_v60 = vrot.slane %v8012_v24, 1  ;;  %v5680_v23 = vld [vmem:[%s9388_s0 + $0x278] sm:$0xff]  ;;  %v8070_v21 = vsel %vm109_vm0, %v5681_v28, -inf }
 0x178   :  { %9637 = vst [vmem:[#allocation114_spill] sm:$0xff] %v8042_v41  ;;  %9638 = vst [vmem:[#allocation115_spill] sm:$0xff] %v8053_v54  ;;  %v8064_v37 = vsel %vm109_vm0, %v5680_v23, -inf  ;;  %v2350_v9 = vrot.slane %v358_v29, %v6638_v62  ;;  %v2346_v11 = vrot.slane %v357_v39, %v6633_v0  ;;  %294 = vadd.xlane.f32.xlu1 %v7847_v56  ;;  %291 = vadd.xlane.f32.xlu0 %v7851_v44  ;;  %v396_v49 = vpop.xlane.xlu1 %395  ;;  %v393_v33 = vpop.xlane.xlu0 %392  ;;  %v5682_v28 = vld [vmem:[%s9388_s0 + $0x348] sm:$0xff] }
 0x179   :  { %9639 = vst [vmem:[#allocation116_spill] sm:$0xff] %v8064_v37  ;;  %9640 = vst [vmem:[#allocation117_spill] sm:$0xff] %v8070_v21  ;;  %v1714_v15 = vrot.slane %v1713_v58, 4  ;;  %v1857_v23 = vmax.f32 %v8070_v21, %v8064_v37  ;;  %v1994_v25 = vmax.f32 %v1992_v48, %v1993_v7  ;;  %v1770_v54 = vrot.slane %v1769_v40, 4  ;;  %v5683_v21 = vld [vmem:[%s9388_s0 + $0x340] sm:$0xff] }
 0x17a   :  { %v1942_v41 = vrot.slane %v1941_v57, 4  ;;  %v8082_v29 = vsel %vm109_vm0, %v5682_v28, -inf  ;;  %v2351_v39 = vsel %vm2107_vm6, %v2350_v9, %v2346_v11  ;;  %v2924_v56 = vrot.slane %v396_v49, %v6846_v50  ;;  %v5684_v28 = vld [vmem:[%s9388_s0 + $0x2f8] sm:$0xff] }
 0x17b   :  { %9641 = vst [vmem:[#allocation118_spill] sm:$0xff] %v8082_v29  ;;  %v2920_v44 = vrot.slane %v393_v33, %v6850_v35  ;;  %v8091_v48 = vsel %vm109_vm0, %v5683_v21, -inf  ;;  %v8095_v7 = vsel %vm2392_vm3, %v2351_v39, %v7628_v53  ;;  %v8101_v9 = vsel %vm109_vm0, %v5684_v28, -inf  ;;  %v5685_v33 = vld [vmem:[%s9388_s0 + $0x2f0] sm:$0xff] }
 0x17c   :  { %9642 = vst [vmem:[#allocation119_spill] sm:$0xff] %v8091_v48  ;;  %9643 = vst [vmem:[#allocation120_spill] sm:$0xff] %v8095_v7  ;;  %v8107_v11 = vsel %vm109_vm0, %v5685_v33, -inf  ;;  %v1948_v21 = vmax.f32 %v8091_v48, %v8082_v29  ;;  %413 = vmax.xlane.f32.xlu1 %v7673_v20  ;;  %410 = vmax.xlane.f32.xlu0 %v7679_v31  ;;  %v1715_v49 = vadd.f32 %v1714_v15, %v1713_v58  ;;  %v444_v33 = vpop.xlane.xlu1 %443  ;;  %v441_v7 = vpop.xlane.xlu0 %440  ;;  %v5687_v31 = vld [vmem:[%s9388_s0 + $0x3c0] sm:$0xff] }
 0x17d   :  { %9644 = vst [vmem:[#allocation121_spill] sm:$0xff] %v8101_v9  ;;  %9645 = vst [vmem:[#allocation122_spill] sm:$0xff] %v8107_v11  ;;  %v2925_v53 = vsel %vm2888_vm8, %v2924_v56, %v2920_v44  ;;  %v1858_v39 = vrot.slane %v1857_v23, 4  ;;  %v1913_v28 = vmax.f32 %v8107_v11, %v8101_v9  ;;  %v1943_v6 = vmax.f32 %v1941_v57, %v1942_v41  ;;  %v5686_v56 = vld [vmem:[%s9388_s0 + $0x3c8] sm:$0xff] }
 0x17e   :  { %v8118_v37 = vsel %vm2394_vm4, %v2925_v53, %v7647_v45  ;;  %v8124_v20 = vsel %vm109_vm0, %v5686_v56, -inf  ;;  %v8130_v44 = vsel %vm109_vm0, %v5687_v31, -inf  ;;  %v2996_v45 = vrot.slane %v444_v33, %v6846_v50 }
 0x17f   :  { %9646 = vst [vmem:[#allocation123_spill] sm:$0xff] %v8124_v20  ;;  %9647 = vst [vmem:[#allocation124_spill] sm:$0xff] %v8130_v44  ;;  %v2992_v58 = vrot.slane %v441_v7, %v6850_v35  ;;  %v1771_v15 = vadd.f32 %v1770_v54, %v1769_v40  ;;  %v2004_v41 = vmax.f32 %v8130_v44, %v8124_v20  ;;  %v1995_v53 = vrot.slane %v1994_v25, 1  ;;  %v5688_v7 = vld [vmem:[%s9388_s0 + $0x140] sm:$0xff]  ;;  %v5689_v20 = vld [vmem:[%s9388_s0 + $0x1c8] sm:$0xff] }
 0x180   :  { %v1940_v57 = vmax.f32 %v8012_v24, %v1939_v60  ;;  %v1998_v56 = vrot.slane %v7966_v4, 4  ;;  %v1949_v48 = vrot.slane %v1948_v21, 4  ;;  %461 = vmax.xlane.f32.xlu1 %v7715_v36  ;;  %458 = vmax.xlane.f32.xlu0 %v7721_v3  ;;  %v8145_v40 = vsel %vm109_vm0, %v5688_v7, -inf  ;;  %v1151_v60 = vpop.xlane.xlu1 %1150  ;;  %v1148_v31 = vpop.xlane.xlu0 %1147 }
 0x181   :  { %v2997_v29 = vsel %vm2888_vm8, %v2996_v45, %v2992_v58  ;;  %9648 = vst [vmem:[#allocation125_spill] sm:$0xff] %v8145_v40  ;;  %v1716_v54 = vrot.slane %v1715_v49, 2  ;;  %v2005_v33 = vrot.slane %v2004_v41, 4  ;;  %v1859_v45 = vmax.f32 %v1857_v23, %v1858_v39  ;;  %v9651_v40 = vld [vmem:[#allocation47_spill] sm:$0xff] }
 0x182   :  { %v8149_v24 = vsel %vm2394_vm4, %v2997_v29, %v7709_v38  ;;  %v1914_v58 = vrot.slane %v1913_v28, 4  ;;  %v1944_v36 = vrot.slane %v1943_v6, 2  ;;  %v1311_v44 = vmul.f32 0.0625, %v1151_v60 }
 0x183   :  { %9649 = vst [vmem:[#allocation126_spill] sm:$0xff] %v8149_v24  ;;  %v1310_v3 = vmul.f32 0.0625, %v1148_v31  ;;  %v8155_v7 = vsel %vm109_vm0, %v5689_v20, -inf  ;;  %v1772_v11 = vrot.slane %v1771_v15, 2  ;;  %v8159_v9 = vsel %vm2390_vm2, %v1940_v57, %v7858_v13  ;;  %v5690_v20 = vld [vmem:[%s9388_s0 + $0x1c0] sm:$0xff] }
 0x184   :  { %9650 = vst [vmem:[#allocation127_spill] sm:$0xff] %v8155_v7  ;;  %v1996_v38 = vmax.f32 %v1994_v25, %v1995_v53  ;;  %v1999_v29 = vmax.f32 %v7966_v4, %v1998_v56  ;;  %v1950_v23 = vmax.f32 %v1948_v21, %v1949_v48  ;;  %v2564_v39 = vrot.slane %v1311_v44, %v6659_v1  ;;  %v1199_v25 = vpop.xlane.xlu1 %1198  ;;  %v1196_v57 = vpop.xlane.xlu0 %1195 }
 0x185   :  { %v2560_v60 = vrot.slane %v1310_v3, %v6666_v47  ;;  %485 = vmax.xlane.f32.xlu1 %v7869_v59  ;;  %482 = vmax.xlane.f32.xlu0 %v7896_v18  ;;  %v8170_v31 = vsel %vm109_vm0, %v5690_v20, -inf  ;;  %v2006_v13 = vmax.f32 %v2004_v41, %v2005_v33  ;;  %v1717_v4 = vadd.f32 %v1716_v54, %v1715_v49  ;;  %v9652_v20 = vld [vmem:[#allocation48_spill] sm:$0xff] }
 0x186   :  { %v1860_v48 = vrot.slane %v1859_v45, 2  ;;  %v1915_v21 = vmax.f32 %v1913_v28, %v1914_v58  ;;  %v1945_v44 = vmax.f32 %v1943_v6, %v1944_v36  ;;  %v1327_v56 = vmul.f32 0.0625, %v1199_v25  ;;  %v9654_v36 = vld [vmem:[#allocation49_spill] sm:$0xff] }
 0x187   :  { %v8173_v53 = vsel %vm2501_vm7, %v2564_v39, %v2560_v60  ;;  %v1326_v3 = vmul.f32 0.0625, %v1196_v57  ;;  %v1773_v18 = vadd.f32 %v1772_v11, %v1771_v15  ;;  %v2000_v59 = vrot.slane %v1999_v29, 2 }
 0x188   :  { %v1951_v7 = vrot.slane %v1950_v23, 2  ;;  %v8177_v24 = vsel %vm109_vm0, %v9651_v40, -inf  ;;  %v8181_v41 = vsel %vm109_vm0, %v9652_v20, -inf  ;;  %v2636_v49 = vrot.slane %v1327_v56, %v6659_v1  ;;  %v1223_v15 = vpop.xlane.xlu1 %1222  ;;  %v1220_v54 = vpop.xlane.xlu0 %1219  ;;  %v9655_v56 = vld [vmem:[#allocation50_spill] sm:$0xff] }
 0x189   :  { %9653 = vst [vmem:[#allocation47_spill] sm:$0xff] %v8181_v41  ;;  %v2632_v6 = vrot.slane %v1326_v3, %v6666_v47  ;;  %533 = vmax.xlane.f32.xlu1 %v7902_v26  ;;  %530 = vmax.xlane.f32.xlu0 %v7916_v22  ;;  %v2007_v28 = vrot.slane %v2006_v13, 2  ;;  %v1955_v11 = vmax.f32 %v8181_v41, %v8177_v24  ;;  %v1916_v33 = vrot.slane %v1915_v21, 2 }
 0x18a   :  { %v1861_v40 = vmax.f32 %v1859_v45, %v1860_v48  ;;  %v1946_v58 = vrot.slane %v1945_v44, 1  ;;  %v8191_v39 = vsel %vm109_vm0, %v9654_v36, -inf  ;;  %v1335_v25 = vmul.f32 0.0625, %v1223_v15 }
 0x18b   :  { %v8194_v60 = vsel %vm2501_vm7, %v2636_v49, %v2632_v6  ;;  %v1334_v57 = vmul.f32 0.0625, %v1220_v54  ;;  %v8198_v3 = vsel %vm109_vm0, %v9655_v56, -inf  ;;  %v3864_v20 = vsel %vm2390_vm2, %v1996_v38, %v7863_v8 }
 0x18c   :  { %v2001_v22 = vmax.f32 %v1999_v29, %v2000_v59  ;;  %v1952_v45 = vmax.f32 %v1950_v23, %v1951_v7  ;;  %v2011_v48 = vmax.f32 %v8198_v3, %v8191_v39  ;;  %v2672_v36 = vrot.slane %v1335_v25, %v6659_v1  ;;  %v1271_v15 = vpop.xlane.xlu1 %1270  ;;  %v1268_v54 = vpop.xlane.xlu0 %1267 }
 0x18d   :  { %v2668_v26 = vrot.slane %v1334_v57, %v6666_v47  ;;  %1240 = vadd.xlane.f32.xlu1 %v7701_v51  ;;  %1237 = vadd.xlane.f32.xlu0 %v7705_v2  ;;  %v2008_v49 = vmax.f32 %v2006_v13, %v2007_v28  ;;  %v1956_v6 = vrot.slane %v1955_v11, 4  ;;  %v1718_v56 = vrot.slane %v1717_v4, 1 }
 0x18e   :  { %v1774_v41 = vrot.slane %v1773_v18, 1  ;;  %v1862_v8 = vrot.slane %v1861_v40, 1  ;;  %v1917_v59 = vmax.f32 %v1915_v21, %v1916_v33  ;;  %v1351_v38 = vmul.f32 0.0625, %v1271_v15 }
 0x18f   :  { %v2673_v7 = vsel %vm2501_vm7, %v2672_v36, %v2668_v26  ;;  %v1350_v29 = vmul.f32 0.0625, %v1268_v54  ;;  %v1947_v23 = vmax.f32 %v1945_v44, %v1946_v58  ;;  %v2002_v51 = vrot.slane %v2001_v22, 1 }
 0x190   :  { %v8211_v25 = vsel %vm2392_vm3, %v2673_v7, %v7805_v46  ;;  %v1953_v57 = vrot.slane %v1952_v45, 1  ;;  %v2012_v2 = vrot.slane %v2011_v48, 4  ;;  %v2744_v13 = vrot.slane %v1351_v38, %v6659_v1  ;;  %v1383_v33 = vpop.xlane.xlu1 %1382  ;;  %v1380_v36 = vpop.xlane.xlu0 %1379 }
 0x191   :  { %v2740_v28 = vrot.slane %v1350_v29, %v6666_v47  ;;  %1288 = vadd.xlane.f32.xlu1 %v7727_v63  ;;  %1285 = vadd.xlane.f32.xlu0 %v7731_v52  ;;  %v2009_v21 = vrot.slane %v2008_v49, 1  ;;  %v1957_v26 = vmax.f32 %v1955_v11, %v1956_v6  ;;  %v8217_v44 = vadd.f32 %v1718_v56, %v1717_v4  ;;  %v9657_v6 = vld [vmem:[#allocation85_spill] sm:$0xff]  ;;  %v9658_v29 = vld [vmem:[#allocation79_spill] sm:$0xff] }
 0x192   :  { %v8219_v58 = vadd.f32 %v1774_v41, %v1773_v18  ;;  %v8221_v46 = vmax.f32 %v1861_v40, %v1862_v8  ;;  %v1918_v15 = vrot.slane %v1917_v59, 1  ;;  %v3302_v7 = vrot.slane %v1383_v33, %v7313_v5  ;;  %v9656_v40 = vld [vmem:[#allocation84_spill] sm:$0xff] }
 0x193   :  { %v2745_v54 = vsel %vm2501_vm7, %v2744_v13, %v2740_v28  ;;  %v3298_v38 = vrot.slane %v1380_v36, %v7316_v32  ;;  %v3858_v63 = vsel %vm2392_vm3, %v1947_v23, %v8159_v9  ;;  %v2003_v4 = vmax.f32 %v2001_v22, %v2002_v51  ;;  %v9660_v23 = vld [vmem:[#allocation81_spill] sm:$0xff] }
 0x194   :  { %v8230_v52 = vsel %vm2392_vm3, %v2745_v54, %v7838_v17  ;;  %v1954_v11 = vmax.f32 %v1952_v45, %v1953_v57  ;;  %v2013_v18 = vmax.f32 %v2011_v48, %v2012_v2  ;;  %v2010_v56 = vmax.f32 %v2008_v49, %v2009_v21  ;;  %v1431_v17 = vpop.xlane.xlu1 %1430  ;;  %v1428_v22 = vpop.xlane.xlu0 %1427  ;;  %v9659_v45 = vld [vmem:[#allocation80_spill] sm:$0xff]  ;;  %v9661_v49 = vld [vmem:[#allocation82_spill] sm:$0xff] }
 0x195   :  { %v3303_v41 = vsel %vm3275_vm9, %v3302_v7, %v3298_v38  ;;  %1400 = vmax.xlane.f32.xlu1 %v9656_v40  ;;  %1397 = vmax.xlane.f32.xlu0 %v9657_v6  ;;  %v1958_v8 = vrot.slane %v1957_v26, 2  ;;  %v8237_v13 = vsel %vm109_vm0, %v9658_v29, -inf  ;;  %v8245_v48 = vsel %vm109_vm0, %v9659_v45, -inf }
 0x196   :  { %v8241_v9 = vsel %vm2392_vm3, %v3303_v41, %v7855_v30  ;;  %v8249_v51 = vsel %vm109_vm0, %v9660_v23, -inf  ;;  %v8253_v57 = vsel %vm109_vm0, %v9661_v49, -inf  ;;  %v3374_v2 = vrot.slane %v1431_v17, %v7313_v5 }
 0x197   :  { %v3370_v28 = vrot.slane %v1428_v22, %v7316_v32  ;;  %v1962_v30 = vmax.f32 %v8245_v48, %v8237_v13  ;;  %v2018_v21 = vmax.f32 %v8253_v57, %v8249_v51  ;;  %v3865_v33 = vsel %vm2392_vm3, %v2003_v4, %v3864_v20 }
 0x198   :  { %v2014_v36 = vrot.slane %v2013_v18, 2  ;;  %v8264_v54 = vsel %vm109_vm0, %v7947_v12, -inf  ;;  %v8268_v7 = vsel %vm109_vm0, %v7962_v34, -inf  ;;  %v235_v12 = vpop.xlane.xlu1 %234  ;;  %v232_v6 = vpop.xlane.xlu0 %231  ;;  %v8279_v29 = vmax.f32 %v1917_v59, %v1918_v15 }
 0x199   :  { %v3375_v38 = vsel %vm3275_vm9, %v3374_v2, %v3370_v28  ;;  %1448 = vmax.xlane.f32.xlu1 %v7777_v16  ;;  %1445 = vmax.xlane.f32.xlu0 %v7783_v10  ;;  %v1963_v41 = vrot.slane %v1962_v30, 4  ;;  %v2019_v40 = vrot.slane %v2018_v21, 4  ;;  %v1969_v20 = vmax.f32 %v8268_v7, %v8264_v54 }
 0x19a   :  { %v8277_v4 = vsel %vm2392_vm3, %v3375_v38, %v7888_v27  ;;  %v8282_v34 = vsel %vm2394_vm4, %v1954_v11, %v3858_v63  ;;  %v1959_v17 = vmax.f32 %v1957_v26, %v1958_v8  ;;  %v344_v16 = vmul.f32 0.0625, %v235_v12  ;;  %v9663_v12 = vld [vmem:[#allocation67_spill] sm:$0xff] }
 0x19b   :  { %v343_v22 = vmul.f32 0.0625, %v232_v6  ;;  %v8285_v10 = vsel %vm2394_vm4, %v2010_v56, %v3865_v33  ;;  %v1964_v45 = vmax.f32 %v1962_v30, %v1963_v41  ;;  %v2015_v23 = vmax.f32 %v2013_v18, %v2014_v36  ;;  %v9664_v6 = vld [vmem:[#allocation99_spill] sm:$0xff] }
 0x19c   :  { %v2020_v49 = vmax.f32 %v2018_v21, %v2019_v40  ;;  %v1970_v2 = vrot.slane %v1969_v20, 4  ;;  %v8289_v27 = vsel %vm109_vm0, %v7983_v61, -inf  ;;  %v2287_v59 = vrot.slane %v344_v16, %v6638_v62  ;;  %v283_v11 = vpop.xlane.xlu1 %282  ;;  %v280_v18 = vpop.xlane.xlu0 %279  ;;  %v9662_v40 = vld [vmem:[#allocation90_spill] sm:$0xff] }
 0x19d   :  { %v2283_v15 = vrot.slane %v343_v22, %v6633_v0  ;;  %1472 = vmax.xlane.f32.xlu1 %v7825_v19  ;;  %1469 = vmax.xlane.f32.xlu0 %v7834_v43  ;;  %v1965_v26 = vrot.slane %v1964_v45, 2  ;;  %v8297_v63 = vsel %vm109_vm0, %v7988_v14, -inf  ;;  %v1960_v56 = vrot.slane %v1959_v17, 1 }
 0x19e   :  { %v1971_v8 = vmax.f32 %v1969_v20, %v1970_v2  ;;  %v2025_v61 = vmax.f32 %v8297_v63, %v8289_v27  ;;  %v360_v30 = vmul.f32 0.0625, %v283_v11  ;;  %v359_v21 = vmul.f32 0.0625, %v280_v18 }
 0x19f   :  { %v2288_v28 = vsel %vm2107_vm6, %v2287_v59, %v2283_v15  ;;  %v1966_v19 = vmax.f32 %v1964_v45, %v1965_v26  ;;  %v2016_v33 = vrot.slane %v2015_v23, 1  ;;  %v2021_v14 = vrot.slane %v2020_v49, 2  ;;  %v9665_v15 = vld [vmem:[#allocation71_spill] sm:$0xff] }
 0x1a0   :  { %v8304_v43 = vsel %vm2394_vm4, %v2288_v28, %v8057_v42  ;;  %v2026_v36 = vrot.slane %v2025_v61, 4  ;;  %v2359_v38 = vrot.slane %v360_v30, %v6638_v62  ;;  %v2355_v41 = vrot.slane %v359_v21, %v6633_v0  ;;  %v402_v42 = vpop.xlane.xlu1 %401  ;;  %v399_v22 = vpop.xlane.xlu0 %398  ;;  %v9666_v26 = vld [vmem:[#allocation107_spill] sm:$0xff]  ;;  %v9667_v30 = vld [vmem:[#allocation120_spill] sm:$0xff] }
 0x1a1   :  { %1520 = vmax.xlane.f32.xlu1 %v7878_v55  ;;  %1517 = vmax.xlane.f32.xlu0 %v9662_v40  ;;  %v8311_v20 = vmul.f32 0.0625, %v8217_v44  ;;  %v8316_v16 = vsel %vm2400_vm11, %v9664_v6, %v9663_v12  ;;  %v1967_v45 = vrot.slane %v1966_v19, 1  ;;  %v1972_v2 = vrot.slane %v1971_v8, 2  ;;  %v9669_v6 = vld [vmem:[#allocation69_spill] sm:$0xff] }
 0x1a2   :  { %v2027_v59 = vmax.f32 %v2025_v61, %v2026_v36  ;;  %v8321_v11 = vsel %vm2400_vm11, %v9666_v26, %v9665_v15  ;;  %v2360_v55 = vsel %vm2107_vm6, %v2359_v38, %v2355_v41  ;;  %v2933_v44 = vrot.slane %v402_v42, %v6846_v50  ;;  %v9670_v15 = vld [vmem:[#allocation70_spill] sm:$0xff] }
 0x1a3   :  { %v2929_v18 = vrot.slane %v399_v22, %v6850_v35  ;;  %v8326_v28 = vmax.f32 %v1959_v17, %v1960_v56  ;;  %v8330_v21 = vsel %vm2394_vm4, %v2360_v55, %v9667_v30  ;;  %v8332_v40 = vmax.f32 %v2015_v23, %v2016_v33  ;;  %v9671_v41 = vld [vmem:[#allocation30_spill] sm:$0xff]  ;;  %v9673_v56 = vld [vmem:[#allocation33_spill] sm:$0xff]  ;;  %v9674_v22 = vld [vmem:[#allocation51_spill] sm:$0xff] }
 0x1a4   :  { %9668 = vst [vmem:[#allocation48_spill] sm:$0xff] %v8330_v21  ;;  %v2022_v61 = vmax.f32 %v2020_v49, %v2021_v14  ;;  %v2028_v36 = vrot.slane %v2027_v59, 2  ;;  %v1807_v38 = vmul.f32 0.0625, %v8219_v58  ;;  %v9672_v42 = vld [vmem:[#allocation46_spill] sm:$0xff]  ;;  %v3781_v26 = vsel %vm2396_vm5, %v9674_v22, %v9673_v56  ;;  %v450_v49 = vpop.xlane.xlu1 %449  ;;  %v447_v33 = vpop.xlane.xlu0 %446  ;;  %v9698_v21 = vld [vmem:[#allocation59_spill] sm:$0xff] }
 0x1a5   :  { %v2934_v12 = vsel %vm2888_vm8, %v2933_v44, %v2929_v18  ;;  %252 = vadd.xlane.f32.xlu1 %v9669_v6  ;;  %249 = vadd.xlane.f32.xlu0 %v9670_v15  ;;  %v3774_v17 = vsel %vm2396_vm5, %v9672_v42, %v9671_v41  ;;  %v1968_v14 = vmax.f32 %v1966_v19, %v1967_v45  ;;  %v9675_v44 = vld [vmem:[#allocation73_spill] sm:$0xff]  ;;  %v9678_v56 = vld [vmem:[#allocation74_spill] sm:$0xff] }
 0x1a6   :  { %v8346_v23 = vsel %vm2396_vm5, %v2934_v12, %v8118_v37  ;;  %v1973_v55 = vmax.f32 %v1971_v8, %v1972_v2  ;;  %v3775_v18 = vsel %vm2398_vm10, %v9675_v44, %v3774_v17  ;;  %v3005_v58 = vrot.slane %v450_v49, %v6846_v50  ;;  %v9676_v41 = vld [vmem:[#allocation93_spill] sm:$0xff]  ;;  %v9679_v12 = vld [vmem:[#allocation68_spill] sm:$0xff]  ;;  %v9681_v8 = vld [vmem:[#allocation7_spill] sm:$0xff] }
 0x1a7   :  { %v3001_v30 = vrot.slane %v447_v33, %v6850_v35  ;;  %v8354_v42 = vsel %vm2400_vm11, %v9676_v41, %v3775_v18  ;;  %v3782_v22 = vsel %vm2398_vm10, %v9678_v56, %v3781_v26  ;;  %v2029_v37 = vmax.f32 %v2027_v59, %v2028_v36  ;;  %v9682_v19 = vld [vmem:[#allocation26_spill] sm:$0xff]  ;;  %v9683_v2 = vld [vmem:[#allocation8_spill] sm:$0xff]  ;;  %v9684_v17 = vld [vmem:[#allocation27_spill] sm:$0xff] }
 0x1a8   :  { %9677 = vst [vmem:[#allocation49_spill] sm:$0xff] %v8354_v42  ;;  %v8360_v6 = vsel %vm2400_vm11, %v9679_v12, %v3782_v22  ;;  %v3703_v45 = vsel %vm2398_vm10, %v9682_v19, %v9681_v8  ;;  %v3710_v49 = vsel %vm2398_vm10, %v9684_v17, %v9683_v2  ;;  %v9685_v44 = vld [vmem:[#allocation105_spill] sm:$0xff]  ;;  %v9686_v18 = vld [vmem:[#allocation114_spill] sm:$0xff]  ;;  %v2023_v26 = vrot.slane %v2022_v61, 1  ;;  %v468_v12 = vpop.xlane.xlu1 %467  ;;  %v465_v8 = vpop.xlane.xlu0 %464 }
 0x1a9   :  { %9680 = vst [vmem:[#allocation50_spill] sm:$0xff] %v8360_v6  ;;  %v3006_v33 = vsel %vm2888_vm8, %v3005_v58, %v3001_v30  ;;  %300 = vadd.xlane.f32.xlu1 %v9685_v44  ;;  %297 = vadd.xlane.f32.xlu0 %v9686_v18  ;;  %v9687_v36 = vld [vmem:[#allocation34_spill] sm:$0xff]  ;;  %v1974_v19 = vrot.slane %v1973_v55, 1  ;;  %v9690_v58 = vld [vmem:[#allocation45_spill] sm:$0xff]  ;;  %v3032_v59 = vrot.slane %v468_v12, %v6846_v50 }
 0x1aa   :  { %v8375_v41 = vsel %vm2400_vm11, %v9687_v36, %v3703_v45  ;;  %v9689_v56 = vld [vmem:[#allocation126_spill] sm:$0xff]  ;;  %v8383_v30 = vsel %vm2400_vm11, %v9690_v58, %v3710_v49  ;;  %v9693_v17 = vld [vmem:[#allocation77_spill] sm:$0xff]  ;;  %v3028_v45 = vrot.slane %v465_v8, %v6850_v35  ;;  %v9696_v49 = vld [vmem:[#allocation63_spill] sm:$0xff] }
 0x1ab   :  { %9688 = vst [vmem:[#allocation84_spill] sm:$0xff] %v8375_v41  ;;  %v8379_v22 = vsel %vm2396_vm5, %v3006_v33, %v9689_v56  ;;  %9691 = vst [vmem:[#allocation85_spill] sm:$0xff] %v8383_v30  ;;  %v9692_v2 = vld [vmem:[#allocation62_spill] sm:$0xff]  ;;  %v9694_v33 = vld [vmem:[#allocation103_spill] sm:$0xff] }
 0x1ac   :  { %v3846_v44 = vsel %vm2396_vm5, %v9693_v17, %v9692_v2  ;;  %v9697_v58 = vld [vmem:[#allocation78_spill] sm:$0xff]  ;;  %v9699_v2 = vld [vmem:[#allocation75_spill] sm:$0xff]  ;;  %v9700_v17 = vld [vmem:[#allocation60_spill] sm:$0xff]  ;;  %v3033_v36 = vsel %vm2888_vm8, %v3032_v59, %v3028_v45  ;;  %v471_v6 = vpop.xlane.xlu0 %470 }
 0x1ad   :  { %v3847_v56 = vsel %vm2398_vm10, %v9694_v33, %v3846_v44  ;;  %v3853_v15 = vsel %vm2396_vm5, %v9697_v58, %v9696_v49  ;;  %v3716_v12 = vsel %vm2396_vm5, %v9699_v2, %v9698_v21  ;;  %v9701_v8 = vld [vmem:[#allocation76_spill] sm:$0xff]  ;;  %v9702_v41 = vld [vmem:[#allocation115_spill] sm:$0xff]  ;;  %v9703_v44 = vld [vmem:[#allocation125_spill] sm:$0xff]  ;;  %v474_v58 = vpop.xlane.xlu1 %473  ;;  %v1975_v21 = vmax.f32 %v1973_v55, %v1974_v19 }
 0x1ae   :  { %v8396_v18 = vsel %vm2400_vm11, %v8221_v46, %v3847_v56  ;;  %v3723_v42 = vsel %vm2396_vm5, %v9701_v8, %v9700_v17  ;;  %491 = vmax.xlane.f32.xlu1 %v9702_v41  ;;  %488 = vmax.xlane.f32.xlu0 %v9703_v44  ;;  %v2030_v46 = vrot.slane %v2029_v37, 1  ;;  %v9704_v33 = vld [vmem:[#allocation104_spill] sm:$0xff]  ;;  %v9705_v30 = vld [vmem:[#allocation95_spill] sm:$0xff]  ;;  %v9708_v45 = vld [vmem:[#allocation102_spill] sm:$0xff]  ;;  %v3041_v8 = vrot.slane %v474_v58, %v6846_v50 }
 0x1af   :  { %9695 = vst [vmem:[#allocation79_spill] sm:$0xff] %v8396_v18  ;;  %v3854_v56 = vsel %vm2398_vm10, %v9704_v33, %v3853_v15  ;;  %v3717_v49 = vsel %vm2398_vm10, %v9705_v30, %v3716_v12  ;;  %v3724_v17 = vsel %vm2398_vm10, %v9708_v45, %v3723_v42  ;;  %v3037_v15 = vrot.slane %v471_v6, %v6850_v35  ;;  %v9710_v12 = vld [vmem:[#allocation127_spill] sm:$0xff]  ;;  %v9714_v58 = vld [vmem:[#allocation88_spill] sm:$0xff] }
 0x1b0   :  { %v8416_v2 = vsel %vm2400_vm11, %v8279_v29, %v3854_v56  ;;  %v8420_v59 = vsel %vm2400_vm11, %v8311_v20, %v3717_v49  ;;  %v8429_v55 = vsel %vm2400_vm11, %v1807_v38, %v3724_v17  ;;  %v2024_v19 = vmax.f32 %v2022_v61, %v2023_v26  ;;  %v513_v56 = vpop.xlane.xlu0 %512  ;;  %v9747_v29 = vld [vmem:[#allocation36_spill] sm:$0xff] }
 0x1b1   :  { %9706 = vst [vmem:[#allocation80_spill] sm:$0xff] %v8416_v2  ;;  %9707 = vst [vmem:[#allocation81_spill] sm:$0xff] %v8420_v59  ;;  %v3860_v20 = vsel %vm2396_vm5, %v8326_v28, %v8282_v34  ;;  %v3042_v42 = vsel %vm2888_vm8, %v3041_v8, %v3037_v15  ;;  %v2031_v6 = vmax.f32 %v2029_v37, %v2030_v46  ;;  %v516_v38 = vpop.xlane.xlu1 %515  ;;  %v9713_v46 = vld [vmem:[#allocation86_spill] sm:$0xff]  ;;  %v9769_v59 = vld [vmem:[#allocation92_spill] sm:$0xff] }
 0x1b2   :  { %9709 = vst [vmem:[#allocation82_spill] sm:$0xff] %v8429_v55  ;;  %539 = vmax.xlane.f32.xlu1 %v9710_v12  ;;  %536 = vmax.xlane.f32.xlu0 %v8170_v31  ;;  %v8440_v33 = vsel %vm2388_vm1, %v3042_v42, %v3033_v36  ;;  %v3861_v61 = vsel %vm2398_vm10, %v1968_v14, %v3860_v20  ;;  %v9770_v55 = vld [vmem:[#allocation94_spill] sm:$0xff] }
 0x1b3   :  { %9711 = vst [vmem:[#allocation90_spill] sm:$0xff] %v8440_v33  ;;  %v3867_v26 = vsel %vm2396_vm5, %v8332_v40, %v8285_v10  ;;  %v3104_v34 = vrot.slane %v516_v38, %v6846_v50  ;;  %v3100_v28 = vrot.slane %v513_v56, %v6850_v35  ;;  %v8449_v49 = vsel %vm2400_vm11, %v1975_v21, %v3861_v61  ;;  %v9715_v10 = vld [vmem:[#allocation106_spill] sm:$0xff]  ;;  %v9716_v40 = vld [vmem:[#allocation109_spill] sm:$0xff]  ;;  %v9719_v38 = vld [vmem:[#allocation111_spill] sm:$0xff] }
 0x1b4   :  { %9712 = vst [vmem:[#allocation67_spill] sm:$0xff] %v8449_v49  ;;  %v3868_v37 = vsel %vm2398_vm10, %v2024_v19, %v3867_v26  ;;  %v2788_v36 = vsel %vm2400_vm11, %v8173_v53, %v9713_v46  ;;  %v2795_v14 = vsel %vm2400_vm11, %v8194_v60, %v9714_v58  ;;  %v519_v15 = vpop.xlane.xlu0 %518  ;;  %v9722_v46 = vld [vmem:[#allocation117_spill] sm:$0xff]  ;;  %v9746_v53 = vld [vmem:[#allocation35_spill] sm:$0xff]  ;;  %v9767_v49 = vld [vmem:[#allocation54_spill] sm:$0xff] }
 0x1b5   :  { %v3105_v45 = vsel %vm2888_vm8, %v3104_v34, %v3100_v28  ;;  %v8462_v17 = vsel %vm2400_vm11, %v2031_v6, %v3868_v37  ;;  %v8466_v21 = vsel %vm109_vm0, %v8316_v16, %v2788_v36  ;;  %v522_v8 = vpop.xlane.xlu1 %521  ;;  %v8472_v60 = vsel %vm109_vm0, %v8321_v11, %v2795_v14  ;;  %v9718_v6 = vld [vmem:[#allocation110_spill] sm:$0xff]  ;;  %v9721_v37 = vld [vmem:[#allocation116_spill] sm:$0xff] }
 0x1b6   :  { %1246 = vadd.xlane.f32.xlu1 %v9715_v10  ;;  %1243 = vadd.xlane.f32.xlu0 %v9716_v40  ;;  %9717 = vst [vmem:[#allocation99_spill] sm:$0xff] %v8462_v17  ;;  %v3113_v19 = vrot.slane %v522_v8, %v6846_v50  ;;  %v3109_v20 = vrot.slane %v519_v15, %v6850_v35 }
 0x1b8   :  { %v3114_v42 = vsel %vm2888_vm8, %v3113_v19, %v3109_v20  ;;  %v1226_v61 = vpop.xlane.xlu0 %1225  ;;  %v9724_v19 = vld [vmem:[#allocation121_spill] sm:$0xff]  ;;  %v9725_v20 = vld [vmem:[#allocation122_spill] sm:$0xff] }
 0x1b9   :  { %v8480_v16 = vsel %vm2388_vm1, %v3114_v42, %v3105_v45  ;;  %v1229_v56 = vpop.xlane.xlu1 %1228  ;;  %v1336_v34 = vmul.f32 0.0625, %v1226_v61 }
 0x1ba   :  { %1294 = vadd.xlane.f32.xlu1 %v9718_v6  ;;  %1291 = vadd.xlane.f32.xlu0 %v9719_v38  ;;  %9720 = vst [vmem:[#allocation71_spill] sm:$0xff] %v8480_v16  ;;  %v1337_v26 = vmul.f32 0.0625, %v1229_v56  ;;  %v9749_v16 = vld [vmem:[#allocation38_spill] sm:$0xff] }
 0x1bb   :  { %v2677_v28 = vrot.slane %v1336_v34, %v6666_v47  ;;  %v9727_v34 = vld [vmem:[#allocation112_spill] sm:$0xff] }
 0x1bc   :  { %v2681_v11 = vrot.slane %v1337_v26, %v6659_v1  ;;  %v1274_v58 = vpop.xlane.xlu0 %1273 }
 0x1bd   :  { %v1277_v36 = vpop.xlane.xlu1 %1276  ;;  %v1352_v40 = vmul.f32 0.0625, %v1274_v58 }
 0x1be   :  { %1406 = vmax.xlane.f32.xlu1 %v9721_v37  ;;  %1403 = vmax.xlane.f32.xlu0 %v9722_v46  ;;  %v2682_v14 = vsel %vm2501_vm7, %v2681_v11, %v2677_v28  ;;  %v1353_v10 = vmul.f32 0.0625, %v1277_v36  ;;  %v9728_v11 = vld [vmem:[#allocation113_spill] sm:$0xff] }
 0x1bf   :  { %v8489_v45 = vsel %vm2394_vm4, %v2682_v14, %v8211_v25  ;;  %v2749_v15 = vrot.slane %v1352_v40, %v6666_v47 }
 0x1c0   :  { %9723 = vst [vmem:[#allocation107_spill] sm:$0xff] %v8489_v45  ;;  %v2753_v8 = vrot.slane %v1353_v10, %v6659_v1  ;;  %v1386_v6 = vpop.xlane.xlu0 %1385  ;;  %v9731_v10 = vld [vmem:[#allocation101_spill] sm:$0xff]  ;;  %v9774_v1 = vld [vmem:[#allocation108_spill] sm:$0xff] }
 0x1c1   :  { %v1389_v42 = vpop.xlane.xlu1 %1388  ;;  %v3307_v61 = vrot.slane %v1386_v6, %v7316_v32  ;;  %v9764_v45 = vld [vmem:[#allocation97_spill] sm:$0xff]  ;;  %v553_v18 = vsel %vm109_vm0, %v9774_v1, -inf }
 0x1c2   :  { %1454 = vmax.xlane.f32.xlu1 %v9724_v19  ;;  %1451 = vmax.xlane.f32.xlu0 %v9725_v20  ;;  %v2754_v38 = vsel %vm2501_vm7, %v2753_v8, %v2749_v15  ;;  %v3311_v56 = vrot.slane %v1389_v42, %v7313_v5  ;;  %v5692_v20 = vld [vmem:[%s9388_s0 + $0x150] sm:$0xff] }
 0x1c3   :  { %v8500_v25 = vsel %vm2394_vm4, %v2754_v38, %v8230_v52  ;;  %v9730_v52 = vld [vmem:[#allocation98_spill] sm:$0xff]  ;;  %v8528_v42 = vsel %vm109_vm0, %v5692_v20, -inf  ;;  %v9492_v20 = vmov 0.0|0.0  }
 0x1c4   :  { %9726 = vst [vmem:[#allocation120_spill] sm:$0xff] %v8500_v25  ;;  %v3312_v26 = vsel %vm3275_vm9, %v3311_v56, %v3307_v61  ;;  %v1434_v46 = vpop.xlane.xlu0 %1433  ;;  %5358 = vmatprep.subr.bf16.mxu0 %v9492_v20  ;;  %5364 = vmatprep.subr.bf16.mxu1 %v9492_v20 }
 0x1c5   :  { %v8507_v28 = vsel %vm2394_vm4, %v3312_v26, %v8241_v9  ;;  %v1437_v37 = vpop.xlane.xlu1 %1436  ;;  %v3379_v58 = vrot.slane %v1434_v46, %v7316_v32  ;;  %v5691_v9 = vld [vmem:[%s9388_s0 + $0x158] sm:$0xff] }
 0x1c6   :  { %1478 = vmax.xlane.f32.xlu1 %v9727_v34  ;;  %1475 = vmax.xlane.f32.xlu0 %v9728_v11  ;;  %9729 = vst [vmem:[#allocation30_spill] sm:$0xff] %v8507_v28  ;;  %v3383_v36 = vrot.slane %v1437_v37, %v7313_v5  ;;  %v8522_v19 = vsel %vm109_vm0, %v5691_v9, -inf  ;;  %v5693_v34 = vld [vmem:[%s9388_s0 + $0x1d8] sm:$0xff]  ;;  %v5694_v37 = vld [vmem:[%s9388_s0 + $0x1d0] sm:$0xff]  ;;  %v9748_v28 = vld [vmem:[#allocation37_spill] sm:$0xff] }
 0x1c7   :  { %v8542_v11 = vsel %vm109_vm0, %v5693_v34, -inf  ;;  %v8548_v46 = vsel %vm109_vm0, %v5694_v37, -inf  ;;  %v5696_v37 = vld [vmem:[%s9388_s0 + $0x160] sm:$0xff]  ;;  %v934_v33 = vmax.f32 %v9749_v16, %v9748_v28  ;;  %v9759_v28 = vld [vmem:[#allocation66_spill] sm:$0xff]  ;;  %v9760_v5 = vld [vmem:[#allocation72_spill] sm:$0xff]  ;;  %v962_v1 = vmax.f32 %v8528_v42, %v8522_v19 }
 0x1c8   :  { %v3384_v14 = vsel %vm3275_vm9, %v3383_v36, %v3379_v58  ;;  %v238_v15 = vpop.xlane.xlu0 %237 }
 0x1c9   :  { %v8516_v40 = vsel %vm2394_vm4, %v3384_v14, %v8277_v4  ;;  %v241_v8 = vpop.xlane.xlu1 %240  ;;  %v345_v38 = vmul.f32 0.0625, %v238_v15 }
 0x1ca   :  { %1526 = vmax.xlane.f32.xlu1 %v9730_v52  ;;  %1523 = vmax.xlane.f32.xlu0 %v9731_v10  ;;  %9732 = vst [vmem:[#allocation46_spill] sm:$0xff] %v8516_v40  ;;  %v346_v6 = vmul.f32 0.0625, %v241_v8  ;;  %v9736_v10 = vld [vmem:[#allocation118_spill] sm:$0xff]  ;;  %v9737_v8 = vld [vmem:[#allocation119_spill] sm:$0xff] }
 0x1cb   :  { %v2292_v56 = vrot.slane %v345_v38, %v6633_v0 }
 0x1cc   :  { %v2296_v4 = vrot.slane %v346_v6, %v6638_v62  ;;  %v8536_v26 = vpop.xlane.xlu0 %285  ;;  %v9739_v6 = vld [vmem:[#allocation124_spill] sm:$0xff]  ;;  %v935_v62 = vrot.slane %v934_v33, 4 }
 0x1cd   :  { %v8534_v61 = vpop.xlane.xlu1 %288  ;;  %9734 = vst [vmem:[#allocation51_spill] sm:$0xff] %v8536_v26  ;;  %v9757_v26 = vld [vmem:[#allocation64_spill] sm:$0xff] }
 0x1ce   :  { %497 = vmax.xlane.f32.xlu1 %v8522_v19  ;;  %494 = vmax.xlane.f32.xlu0 %v8528_v42  ;;  %9733 = vst [vmem:[#allocation33_spill] sm:$0xff] %v8534_v61  ;;  %v2297_v36 = vsel %vm2107_vm6, %v2296_v4, %v2292_v56  ;;  %v5695_v56 = vld [vmem:[%s9388_s0 + $0x168] sm:$0xff]  ;;  %v9758_v61 = vld [vmem:[#allocation65_spill] sm:$0xff]  ;;  %s5722_s0 = smov 32  }
 0x1cf   :  { %v8553_v58 = vsel %vm2396_vm5, %v2297_v36, %v8304_v43  ;;  %v9738_v43 = vld [vmem:[#allocation123_spill] sm:$0xff]  ;;  %v8579_v34 = vsel %vm109_vm0, %v5695_v56, -inf  ;;  %v8585_v36 = vsel %vm109_vm0, %v5696_v37, -inf  ;;  %v9745_v56 = vld [vmem:[#allocation56_spill] sm:$0xff]  ;;  %v927_v37 = vmax.f32 %v9747_v29, %v9746_v53  ;;  %v9753_v29 = vld [vmem:[#allocation41_spill] sm:$0xff] }
 0x1d0   :  { %9735 = vst [vmem:[#allocation73_spill] sm:$0xff] %v8553_v58  ;;  %v8559_v52 = vpop.xlane.xlu0 %404  ;;  %v8599_v20 = vsel %vm109_vm0, %v9745_v56, -inf  ;;  %v9751_v56 = vld [vmem:[#allocation39_spill] sm:$0xff]  ;;  %v9754_v53 = vld [vmem:[#allocation42_spill] sm:$0xff]  ;;  %v941_v32 = vmax.f32 %v9758_v61, %v9757_v26  ;;  %v505_v61 = vsel %vm109_vm0, %v9764_v45, -inf  ;;  %v936_v26 = vmax.f32 %v934_v33, %v935_v62  ;;  %v9773_v33 = vld [vmem:[#allocation100_spill] sm:$0xff] }
 0x1d1   :  { %v8557_v14 = vpop.xlane.xlu1 %407  ;;  %v556_v45 = vsel %vm109_vm0, %v9773_v33, -inf }
 0x1d2   :  { %545 = vmax.xlane.f32.xlu1 %v8542_v11  ;;  %542 = vmax.xlane.f32.xlu0 %v8548_v46 }
 0x1d4   :  { %v8565_v9 = vpop.xlane.xlu0 %452 }
 0x1d5   :  { %v8563_v15 = vpop.xlane.xlu1 %455 }
 0x1d6   :  { %1484 = vmax.xlane.f32.xlu1 %v9736_v10  ;;  %1481 = vmax.xlane.f32.xlu0 %v9737_v8 }
 0x1d9   :  { %v8571_v38 = vpop.xlane.xlu1 %479  ;;  %v8573_v4 = vpop.xlane.xlu0 %476 }
 0x1da   :  { %1532 = vmax.xlane.f32.xlu1 %v9738_v43  ;;  %1529 = vmax.xlane.f32.xlu0 %v9739_v6  ;;  %9740 = vst [vmem:[#allocation93_spill] sm:$0xff] %v8571_v38  ;;  %9741 = vst [vmem:[#allocation74_spill] sm:$0xff] %v8573_v4  ;;  %v9744_v43 = vld [vmem:[#allocation55_spill] sm:$0xff]  ;;  %v990_v4 = vmax.f32 %v9754_v53, %v9753_v29  ;;  %v9763_v53 = vld [vmem:[#allocation96_spill] sm:$0xff] }
 0x1db   :  { %v8595_v6 = vsel %vm109_vm0, %v9744_v43, -inf  ;;  %v928_v43 = vrot.slane %v927_v37, 4  ;;  %v508_v25 = vsel %vm109_vm0, %v9763_v53, -inf }
 0x1dd   :  { %v8589_v10 = vpop.xlane.xlu1 %527  ;;  %v8591_v8 = vpop.xlane.xlu0 %524  ;;  %v929_v16 = vmax.f32 %v927_v37, %v928_v43  ;;  %v942_v37 = vrot.slane %v941_v32, 4  ;;  %v9765_v43 = vld [vmem:[#allocation9_spill] sm:$0xff] }
 0x1de   :  { %503 = vmax.xlane.f32.xlu1 %v8579_v34  ;;  %500 = vmax.xlane.f32.xlu0 %v8585_v36  ;;  %9742 = vst [vmem:[#allocation68_spill] sm:$0xff] %v8589_v10  ;;  %9743 = vst [vmem:[#allocation7_spill] sm:$0xff] %v8591_v8  ;;  %v9750_v8 = vld [vmem:[#allocation47_spill] sm:$0xff]  ;;  %v9752_v10 = vld [vmem:[#allocation40_spill] sm:$0xff] }
 0x1df   :  { %v983_v58 = vmax.f32 %v9752_v10, %v9751_v56 }
 0x1e1   :  { %v8605_v30 = vpop.xlane.xlu1 %1234  ;;  %v8607_v40 = vpop.xlane.xlu0 %1231  ;;  %v984_v10 = vrot.slane %v983_v58, 4 }
 0x1e2   :  { %551 = vmax.xlane.f32.xlu1 %v8595_v6  ;;  %548 = vmax.xlane.f32.xlu0 %v8599_v20 }
 0x1e3   :  { %v985_v53 = vmax.f32 %v983_v58, %v984_v10 }
 0x1e5   :  { %v8617_v38 = vpop.xlane.xlu1 %1282  ;;  %v8619_v0 = vpop.xlane.xlu0 %1279 }
 0x1e6   :  { %1490 = vmax.xlane.f32.xlu1 %v8177_v24  ;;  %1487 = vmax.xlane.f32.xlu0 %v9750_v8  ;;  %9755 = vst [vmem:[#allocation26_spill] sm:$0xff] %v8617_v38  ;;  %9756 = vst [vmem:[#allocation8_spill] sm:$0xff] %v8619_v0  ;;  %v997_v24 = vmax.f32 %v9760_v5, %v9759_v28  ;;  %v991_v8 = vrot.slane %v990_v4, 4  ;;  %v602_v5 = vrot.slane %v9765_v43, 4  ;;  %v9766_v28 = vld [vmem:[#allocation10_spill] sm:$0xff]  ;;  %v930_v0 = vrot.slane %v929_v16, 2 }
 0x1e8   :  { %v992_v38 = vmax.f32 %v990_v4, %v991_v8  ;;  %v8654_v58 = vadd.f32 %v602_v5, %v9765_v43 }
 0x1e9   :  { %v8627_v56 = vpop.xlane.xlu1 %1394  ;;  %v8629_v29 = vpop.xlane.xlu0 %1391 }
 0x1ea   :  { %1538 = vmax.xlane.f32.xlu1 %v8191_v39  ;;  %1535 = vmax.xlane.f32.xlu0 %v8198_v3  ;;  %9761 = vst [vmem:[#allocation27_spill] sm:$0xff] %v8627_v56  ;;  %9762 = vst [vmem:[#allocation34_spill] sm:$0xff] %v8629_v29  ;;  %v658_v39 = vrot.slane %v9766_v28, 4  ;;  %v9768_v3 = vld [vmem:[#allocation91_spill] sm:$0xff]  ;;  %v1004_v56 = vmax.f32 %v9770_v55, %v9769_v59  ;;  %v998_v29 = vrot.slane %v997_v24, 4 }
 0x1eb   :  { %v948_v17 = vmax.f32 %v9768_v3, %v9767_v49  ;;  %v937_v49 = vrot.slane %v936_v26, 2  ;;  %v943_v3 = vmax.f32 %v941_v32, %v942_v37  ;;  %v955_v59 = vmax.f32 %v9703_v44, %v9702_v41 }
 0x1ec   :  { %v1011_v55 = vmax.f32 %v8170_v31, %v9710_v12  ;;  %v8657_v4 = vadd.f32 %v658_v39, %v9766_v28  ;;  %v1005_v8 = vrot.slane %v1004_v56, 4  ;;  %v999_v33 = vmax.f32 %v997_v24, %v998_v29 }
 0x1ed   :  { %v8641_v47 = vpop.xlane.xlu1 %1442  ;;  %v8643_v62 = vpop.xlane.xlu0 %1439  ;;  %v949_v10 = vrot.slane %v948_v17, 4  ;;  %v931_v32 = vmax.f32 %v929_v16, %v930_v0  ;;  %v986_v37 = vrot.slane %v985_v53, 2  ;;  %v993_v41 = vrot.slane %v992_v38, 2 }
 0x1ee   :  { %509 = vmax.xlane.f32.xlu1 %v508_v25  ;;  %506 = vmax.xlane.f32.xlu0 %v505_v61  ;;  %9771 = vst [vmem:[#allocation126_spill] sm:$0xff] %v8641_v47  ;;  %9772 = vst [vmem:[#allocation45_spill] sm:$0xff] %v8643_v62  ;;  %v1018_v31 = vmax.f32 %v8548_v46, %v8542_v11  ;;  %v938_v43 = vmax.f32 %v936_v26, %v937_v49  ;;  %v944_v5 = vrot.slane %v943_v3, 2 }
 0x1ef   :  { %v956_v28 = vrot.slane %v955_v59, 4  ;;  %v1012_v39 = vrot.slane %v1011_v55, 4  ;;  %v660_v19 = vrot.slane %v8657_v4, 2  ;;  %v950_v42 = vmax.f32 %v948_v17, %v949_v10 }
 0x1f0   :  { %v1006_v29 = vmax.f32 %v1004_v56, %v1005_v8  ;;  %v1000_v0 = vrot.slane %v999_v33, 2  ;;  %v963_v16 = vrot.slane %v962_v1, 4  ;;  %v969_v62 = vmax.f32 %v8585_v36, %v8579_v34 }
 0x1f1   :  { %v8663_v44 = vpop.xlane.xlu1 %1460  ;;  %v8665_v12 = vpop.xlane.xlu0 %1457  ;;  %v1025_v11 = vmax.f32 %v8599_v20, %v8595_v6  ;;  %v932_v46 = vrot.slane %v931_v32, 1  ;;  %v987_v26 = vmax.f32 %v985_v53, %v986_v37  ;;  %v994_v49 = vmax.f32 %v992_v38, %v993_v41 }
 0x1f2   :  { %557 = vmax.xlane.f32.xlu1 %v556_v45  ;;  %554 = vmax.xlane.f32.xlu0 %v553_v18  ;;  %9775 = vst [vmem:[#allocation62_spill] sm:$0xff] %v8663_v44  ;;  %9776 = vst [vmem:[#allocation77_spill] sm:$0xff] %v8665_v12  ;;  %v1019_v24 = vrot.slane %v1018_v31, 4  ;;  %v939_v56 = vrot.slane %v938_v43, 1  ;;  %v945_v10 = vmax.f32 %v943_v3, %v944_v5  ;;  %v951_v34 = vrot.slane %v950_v42, 2 }
 0x1f3   :  { %v957_v8 = vmax.f32 %v955_v59, %v956_v28  ;;  %v1013_v44 = vmax.f32 %v1011_v55, %v1012_v39  ;;  %v1007_v36 = vrot.slane %v1006_v29, 2  ;;  %v976_v47 = vmax.f32 %v505_v61, %v508_v25 }
 0x1f4   :  { %v1032_v20 = vmax.f32 %v553_v18, %v556_v45  ;;  %v1001_v6 = vmax.f32 %v999_v33, %v1000_v0  ;;  %v970_v2 = vrot.slane %v969_v62, 4  ;;  %v933_v38 = vmax.f32 %v931_v32, %v932_v46 }
 0x1f5   :  { %v8675_v12 = vpop.xlane.xlu1 %1466  ;;  %v8677_v17 = vpop.xlane.xlu0 %1463  ;;  %v988_v53 = vrot.slane %v987_v26, 1  ;;  %v995_v37 = vrot.slane %v994_v49, 1  ;;  %v1020_v41 = vmax.f32 %v1018_v31, %v1019_v24  ;;  %v940_v59 = vmax.f32 %v938_v43, %v939_v56 }
 0x1f6   :  { %1496 = vmax.xlane.f32.xlu1 %v8237_v13  ;;  %1493 = vmax.xlane.f32.xlu0 %v8245_v48  ;;  %9777 = vst [vmem:[#allocation103_spill] sm:$0xff] %v8677_v17  ;;  %v964_v13 = vmax.f32 %v962_v1, %v963_v16  ;;  %v1026_v48 = vrot.slane %v1025_v11, 4  ;;  %v946_v55 = vrot.slane %v945_v10, 1  ;;  %v958_v25 = vrot.slane %v957_v8, 2 }
 0x1f7   :  { %v1014_v18 = vrot.slane %v1013_v44, 2  ;;  %v952_v61 = vmax.f32 %v950_v42, %v951_v34  ;;  %v1008_v45 = vmax.f32 %v1006_v29, %v1007_v36  ;;  %v977_v33 = vrot.slane %v976_v47, 4 }
 0x1f8   :  { %v1033_v1 = vrot.slane %v1032_v20, 4  ;;  %v1002_v5 = vrot.slane %v1001_v6, 1  ;;  %v971_v28 = vmax.f32 %v969_v62, %v970_v2  ;;  %v661_v32 = vadd.f32 %v660_v19, %v8657_v4 }
 0x1f9   :  { %v8681_v17 = vpop.xlane.xlu1 %1508  ;;  %v8683_v3 = vpop.xlane.xlu0 %1505  ;;  %v989_v31 = vmax.f32 %v987_v26, %v988_v53  ;;  %v996_v39 = vmax.f32 %v994_v49, %v995_v37  ;;  %v1021_v43 = vrot.slane %v1020_v41, 2  ;;  %v3784_v42 = vsel %vm2388_vm1, %v940_v59, %v933_v38 }
 0x1fa   :  { %1544 = vmax.xlane.f32.xlu1 %v8249_v51  ;;  %1541 = vmax.xlane.f32.xlu0 %v8253_v57  ;;  %v965_v51 = vrot.slane %v964_v13, 2  ;;  %v1027_v57 = vmax.f32 %v1025_v11, %v1026_v48  ;;  %v947_v29 = vmax.f32 %v945_v10, %v946_v55  ;;  %v959_v16 = vmax.f32 %v957_v8, %v958_v25 }
 0x1fb   :  { %v1015_v46 = vmax.f32 %v1013_v44, %v1014_v18  ;;  %v953_v2 = vrot.slane %v952_v61, 1  ;;  %v1009_v62 = vrot.slane %v1008_v45, 1  ;;  %v978_v11 = vmax.f32 %v976_v47, %v977_v33 }
 0x1fc   :  { %v1003_v56 = vmax.f32 %v1001_v6, %v1002_v5  ;;  %v972_v34 = vrot.slane %v971_v28, 2  ;;  %v1028_v4 = vrot.slane %v1027_v57, 2  ;;  %v9778_v19 = vrot.slane %v8654_v58, 2 }
 0x1fd   :  { %v8688_v24 = vpop.xlane.xlu1 %1514  ;;  %v8690_v0 = vpop.xlane.xlu0 %1511  ;;  %v3791_v49 = vsel %vm2388_vm1, %v996_v39, %v989_v31  ;;  %v1022_v10 = vmax.f32 %v1020_v41, %v1021_v43  ;;  %v662_v47 = vrot.slane %v661_v32, 1  ;;  %v3785_v36 = vsel %vm2390_vm2, %v947_v29, %v3784_v42 }
 0x1fe   :  { %1502 = vmax.xlane.f32.xlu1 %v8264_v54  ;;  %1499 = vmax.xlane.f32.xlu0 %v8268_v7  ;;  %v1034_v54 = vmax.f32 %v1032_v20, %v1033_v1  ;;  %v966_v7 = vmax.f32 %v964_v13, %v965_v51  ;;  %v605_v26 = vadd.f32 %v9778_v19, %v8654_v58  ;;  %v960_v20 = vrot.slane %v959_v16, 1 }
 0x1ff   :  { %v1016_v6 = vrot.slane %v1015_v46, 1  ;;  %v954_v13 = vmax.f32 %v952_v61, %v953_v2  ;;  %v979_v48 = vrot.slane %v978_v11, 2  ;;  %v3792_v38 = vsel %vm2390_vm2, %v1003_v56, %v3791_v49 }
 0x200   :  { %v967_v53 = vrot.slane %v966_v7, 1  ;;  %v973_v58 = vmax.f32 %v971_v28, %v972_v34  ;;  %v1029_v37 = vmax.f32 %v1027_v57, %v1028_v4  ;;  %v1023_v59 = vrot.slane %v1022_v10, 1 }
 0x201   :  { %v8699_v44 = vpop.xlane.xlu1 %246  ;;  %v8701_v8 = vpop.xlane.xlu0 %243  ;;  %v2942_v41 = vrot.slane %v8557_v14, %v6846_v50  ;;  %v2938_v55 = vrot.slane %v8559_v52, %v6850_v35  ;;  %v606_v61 = vrot.slane %v605_v26, 1  ;;  %v1017_v33 = vmax.f32 %v1015_v46, %v1016_v6 }
 0x202   :  { %1550 = vmax.xlane.f32.xlu1 %v8289_v27  ;;  %1547 = vmax.xlane.f32.xlu0 %v8297_v63  ;;  %v1010_v27 = vmax.f32 %v1008_v45, %v1009_v62  ;;  %v1035_v63 = vrot.slane %v1034_v54, 2  ;;  %v961_v45 = vmax.f32 %v959_v16, %v960_v20  ;;  %v3786_v1 = vsel %vm2392_vm3, %v954_v13, %v3785_v36 }
 0x203   :  { %v980_v51 = vmax.f32 %v978_v11, %v979_v48  ;;  %v663_v57 = vadd.f32 %v662_v47, %v661_v32  ;;  %v968_v31 = vmax.f32 %v966_v7, %v967_v53  ;;  %v974_v39 = vrot.slane %v973_v58, 1 }
 0x204   :  { %v3793_v5 = vsel %vm2392_vm3, %v1010_v27, %v3792_v38  ;;  %v1036_v28 = vmax.f32 %v1034_v54, %v1035_v63  ;;  %v1030_v14 = vrot.slane %v1029_v37, 1  ;;  %v1024_v43 = vmax.f32 %v1022_v10, %v1023_v59 }
 0x205   :  { %v8709_v25 = vpop.xlane.xlu1 %294  ;;  %v8711_v18 = vpop.xlane.xlu0 %291  ;;  %v2943_v52 = vsel %vm2888_vm8, %v2942_v41, %v2938_v55  ;;  %v3014_v42 = vrot.slane %v8563_v15, %v6846_v50  ;;  %v3010_v29 = vrot.slane %v8565_v9, %v6850_v35  ;;  %v3787_v2 = vsel %vm2394_vm4, %v961_v45, %v3786_v1  ;;  %v9779_v55 = vld [vmem:[#allocation50_spill] sm:$0xff] }
 0x206   :  { %v3794_v62 = vsel %vm2394_vm4, %v1017_v33, %v3793_v5  ;;  %v607_v54 = vadd.f32 %v606_v61, %v605_v26  ;;  %v981_v56 = vrot.slane %v980_v51, 1  ;;  %v1037_v7 = vrot.slane %v1036_v28, 1  ;;  %v9782_v33 = vld [vmem:[#allocation6_spill] sm:$0xff] }
 0x207   :  { %v3174_v15 = vsel %vm2398_vm10, %v2943_v52, %v8346_v23  ;;  %v975_v34 = vmax.f32 %v973_v58, %v974_v39  ;;  %v1031_v4 = vmax.f32 %v1029_v37, %v1030_v14  ;;  %v3015_v19 = vsel %vm2888_vm8, %v3014_v42, %v3010_v29  ;;  %v9787_v52 = vld [vmem:[#allocation79_spill] sm:$0xff] }
 0x208   :  { %v3788_v47 = vsel %vm2396_vm5, %v968_v31, %v3787_v2  ;;  %v3795_v36 = vsel %vm2396_vm5, %v1024_v43, %v3794_v62  ;;  %v797_v20 = vmul.f32 0.0625, %v663_v57  ;;  %v789_v27 = vmul.f32 0.0625, %v607_v54  ;;  %v9784_v31 = vld [vmem:[#allocation5_spill] sm:$0xff]  ;;  %v9786_v43 = vld [vmem:[#allocation80_spill] sm:$0xff] }
 0x209   :  { %v414_v16 = vpop.xlane.xlu1 %413  ;;  %v411_v46 = vpop.xlane.xlu0 %410  ;;  %v982_v48 = vmax.f32 %v980_v51, %v981_v56  ;;  %v1038_v63 = vmax.f32 %v1036_v28, %v1037_v7  ;;  %v3181_v38 = vsel %vm2398_vm10, %v3015_v19, %v8379_v22  ;;  %v3789_v58 = vsel %vm2398_vm10, %v975_v34, %v3788_v47  ;;  %v9793_v62 = vld [vmem:[#allocation17_spill] sm:$0xff]  ;;  %v9795_v56 = vld [vmem:[#allocation8_spill] sm:$0xff] }
 0x20a   :  { %v2951_v32 = vrot.slane %v414_v16, %v6846_v50  ;;  %v2947_v11 = vrot.slane %v411_v46, %v6850_v35  ;;  %v3796_v37 = vsel %vm2398_vm10, %v1031_v4, %v3795_v36  ;;  %v8756_v1 = vsel %vm2398_vm10, %v797_v20, %v9782_v33  ;;  %v9792_v46 = vld [vmem:[#allocation16_spill] sm:$0xff]  ;;  %v9797_v19 = vld [vmem:[#allocation81_spill] sm:$0xff] }
 0x20b   :  { %9783 = vst [vmem:[#allocation63_spill] sm:$0xff] %v8756_v1  ;;  %v1339_v5 = vmul.f32 0.0625, %v8605_v30  ;;  %v1338_v51 = vmul.f32 0.0625, %v8607_v40  ;;  %v3790_v28 = vsel %vm2400_vm11, %v982_v48, %v3789_v58  ;;  %v3797_v57 = vsel %vm2400_vm11, %v1038_v63, %v3796_v37  ;;  %v9789_v30 = vld [vmem:[#allocation85_spill] sm:$0xff]  ;;  %v9790_v40 = vld [vmem:[#allocation84_spill] sm:$0xff]  ;;  %v9799_v63 = vld [vmem:[#allocation99_spill] sm:$0xff] }
 0x20c   :  { %v2952_v9 = vsel %vm2888_vm8, %v2951_v32, %v2947_v11  ;;  %v8764_v39 = vsel %vm2398_vm10, %v789_v27, %v9784_v31  ;;  %v9788_v42 = vpack.i.bf16 %v9786_v43, %v9787_v52  ;;  %v9791_v29 = vpack.i.bf16 %v9789_v30, %v9790_v40  ;;  %v9794_v11 = vld [vmem:[#allocation26_spill] sm:$0xff]  ;;  %v9802_v58 = vld [vmem:[#allocation107_spill] sm:$0xff]  ;;  %v9803_v31 = vld [vmem:[#allocation120_spill] sm:$0xff] }
 0x20d   :  { %v462_v49 = vpop.xlane.xlu1 %461  ;;  %v459_v10 = vpop.xlane.xlu0 %458  ;;  %v3175_v26 = vsel %vm2400_vm11, %v2952_v9, %v3174_v15  ;;  %9785 = vst [vmem:[#allocation78_spill] sm:$0xff] %v8764_v39  ;;  %v5471_v16 = vpack.i.bf16 %v3797_v57, %v3790_v28  ;;  %v2690_v2 = vrot.slane %v1339_v5, %v9792_v46  ;;  %v2686_v32 = vrot.slane %v1338_v51, %v9793_v62  ;;  %v9796_v9 = vld [vmem:[#allocation82_spill] sm:$0xff] }
 0x20e   :  { %v3023_v6 = vrot.slane %v462_v49, %v6846_v50  ;;  %v3019_v13 = vrot.slane %v459_v10, %v6850_v35  ;;  %v8735_v23 = vsel %vm3592_vm12, %v8466_v21, %v3175_v26  ;;  %v9780_v21 = vld [vmem:[#allocation49_spill] sm:$0xff]  ;;  %v1355_v54 = vmul.f32 0.0625, %v9794_v11 }
 0x20f   :  { %v9781_v61 = vpack.i.bf16 %v9779_v55, %v9780_v21  ;;  %v1354_v7 = vmul.f32 0.0625, %v9795_v56  ;;  %v9512_v15 = vmov 0.0   ;;  %v9798_v49 = vpack.i.bf16 %v9796_v9, %v9797_v19 }
 0x210   :  { %v3024_v53 = vsel %vm2888_vm8, %v3023_v6, %v3019_v13  ;;  %5282 = vmatprep.mubr.msk.f32.mxu0 %vm5725_vm13, %v9512_v15  ;;  %5293 = vmatprep.mubr.msk.f32.mxu1 %vm5725_vm13, %v9512_v15  ;;  %v2691_v36 = vsel %vm2501_vm7, %v2690_v2, %v2686_v32  ;;  %v2762_v26 = vrot.slane %v1355_v54, %v9792_v46  ;;  %v5727_v2 = vmov 0   ;;  %v9804_v54 = vld [vmem:[#allocation43_spill] sm:$0xff] }
 0x211   :  { %v3182_v45 = vsel %vm2400_vm11, %v3024_v53, %v3181_v38  ;;  %v2758_v20 = vrot.slane %v1354_v7, %v9793_v62  ;;  %v9800_v38 = vld [vmem:[#allocation67_spill] sm:$0xff]  ;;  %v2800_v37 = vsel %vm2396_vm5, %v2691_v36, %v9802_v58  ;;  %5481 = vset.pattern.permute.xlu0 %v5727_v2  ;;  %5482 = vset.pattern.permute.xlu1 %v5727_v2  ;;  %v9805_v7 = vld [vmem:[#allocation44_spill] sm:$0xff]  ;;  %v347_v9 = vmul.f32 0.0625, %v8701_v8 }
 0x212   :  { %v8742_v59 = vpop.xlane.xlu1 %485  ;;  %v8744_v41 = vpop.xlane.xlu0 %482  ;;  %v8752_v22 = vsel %vm3592_vm12, %v8472_v60, %v3182_v45  ;;  %v9801_v53 = vpack.i.bf16 %v9799_v63, %v9800_v38  ;;  %v9810_v63 = vld [vmem:[#allocation14_spill] sm:$0xff]  ;;  %v363_v8 = vmul.f32 0.0625, %v8711_v18 }
 0x213   :  { %5457 = vrot.lane.b32.xlu1 %v9781_v61, %s5722_s0  ;;  %v2763_v45 = vsel %vm2501_vm7, %v2762_v26, %v2758_v20  ;;  %v2301_v38 = vrot.slane %v347_v9, %v9810_v63 }
 0x214   :  { %v2807_v43 = vsel %vm2396_vm5, %v2763_v45, %v9803_v31  ;;  %v9813_v31 = vld [vmem:[#allocation74_spill] sm:$0xff] }
 0x216   :  { %v8766_v14 = vpop.xlane.xlu1 %533  ;;  %v8768_v60 = vpop.xlane.xlu0 %530 }
 0x217   :  { %5462 = vrot.lane.b32.xlu1 %v9788_v42, %s5723_s19 }
 0x218   :  { %5452 = vrot.lane.b32.xlu0 %v9791_v29, %s5724_s20  ;;  %v3895_v29 = vld [vmem:[%s9391_s3] sm:$0xff] }
 0x21a   :  { %v1241_v34 = vpop.xlane.xlu1 %1240  ;;  %v1238_v4 = vpop.xlane.xlu0 %1237 }
 0x21b   :  { %5467 = vrot.lane.b32.xlu1 %v9798_v49, %s5724_s20  ;;  %v1341_v10 = vmul.f32 0.0625, %v1241_v34  ;;  %v1340_v47 = vmul.f32 0.0625, %v1238_v4  ;;  %v348_v4 = vmul.f32 0.0625, %v8699_v44  ;;  %v9807_v49 = vld [vmem:[#allocation33_spill] sm:$0xff]  ;;  %v364_v44 = vmul.f32 0.0625, %v8709_v25 }
 0x21c   :  { %5472 = vrot.lane.b32.xlu0 %v5471_v16, %s5722_s0  ;;  %v3976_v16 = vld [vmem:[%s9393_s5] sm:$0xff]  ;;  %s5737_s0 = smov 125  }
 0x21d   :  { %v2699_v6 = vrot.slane %v1341_v10, %v9792_v46  ;;  %v2695_v13 = vrot.slane %v1340_v47, %v9793_v62  ;;  %v362_v10 = vmul.f32 0.0625, %v9807_v49  ;;  %v9808_v47 = vld [vmem:[#allocation51_spill] sm:$0xff] }
 0x21e   :  { %v1289_v27 = vpop.xlane.xlu1 %1288  ;;  %v1286_v48 = vpop.xlane.xlu0 %1285  ;;  %v361_v36 = vmul.f32 0.0625, %v9808_v47 }
 0x21f   :  { %5477 = vrot.lane.b32.xlu1 %v9801_v53, %s5723_s19  ;;  %v2700_v55 = vsel %vm2501_vm7, %v2699_v6, %v2695_v13  ;;  %v1357_v21 = vmul.f32 0.0625, %v1289_v27  ;;  %v1356_v61 = vmul.f32 0.0625, %v1286_v48  ;;  %v9809_v27 = vld [vmem:[#allocation15_spill] sm:$0xff]  ;;  %s5738_s19 = smov 124  }
 0x220   :  { %v8802_v33 = vsel %vm2398_vm10, %v2700_v55, %v2800_v37  ;;  %3898 = vperm.xlu0 %5481, %v3895_v29   ;;  %v2305_v48 = vrot.slane %v348_v4, %v9809_v27  ;;  %v2368_v58 = vrot.slane %v362_v10, %v9809_v27  ;;  %v2364_v37 = vrot.slane %v361_v36, %v9810_v63  ;;  %v9814_v4 = vld [vmem:[#allocation73_spill] sm:$0xff] }
 0x221   :  { %v2771_v5 = vrot.slane %v1357_v21, %v9792_v46  ;;  %v2767_v51 = vrot.slane %v1356_v61, %v9793_v62  ;;  %v9812_v61 = vld [vmem:[#allocation93_spill] sm:$0xff]  ;;  %v2377_v18 = vrot.slane %v364_v44, %v9809_v27  ;;  %v9817_v44 = vld [vmem:[#allocation48_spill] sm:$0xff] }
 0x222   :  { %v8806_v28 = vpop.xlane.xlu1 %1400  ;;  %v8808_v57 = vpop.xlane.xlu0 %1397  ;;  %v3050_v45 = vrot.slane %v9812_v61, %v6846_v50  ;;  %v2306_v25 = vsel %vm2107_vm6, %v2305_v48, %v2301_v38  ;;  %v2369_v2 = vsel %vm2107_vm6, %v2368_v58, %v2364_v37  ;;  %v3131_v37 = vrot.slane %v8766_v14, %v6846_v50 }
 0x223   :  { %v2772_v52 = vsel %vm2501_vm7, %v2771_v5, %v2767_v51  ;;  %3979 = vperm.xlu1 %5482, %v3976_v16   ;;  %v2414_v9 = vsel %vm2398_vm10, %v2306_v25, %v9814_v4 }
 0x224   :  { %v8814_v42 = vsel %vm2398_vm10, %v2772_v52, %v2807_v43  ;;  %v3046_v43 = vrot.slane %v9813_v31, %v6850_v35  ;;  %v2373_v52 = vrot.slane %v363_v8, %v9810_v63  ;;  %v2420_v8 = vsel %vm2396_vm5, %v2369_v2, %v9817_v44 }
 0x225   :  { %v3325_v44 = vrot.slane %v8808_v57, %v9805_v7 }
 0x226   :  { %v8816_v30 = vpop.xlane.xlu1 %1448  ;;  %v8818_v40 = vpop.xlane.xlu0 %1445  ;;  %v3051_v36 = vsel %vm2888_vm8, %v3050_v45, %v3046_v43 }
 0x22a   :  { %v1473_v32 = vpop.xlane.xlu1 %1472  ;;  %v1470_v11 = vpop.xlane.xlu0 %1469 }
 0x22b   :  { %v3437_v56 = vrot.slane %v1473_v32, %v9804_v54  ;;  %v3433_v34 = vrot.slane %v1470_v11, %v9805_v7  ;;  %v3059_v32 = vrot.slane %v8742_v59, %v6846_v50  ;;  %v3055_v11 = vrot.slane %v8744_v41, %v6850_v35  ;;  %v9815_v59 = vld [vmem:[#allocation68_spill] sm:$0xff]  ;;  %v9816_v41 = vld [vmem:[#allocation7_spill] sm:$0xff] }
 0x22d   :  { %v8831_v19 = vsel %vm3275_vm9, %v3437_v56, %v3433_v34  ;;  %v3060_v58 = vsel %vm2888_vm8, %v3059_v32, %v3055_v11  ;;  %v9819_v11 = vld [vmem:[#allocation71_spill] sm:$0xff] }
 0x22e   :  { %9806 = vst [vmem:[#allocation59_spill] sm:$0xff] %v8831_v19  ;;  %v1521_v26 = vpop.xlane.xlu1 %1520  ;;  %v1518_v20 = vpop.xlane.xlu0 %1517 }
 0x22f   :  { %v3509_v6 = vrot.slane %v1521_v26, %v9804_v54  ;;  %v3505_v13 = vrot.slane %v1518_v20, %v9805_v7  ;;  %v2378_v26 = vsel %vm2107_vm6, %v2377_v18, %v2373_v52 }
 0x230   :  { %v2421_v45 = vsel %vm2398_vm10, %v2378_v26, %v2420_v8  ;;  %v9820_v26 = vld [vmem:[#allocation27_spill] sm:$0xff] }
 0x231   :  { %v8842_v53 = vsel %vm3275_vm9, %v3509_v6, %v3505_v13  ;;  %v3122_v6 = vrot.slane %v9815_v59, %v6846_v50  ;;  %v3118_v13 = vrot.slane %v9816_v41, %v6850_v35  ;;  %v3320_v59 = vrot.slane %v9820_v26, %v9804_v54 }
 0x232   :  { %9811 = vst [vmem:[#allocation75_spill] sm:$0xff] %v8842_v53  ;;  %v253_v55 = vpop.xlane.xlu1 %252  ;;  %v250_v21 = vpop.xlane.xlu0 %249 }
 0x233   :  { %v350_v5 = vmul.f32 0.0625, %v253_v55  ;;  %v349_v51 = vmul.f32 0.0625, %v250_v21  ;;  %v3127_v55 = vrot.slane %v8768_v60, %v6850_v35  ;;  %v3123_v14 = vsel %vm2888_vm8, %v3122_v6, %v3118_v13  ;;  %v9821_v6 = vld [vmem:[#allocation34_spill] sm:$0xff] }
 0x234   :  { %v3316_v41 = vrot.slane %v9821_v6, %v9805_v7 }
 0x235   :  { %v2314_v29 = vrot.slane %v350_v5, %v9809_v27  ;;  %v2310_v16 = vrot.slane %v349_v51, %v9810_v63  ;;  %v9818_v51 = vld [vmem:[#allocation90_spill] sm:$0xff]  ;;  %v3132_v18 = vsel %vm2888_vm8, %v3131_v37, %v3127_v55 }
 0x236   :  { %v301_v56 = vpop.xlane.xlu1 %300  ;;  %v298_v34 = vpop.xlane.xlu0 %297  ;;  %v3184_v31 = vsel %vm2390_vm2, %v3051_v36, %v9818_v51 }
 0x237   :  { %v2315_v49 = vsel %vm2107_vm6, %v2314_v29, %v2310_v16  ;;  %v366_v10 = vmul.f32 0.0625, %v301_v56  ;;  %v365_v47 = vmul.f32 0.0625, %v298_v34  ;;  %v3185_v25 = vsel %vm2392_vm3, %v3060_v58, %v3184_v31 }
 0x238   :  { %v2415_v20 = vsel %vm2400_vm11, %v2315_v49, %v2414_v9  ;;  %v3191_v56 = vsel %vm2390_vm2, %v3123_v14, %v9819_v11 }
 0x239   :  { %v2386_v48 = vrot.slane %v366_v10, %v9809_v27  ;;  %v2382_v38 = vrot.slane %v365_v47, %v9810_v63  ;;  %v3192_v34 = vsel %vm2392_vm3, %v3132_v18, %v3191_v56 }
 0x23b   :  { %v492_v21 = vpop.xlane.xlu1 %491  ;;  %v489_v61 = vpop.xlane.xlu0 %488  ;;  %v2387_v5 = vsel %vm2107_vm6, %v2386_v48, %v2382_v38  ;;  %v3329_v38 = vrot.slane %v8806_v28, %v9804_v54 }
 0x23c   :  { %v3068_v27 = vrot.slane %v492_v21, %v6846_v50  ;;  %v3064_v63 = vrot.slane %v489_v61, %v6850_v35  ;;  %v2422_v43 = vsel %vm2400_vm11, %v2387_v5, %v2421_v45  ;;  %v3321_v61 = vsel %vm3275_vm9, %v3320_v59, %v3316_v41  ;;  %v9822_v45 = vld [vmem:[#allocation126_spill] sm:$0xff] }
 0x23d   :  { %v3392_v5 = vrot.slane %v9822_v45, %v9804_v54  ;;  %v3330_v14 = vsel %vm3275_vm9, %v3329_v38, %v3325_v44  ;;  %v9830_v45 = vmov 0.0|0.0  }
 0x23e   :  { %v3069_v60 = vsel %vm2888_vm8, %v3068_v27, %v3064_v63  ;;  %v9823_v63 = vld [vmem:[#allocation45_spill] sm:$0xff] }
 0x23f   :  { %v8891_v52 = vsel %vm2394_vm4, %v3069_v60, %v3185_v25  ;;  %v540_v29 = vpop.xlane.xlu1 %539  ;;  %v537_v16 = vpop.xlane.xlu0 %536  ;;  %v3388_v28 = vrot.slane %v9823_v63, %v9805_v7  ;;  %v3401_v25 = vrot.slane %v8816_v30, %v9804_v54  ;;  %v3397_v60 = vrot.slane %v8818_v40, %v9805_v7 }
 0x240   :  { %v3140_v2 = vrot.slane %v540_v29, %v6846_v50  ;;  %v3136_v32 = vrot.slane %v537_v16, %v6850_v35 }
 0x241   :  { %v3393_v30 = vsel %vm3275_vm9, %v3392_v5, %v3388_v28  ;;  %v3402_v56 = vsel %vm3275_vm9, %v3401_v25, %v3397_v60  ;;  %v9831_v5 = vld [vmem:[#allocation19_spill] sm:$0xff]  ;;  %v9833_v28 = vld [vmem:[#allocation21_spill] sm:$0xff] }
 0x242   :  { %v3141_v4 = vsel %vm2888_vm8, %v3140_v2, %v3136_v32 }
 0x243   :  { %v8900_v9 = vsel %vm2394_vm4, %v3141_v4, %v3192_v34  ;;  %v1247_v49 = vpop.xlane.xlu1 %1246  ;;  %v1244_v10 = vpop.xlane.xlu0 %1243 }
 0x244   :  { %v1343_v47 = vmul.f32 0.0625, %v1247_v49  ;;  %v1342_v36 = vmul.f32 0.0625, %v1244_v10 }
 0x246   :  { %v2708_v13 = vrot.slane %v1343_v47, %v9792_v46  ;;  %v2704_v48 = vrot.slane %v1342_v36, %v9793_v62  ;;  %v9825_v36 = vld [vmem:[#allocation46_spill] sm:$0xff] }
 0x247   :  { %v1295_v8 = vpop.xlane.xlu1 %1294  ;;  %v1292_v58 = vpop.xlane.xlu0 %1291  ;;  %v3567_v26 = vsel %vm2396_vm5, %v3393_v30, %v9825_v36 }
 0x248   :  { %v2709_v37 = vsel %vm2501_vm7, %v2708_v13, %v2704_v48  ;;  %v1359_v55 = vmul.f32 0.0625, %v1295_v8  ;;  %v1358_v21 = vmul.f32 0.0625, %v1292_v58  ;;  %v9826_v8 = vld [vmem:[#allocation23_spill] sm:$0xff]  ;;  %v9827_v58 = vld [vmem:[#allocation22_spill] sm:$0xff] }
 0x249   :  { %v2802_v27 = vsel %vm2400_vm11, %v2709_v37, %v8802_v33  ;;  %v692_v37 = vadd.f32 %v9827_v58, %v9826_v8 }
 0x24a   :  { %v2780_v51 = vrot.slane %v1359_v55, %v9792_v46  ;;  %v2776_v57 = vrot.slane %v1358_v21, %v9793_v62  ;;  %v8923_v31 = vsel %vm109_vm0, %v2415_v20, %v2802_v27  ;;  %v9824_v62 = vld [vmem:[#allocation30_spill] sm:$0xff]  ;;  %v9828_v55 = vld [vmem:[#allocation25_spill] sm:$0xff]  ;;  %v9829_v21 = vld [vmem:[#allocation24_spill] sm:$0xff] }
 0x24b   :  { %v1407_v18 = vpop.xlane.xlu1 %1406  ;;  %v1404_v33 = vpop.xlane.xlu0 %1403  ;;  %v3560_v20 = vsel %vm2396_vm5, %v3321_v61, %v9824_v62  ;;  %v748_v61 = vadd.f32 %v9829_v21, %v9828_v55  ;;  %v9832_v27 = vld [vmem:[#allocation18_spill] sm:$0xff]  ;;  %v693_v25 = vrot.slane %v692_v37, 4  ;;  %v9837_v62 = vld [vmem:[#allocation32_spill] sm:$0xff] }
 0x24c   :  { %v2781_v29 = vsel %vm2501_vm7, %v2780_v51, %v2776_v57  ;;  %v3338_v16 = vrot.slane %v1407_v18, %v9804_v54  ;;  %v3334_v46 = vrot.slane %v1404_v33, %v9805_v7  ;;  %v3561_v40 = vsel %vm2398_vm10, %v3330_v14, %v3560_v20  ;;  %v9834_v51 = vld [vmem:[#allocation20_spill] sm:$0xff]  ;;  %v9835_v18 = vld [vmem:[#allocation29_spill] sm:$0xff]  ;;  %v9838_v20 = vld [vmem:[#allocation31_spill] sm:$0xff] }
 0x24d   :  { %v2809_v2 = vsel %vm2400_vm11, %v2781_v29, %v8814_v42  ;;  %v608_v63 = vadd.f32 %v9832_v27, %v9831_v5  ;;  %v749_v60 = vrot.slane %v748_v61, 4  ;;  %v9836_v33 = vld [vmem:[#allocation28_spill] sm:$0xff] }
 0x24e   :  { %v3339_v32 = vsel %vm3275_vm9, %v3338_v16, %v3334_v46  ;;  %v8941_v11 = vsel %vm109_vm0, %v2422_v43, %v2809_v2  ;;  %v3568_v43 = vsel %vm2398_vm10, %v3402_v56, %v3567_v26  ;;  %v699_v29 = vadd.f32 %v9836_v33, %v9835_v18  ;;  %v9846_v33 = vld [vmem:[#allocation89_spill] sm:$0xff] }
 0x24f   :  { %v1455_v34 = vpop.xlane.xlu1 %1454  ;;  %v1452_v4 = vpop.xlane.xlu0 %1451  ;;  %v3562_v49 = vsel %vm2400_vm11, %v3339_v32, %v3561_v40  ;;  %v609_v16 = vrot.slane %v608_v63, 4  ;;  %v755_v2 = vadd.f32 %v9838_v20, %v9837_v62  ;;  %v694_v40 = vadd.f32 %v693_v25, %v692_v37  ;;  %v9844_v25 = vld [vmem:[#allocation87_spill] sm:$0xff] }
 0x250   :  { %v3410_v10 = vrot.slane %v1455_v34, %v9804_v54  ;;  %v3406_v42 = vrot.slane %v1452_v4, %v9805_v7  ;;  %v3598_v47 = vsel %vm3597_vm14, %v8735_v23, %v3562_v49  ;;  %v750_v56 = vadd.f32 %v749_v60, %v748_v61  ;;  %v9839_v34 = vld [vmem:[#allocation57_spill] sm:$0xff]  ;;  %v9845_v60 = vld [vmem:[#allocation83_spill] sm:$0xff] }
 0x251   :  { %v9840_v4 = vld [vmem:[#allocation53_spill] sm:$0xff]  ;;  %v756_v36 = vrot.slane %v755_v2, 4  ;;  %v713_v18 = vadd.f32 %v9845_v60, %v9844_v25 }
 0x252   :  { %v3411_v59 = vsel %vm3275_vm9, %v3410_v10, %v3406_v42  ;;  %v706_v49 = vadd.f32 %v9840_v4, %v9839_v34  ;;  %v700_v10 = vrot.slane %v699_v29, 4  ;;  %v610_v42 = vadd.f32 %v609_v16, %v608_v63  ;;  %v9842_v63 = vld [vmem:[#allocation61_spill] sm:$0xff]  ;;  %v9847_v16 = vld [vmem:[#allocation52_spill] sm:$0xff] }
 0x253   :  { %v8953_v6 = vpop.xlane.xlu1 %1478  ;;  %v8955_v41 = vpop.xlane.xlu0 %1475  ;;  %v3569_v13 = vsel %vm2400_vm11, %v3411_v59, %v3568_v43  ;;  %v695_v43 = vrot.slane %v694_v40, 2  ;;  %v757_v55 = vadd.f32 %v756_v36, %v755_v2  ;;  %v714_v36 = vrot.slane %v713_v18, 4 }
 0x254   :  { %v3599_v48 = vsel %vm3597_vm14, %v8752_v22, %v3569_v13  ;;  %v664_v22 = vadd.f32 %v9834_v51, %v9833_v28  ;;  %v751_v13 = vrot.slane %v750_v56, 2  ;;  %v611_v8 = vrot.slane %v610_v42, 2  ;;  %v9843_v28 = vld [vmem:[#allocation58_spill] sm:$0xff] }
 0x255   :  { %v5359_v38 = vpack.c.bf16 %v3599_v48, %v3598_v47  ;;  %v707_v48 = vrot.slane %v706_v49, 4  ;;  %v696_v61 = vadd.f32 %v695_v43, %v694_v40  ;;  %v762_v51 = vadd.f32 %v9843_v28, %v9842_v63 }
 0x256   :  { %v665_v46 = vrot.slane %v664_v22, 4  ;;  %v752_v5 = vadd.f32 %v751_v13, %v750_v56  ;;  %v758_v20 = vrot.slane %v757_v55, 2 }
 0x257   :  { %v8960_v44 = vpop.xlane.xlu1 %1526  ;;  %5360 = vmatpush3.bf16.msra.mxu0 %v5359_v38  ;;  %v8962_v23 = vpop.xlane.xlu0 %1523  ;;  %v701_v38 = vadd.f32 %v700_v10, %v699_v29  ;;  %v708_v27 = vadd.f32 %v707_v48, %v706_v49  ;;  %v769_v29 = vadd.f32 %v9847_v16, %v9846_v33  ;;  %v697_v4 = vrot.slane %v696_v61, 1 }
 0x258   :  { %5361 = vmatprep.subr.bf16.mxu0 %v9830_v45  ;;  %v666_v47 = vadd.f32 %v665_v46, %v664_v22  ;;  %v612_v46 = vadd.f32 %v611_v8, %v610_v42  ;;  %v753_v10 = vrot.slane %v752_v5, 1  ;;  %v763_v56 = vrot.slane %v762_v51, 4 }
 0x259   :  { %v702_v22 = vrot.slane %v701_v38, 2  ;;  %v709_v40 = vrot.slane %v708_v27, 2  ;;  %v770_v43 = vrot.slane %v769_v29, 4  ;;  %v759_v63 = vadd.f32 %v758_v20, %v757_v55 }
 0x25a   :  { %v667_v58 = vrot.slane %v666_v47, 2  ;;  %v613_v13 = vrot.slane %v612_v46, 1  ;;  %v698_v60 = vadd.f32 %v697_v4, %v696_v61  ;;  %v754_v42 = vadd.f32 %v753_v10, %v752_v5  ;;  %v9848_v5 = vld [vmem:[#allocation70_spill] sm:$0xff] }
 0x25b   :  { %v8973_v57 = vpop.xlane.xlu1 %497  ;;  %v8975_v14 = vpop.xlane.xlu0 %494  ;;  %v703_v49 = vadd.f32 %v702_v22, %v701_v38  ;;  %v764_v8 = vadd.f32 %v763_v56, %v762_v51  ;;  %v715_v33 = vadd.f32 %v714_v36, %v713_v18  ;;  %v771_v16 = vadd.f32 %v770_v43, %v769_v29  ;;  %v9850_v18 = vld [vmem:[#allocation114_spill] sm:$0xff]  ;;  %v9851_v29 = vld [vmem:[#allocation105_spill] sm:$0xff] }
 0x25c   :  { %v668_v62 = vadd.f32 %v667_v58, %v666_v47  ;;  %v710_v47 = vadd.f32 %v709_v40, %v708_v27  ;;  %v614_v15 = vadd.f32 %v613_v13, %v612_v46  ;;  %v760_v39 = vrot.slane %v759_v63, 1  ;;  %v9849_v27 = vld [vmem:[#allocation69_spill] sm:$0xff]  ;;  %v9852_v13 = vld [vmem:[#allocation11_spill] sm:$0xff] }
 0x25d   :  { %v704_v58 = vrot.slane %v703_v49, 1  ;;  %v802_v1 = vmul.f32 0.0625, %v698_v60  ;;  %v810_v55 = vmul.f32 0.0625, %v754_v42  ;;  %v765_v53 = vrot.slane %v764_v8, 2  ;;  %v9853_v60 = vld [vmem:[#allocation12_spill] sm:$0xff] }
 0x25e   :  { %v669_v48 = vrot.slane %v668_v62, 1  ;;  %v711_v20 = vrot.slane %v710_v47, 1  ;;  %v772_v61 = vrot.slane %v771_v16, 2  ;;  %v720_v51 = vadd.f32 %v9849_v27, %v9848_v5 }
 0x25f   :  { %v8981_v30 = vpop.xlane.xlu1 %545  ;;  %v8983_v32 = vpop.xlane.xlu0 %542  ;;  %v705_v19 = vadd.f32 %v704_v58, %v703_v49  ;;  %v9011_v4 = vmul.f32 0.0625, %v614_v15  ;;  %v776_v46 = vadd.f32 %v9851_v29, %v9850_v18  ;;  %v3073_v10 = vrot.slane %v8975_v14, %v6850_v35 }
 0x260   :  { %v670_v45 = vadd.f32 %v669_v48, %v668_v62  ;;  %v3077_v62 = vrot.slane %v8973_v57, %v6846_v50  ;;  %v761_v56 = vadd.f32 %v760_v39, %v759_v63  ;;  %v9029_v48 = vsel %vm2392_vm3, %v802_v1, %v9852_v13 }
 0x261   :  { %v9033_v57 = vsel %vm2392_vm3, %v810_v55, %v9853_v60  ;;  %v712_v14 = vadd.f32 %v711_v20, %v710_v47  ;;  %v9035_v42 = vmul.f32 0.0625, %v705_v19  ;;  %v721_v63 = vrot.slane %v720_v51, 4 }
 0x262   :  { %v9019_v40 = vmul.f32 0.0625, %v670_v45  ;;  %v766_v45 = vadd.f32 %v765_v53, %v764_v8  ;;  %v3078_v58 = vsel %vm2888_vm8, %v3077_v62, %v3073_v10  ;;  %v3149_v5 = vrot.slane %v8981_v30, %v6846_v50 }
 0x263   :  { %v8987_v26 = vpop.xlane.xlu1 %1484  ;;  %v8989_v59 = vpop.xlane.xlu0 %1481  ;;  %v3145_v1 = vrot.slane %v8983_v32, %v6850_v35  ;;  %v9042_v27 = vmul.f32 0.0625, %v761_v56  ;;  %v9049_v8 = vmul.f32 0.0625, %v712_v14  ;;  %v3187_v18 = vsel %vm2396_vm5, %v3078_v58, %v8891_v52  ;;  %v9854_v56 = vld [vmem:[#allocation103_spill] sm:$0xff] }
 0x264   :  { %v3428_v10 = vrot.slane %v8675_v12, %v9804_v54 }
 0x267   :  { %v8991_v37 = vpop.xlane.xlu1 %1532  ;;  %v8993_v21 = vpop.xlane.xlu0 %1529 }
 0x268   :  { %9841 = vst [vmem:[#allocation60_spill] sm:$0xff] %v8993_v21  ;;  %v716_v21 = vrot.slane %v715_v33, 2 }
 0x26a   :  { %v717_v39 = vadd.f32 %v716_v21, %v715_v33  ;;  %v767_v33 = vrot.slane %v766_v45, 1 }
 0x26b   :  { %v504_v2 = vpop.xlane.xlu1 %503  ;;  %v501_v34 = vpop.xlane.xlu0 %500 }
 0x26c   :  { %v3086_v49 = vrot.slane %v504_v2, %v6846_v50  ;;  %v3082_v36 = vrot.slane %v501_v34, %v6850_v35  ;;  %v773_v2 = vadd.f32 %v772_v61, %v771_v16  ;;  %v777_v34 = vrot.slane %v776_v46, 4 }
 0x26d   :  { %v718_v32 = vrot.slane %v717_v39, 1  ;;  %v722_v61 = vadd.f32 %v721_v63, %v720_v51  ;;  %v9064_v52 = vadd.f32 %v767_v33, %v766_v45  ;;  %v3446_v33 = vrot.slane %v8953_v6, %v9804_v54 }
 0x26e   :  { %v3087_v55 = vsel %vm2888_vm8, %v3086_v49, %v3082_v36  ;;  %v774_v20 = vrot.slane %v773_v2, 1  ;;  %v778_v29 = vadd.f32 %v777_v34, %v776_v46  ;;  %v3424_v49 = vrot.slane %v9854_v56, %v9805_v7 }
 0x26f   :  { %v9001_v28 = vpop.xlane.xlu1 %551  ;;  %v9003_v25 = vpop.xlane.xlu0 %548  ;;  %v9072_v12 = vadd.f32 %v718_v32, %v717_v39  ;;  %v723_v58 = vrot.slane %v722_v61, 2  ;;  %v3496_v32 = vrot.slane %v8690_v0, %v9805_v7  ;;  %v3527_v56 = vrot.slane %v8991_v37, %v9804_v54 }
 0x270   :  { %v3158_v19 = vrot.slane %v9001_v28, %v6846_v50  ;;  %v3154_v53 = vrot.slane %v9003_v25, %v6850_v35  ;;  %v3150_v28 = vsel %vm2888_vm8, %v3149_v5, %v3145_v1  ;;  %v3188_v25 = vsel %vm2398_vm10, %v3087_v55, %v3187_v18  ;;  %v9855_v1 = vld [vmem:[#allocation62_spill] sm:$0xff]  ;;  %v9856_v55 = vld [vmem:[#allocation77_spill] sm:$0xff] }
 0x271   :  { %v9074_v34 = vadd.f32 %v774_v20, %v773_v2  ;;  %v3194_v5 = vsel %vm2396_vm5, %v3150_v28, %v8900_v9  ;;  %v3419_v45 = vrot.slane %v9855_v1, %v9804_v54  ;;  %v3429_v39 = vsel %vm3275_vm9, %v3428_v10, %v3424_v49  ;;  %v9857_v49 = vld [vmem:[#allocation60_spill] sm:$0xff] }
 0x272   :  { %v3159_v36 = vsel %vm2888_vm8, %v3158_v19, %v3154_v53  ;;  %v3491_v2 = vrot.slane %v8681_v17, %v9804_v54  ;;  %v3500_v17 = vrot.slane %v8688_v24, %v9804_v54  ;;  %v3455_v20 = vrot.slane %v8987_v26, %v9804_v54 }
 0x273   :  { %v9005_v38 = vpop.xlane.xlu1 %1490  ;;  %v9007_v22 = vpop.xlane.xlu0 %1487  ;;  %v724_v6 = vadd.f32 %v723_v58, %v722_v61  ;;  %v3518_v10 = vrot.slane %v8960_v44, %v9804_v54 }
 0x277   :  { %v9023_v43 = vpop.xlane.xlu1 %1538  ;;  %v9025_v15 = vpop.xlane.xlu0 %1535 }
 0x278   :  { %v3536_v44 = vrot.slane %v9023_v43, %v9804_v54 }
 0x27b   :  { %v510_v21 = vpop.xlane.xlu1 %509  ;;  %v507_v47 = vpop.xlane.xlu0 %506 }
 0x27c   :  { %v3095_v30 = vrot.slane %v510_v21, %v6846_v50  ;;  %v3091_v16 = vrot.slane %v507_v47, %v6850_v35  ;;  %v3487_v47 = vrot.slane %v8683_v3, %v9805_v7  ;;  %v3451_v3 = vrot.slane %v8989_v59, %v9805_v7 }
 0x27e   :  { %v3096_v62 = vsel %vm2888_vm8, %v3095_v30, %v3091_v16  ;;  %v3442_v30 = vrot.slane %v8955_v41, %v9805_v7  ;;  %v3464_v41 = vrot.slane %v9005_v38, %v9804_v54  ;;  %v3492_v59 = vsel %vm3275_vm9, %v3491_v2, %v3487_v47 }
 0x27f   :  { %v3189_v51 = vsel %vm2400_vm11, %v3096_v62, %v3188_v25  ;;  %v558_v13 = vpop.xlane.xlu1 %557  ;;  %v555_v60 = vpop.xlane.xlu0 %554  ;;  %v3514_v38 = vrot.slane %v8962_v23, %v9805_v7  ;;  %v3532_v23 = vrot.slane %v9025_v15, %v9805_v7 }
 0x280   :  { %v3167_v46 = vrot.slane %v558_v13, %v6846_v50  ;;  %v3163_v14 = vrot.slane %v555_v60, %v6850_v35  ;;  %v9070_v63 = vsel %vm3592_vm12, %v8923_v31, %v3189_v51  ;;  %v3415_v50 = vrot.slane %v9856_v55, %v9805_v7  ;;  %v9858_v51 = vld [vmem:[#allocation59_spill] sm:$0xff] }
 0x281   :  { %v3195_v35 = vsel %vm2398_vm10, %v3159_v36, %v3194_v5  ;;  %v779_v31 = vrot.slane %v778_v29, 2  ;;  %v3447_v61 = vsel %vm3275_vm9, %v3446_v33, %v3442_v30  ;;  %v3523_v36 = vrot.slane %v9857_v49, %v9805_v7 }
 0x282   :  { %v3168_v19 = vsel %vm2888_vm8, %v3167_v46, %v3163_v14  ;;  %v3420_v18 = vsel %vm3275_vm9, %v3419_v45, %v3415_v50  ;;  %v3519_v45 = vsel %vm3275_vm9, %v3518_v10, %v3514_v38  ;;  %v9860_v10 = vld [vmem:[#allocation63_spill] sm:$0xff]  ;;  %v9861_v38 = vld [vmem:[#allocation78_spill] sm:$0xff] }
 0x283   :  { %v3196_v53 = vsel %vm2400_vm11, %v3168_v19, %v3195_v35  ;;  %v1497_v21 = vpop.xlane.xlu1 %1496  ;;  %v1494_v9 = vpop.xlane.xlu0 %1493  ;;  %v780_v28 = vadd.f32 %v779_v31, %v778_v29  ;;  %v3570_v24 = vsel %vm2388_vm1, %v3429_v39, %v3420_v18  ;;  %v3456_v29 = vsel %vm3275_vm9, %v3455_v20, %v3451_v3  ;;  %v9859_v39 = vld [vmem:[#allocation75_spill] sm:$0xff] }
 0x284   :  { %v9096_v16 = vsel %vm3592_vm12, %v8941_v11, %v3196_v53  ;;  %v3460_v11 = vrot.slane %v9007_v22, %v9805_v7  ;;  %v3473_v0 = vrot.slane %v1497_v21, %v9804_v54  ;;  %v3469_v25 = vrot.slane %v1494_v9, %v9805_v7 }
 0x285   :  { %v3501_v22 = vsel %vm3275_vm9, %v3500_v17, %v3496_v32  ;;  %v3571_v13 = vsel %vm2390_vm2, %v9858_v51, %v3570_v24  ;;  %v725_v35 = vrot.slane %v724_v6, 1  ;;  %v3528_v19 = vsel %vm3275_vm9, %v3527_v56, %v3523_v36 }
 0x286   :  { %v3465_v60 = vsel %vm3275_vm9, %v3464_v41, %v3460_v11  ;;  %v3572_v46 = vsel %vm2392_vm3, %v3447_v61, %v3571_v13  ;;  %v3474_v14 = vsel %vm3275_vm9, %v3473_v0, %v3469_v25  ;;  %v3577_v15 = vsel %vm2388_vm1, %v3501_v22, %v3492_v59 }
 0x287   :  { %v1545_v26 = vpop.xlane.xlu1 %1544  ;;  %v1542_v62 = vpop.xlane.xlu0 %1541  ;;  %v3573_v55 = vsel %vm2394_vm4, %v3456_v29, %v3572_v46  ;;  %v3578_v2 = vsel %vm2390_vm2, %v9859_v39, %v3577_v15  ;;  %v3537_v53 = vsel %vm3275_vm9, %v3536_v44, %v3532_v23  ;;  %v781_v47 = vrot.slane %v780_v28, 1 }
 0x288   :  { %v3545_v37 = vrot.slane %v1545_v26, %v9804_v54  ;;  %v3541_v58 = vrot.slane %v1542_v62, %v9805_v7  ;;  %v3574_v31 = vsel %vm2396_vm5, %v3465_v60, %v3573_v55  ;;  %v3579_v33 = vsel %vm2392_vm3, %v3519_v45, %v3578_v2 }
 0x289   :  { %v3575_v21 = vsel %vm2398_vm10, %v3474_v14, %v3574_v31  ;;  %v3580_v3 = vsel %vm2394_vm4, %v3528_v19, %v3579_v33  ;;  %v3651_v24 = vsel %vm2394_vm4, %v9035_v42, %v9029_v48  ;;  %v3658_v0 = vsel %vm2394_vm4, %v9042_v27, %v9033_v57 }
 0x28a   :  { %v3546_v30 = vsel %vm3275_vm9, %v3545_v37, %v3541_v58  ;;  %v812_v25 = vmul.f32 0.0625, %v9064_v52  ;;  %v3581_v26 = vsel %vm2396_vm5, %v3537_v53, %v3580_v3  ;;  %v805_v62 = vmul.f32 0.0625, %v9072_v12  ;;  %v3975_v3 = vld [vmem:[%s9392_s4] sm:$0xff] }
 0x28b   :  { %v1503_v5 = vpop.xlane.xlu1 %1502  ;;  %v1500_v1 = vpop.xlane.xlu0 %1499  ;;  %v3647_v48 = vsel %vm2400_vm11, %v9019_v40, %v9860_v10  ;;  %v3640_v57 = vsel %vm2400_vm11, %v9011_v4, %v9861_v38  ;;  %v813_v52 = vmul.f32 0.0625, %v9074_v34  ;;  %v3652_v22 = vsel %vm2396_vm5, %v9049_v8, %v3651_v24  ;;  %v3894_v8 = vld [vmem:[%s9390_s2] sm:$0xff] }
 0x28c   :  { %v3482_v50 = vrot.slane %v1503_v5, %v9804_v54  ;;  %v3478_v43 = vrot.slane %v1500_v1, %v9805_v7  ;;  %v3659_v40 = vsel %vm2396_vm5, %v812_v25, %v3658_v0  ;;  %v3653_v23 = vsel %vm2398_vm10, %v805_v62, %v3652_v22 }
 0x28d   :  { %v9862_v37 = vmov 0.0|0.0   ;;  %v9863_v19 = vmov 0.0   ;;  %vm4073_vm1 = vcmask 285696   ;;  %vm4315_vm2 = vcmask 916480  }
 0x28e   :  { %v3483_v9 = vsel %vm3275_vm9, %v3482_v50, %v3478_v43  ;;  %vm4777_vm3 = vcmask 64512  }
 0x28f   :  { %v1551_v17 = vpop.xlane.xlu1 %1550  ;;  %v1548_v32 = vpop.xlane.xlu0 %1547  ;;  %v3576_v20 = vsel %vm2400_vm11, %v3483_v9, %v3575_v21 }
 0x290   :  { %v3554_v18 = vrot.slane %v1551_v17, %v9804_v54  ;;  %v3550_v41 = vrot.slane %v1548_v32, %v9805_v7  ;;  %v3600_v11 = vsel %vm3597_vm14, %v9070_v63, %v3576_v20  ;;  %v726_v54 = vadd.f32 %v725_v35, %v724_v6 }
 0x291   :  { %v3582_v7 = vsel %vm2398_vm10, %v3546_v30, %v3581_v26  ;;  %v782_v63 = vadd.f32 %v781_v47, %v780_v28 }
 0x292   :  { %v3555_v59 = vsel %vm3275_vm9, %v3554_v18, %v3550_v41  ;;  %v806_v51 = vmul.f32 0.0625, %v726_v54 }
 0x293   :  { %v5458_v61 = vpop.permute.xlu1 %5457  ;;  %v5453_v42 = vpop.permute.xlu0 %5452  ;;  %v3583_v27 = vsel %vm2400_vm11, %v3555_v59, %v3582_v7  ;;  %v814_v13 = vmul.f32 0.0625, %v782_v63  ;;  %v9864_v7 = vld [vmem:[#allocation13_spill] sm:$0xff] }
 0x294   :  { %v5455_v12 = vunpack.i.h.bf16 %v5453_v42  ;;  %v5454_v6 = vunpack.i.l.bf16 %v5453_v42  ;;  %v5460_v28 = vunpack.i.h.bf16 %v5458_v61  ;;  %v5459_v29 = vunpack.i.l.bf16 %v5458_v61  ;;  %v4062_v63 = vld [vmem:[%s9399_s11] sm:$0x7f]  ;;  %s5732_s11 = smov 4  }
 0x295   :  { %v3601_v56 = vsel %vm3597_vm14, %v9096_v16, %v3583_v27  ;;  %v3660_v16 = vsel %vm2398_vm10, %v813_v52, %v3659_v40  ;;  %v3654_v45 = vsel %vm2400_vm11, %v806_v51, %v3653_v23  ;;  %v4100_v59 = vsub.s32 1, %v9864_v7  ;;  %v4063_v40 = vld [vmem:[%s9400_s12] sm:$0x7f]  ;;  %s5735_s12 = smov 127  }
 0x296   :  { %v3883_v49 = vsel %vm109_vm0, %v3647_v48, %v5455_v12  ;;  %v3882_v4 = vsel %vm109_vm0, %v3640_v57, %v5454_v6  ;;  %v5362_v36 = vpack.c.bf16 %v3601_v56, %v3600_v11  ;;  %v3661_v55 = vsel %vm2400_vm11, %v814_v13, %v3660_v16 }
 0x297   :  { %v5463_v34 = vpop.permute.xlu1 %5462  ;;  %v3886_v46 = vsel %vm3592_vm12, %v3882_v4, %v5459_v29  ;;  %v3887_v14 = vsel %vm3592_vm12, %v3883_v49, %v5460_v28  ;;  %v5473_v58 = vpop.permute.xlu0 %5472  ;;  %v4101_v10 = vrot.slane %v4062_v63, %v4100_v59  ;;  %v4120_v48 = vsub.s32 2, %v9864_v7 }
 0x298   :  { %v5465_v60 = vunpack.i.h.bf16 %v5463_v34  ;;  %v5464_v44 = vunpack.i.l.bf16 %v5463_v34  ;;  %5363 = vmatpush3.bf16.msra.mxu0 %v5362_v36  ;;  %v5475_v31 = vunpack.i.h.bf16 %v5473_v58  ;;  %v5474_v39 = vunpack.i.l.bf16 %v5473_v58 }
 0x299   :  { %5370 = vmatprep.subr.bf16.mxu0 %v9862_v37  ;;  %v4121_v42 = vrot.slane %v4062_v63, %v4120_v48  ;;  %v4140_v38 = vsub.s32 3, %v9864_v7  ;;  %v4160_v27 = vsub.s32 4, %v9864_v7  ;;  %v4180_v12 = vsub.s32 5, %v9864_v7 }
 0x29a   :  { %v3890_v5 = vsel %vm3597_vm14, %v3886_v46, %v5464_v44  ;;  %v3891_v1 = vsel %vm3597_vm14, %v3887_v14, %v5465_v60  ;;  %v4200_v22 = vsub.s32 6, %v9864_v7  ;;  %v4111_v49 = vrot.slane %v4063_v40, %v4100_v59 }
 0x29b   :  { %5283 = vmatmul.mubr.msk.f32.vlgmr.msra.gmra.mrb[0].mxu0 %vm3592_vm12, %v3894_v8  ;;  %v5468_v50 = vpop.permute.xlu1 %5467  ;;  %v5365_v43 = vpack.c.bf16 %v3891_v1, %v3890_v5  ;;  %v4141_v57 = vrot.slane %v4062_v63, %v4140_v38  ;;  %v4161_v52 = vrot.slane %v4062_v63, %v4160_v27  ;;  %v4181_v6 = vrot.slane %v4062_v63, %v4180_v12 }
 0x29c   :  { %v5470_v35 = vunpack.i.h.bf16 %v5468_v50  ;;  %v5469_v15 = vunpack.i.l.bf16 %v5468_v50  ;;  %5324 = vmatprep.mubr.msk.f32.mxu0 %vm5725_vm13, %v9863_v19  ;;  %v4201_v28 = vrot.slane %v4062_v63, %v4200_v22  ;;  %v4131_v4 = vrot.slane %v4063_v40, %v4120_v48 }
 0x29d   :  { %5366 = vmatpush3.bf16.msra.mxu1 %v5365_v43  ;;  %v4151_v36 = vrot.slane %v4063_v40, %v4140_v38  ;;  %v4171_v51 = vrot.slane %v4063_v40, %v4160_v27  ;;  %v4191_v13 = vrot.slane %v4063_v40, %v4180_v12  ;;  %v4211_v34 = vrot.slane %v4063_v40, %v4200_v22 }
 0x29e   :  { %v3885_v2 = vsel %vm109_vm0, %v3661_v55, %v5470_v35  ;;  %v3884_v53 = vsel %vm109_vm0, %v3654_v45, %v5469_v15  ;;  %5367 = vmatprep.subr.bf16.mxu1 %v9862_v37  ;;  %v4088_v23 = vsub.s32 0, %v9864_v7 }
 0x29f   :  { %v5478_v21 = vpop.permute.xlu1 %5477  ;;  %v3889_v33 = vsel %vm3592_vm12, %v3885_v2, %v5475_v31  ;;  %v3888_v30 = vsel %vm3592_vm12, %v3884_v53, %v5474_v39  ;;  %v3899_v18 = vpop.permute.xlu0 %3898 }
 0x2a0   :  { %v5480_v9 = vunpack.i.h.bf16 %v5478_v21  ;;  %v5479_v47 = vunpack.i.l.bf16 %v5478_v21  ;;  %v4089_v14 = vrot.slane %v4062_v63, %v4088_v23 }
 0x2a2   :  { %v3892_v17 = vsel %vm3597_vm14, %v3888_v30, %v5479_v47  ;;  %v3893_v32 = vsel %vm3597_vm14, %v3889_v33, %v5480_v9 }
 0x2a3   :  { %v5368_v20 = vpack.c.bf16 %v3893_v32, %v3892_v17  ;;  %v3980_v25 = vpop.permute.xlu1 %3979  ;;  %v4095_v17 = vrot.slane %v4063_v40, %v4088_v23 }
 0x2a5   :  { %5369 = vmatpush3.bf16.msra.mxu1 %v5368_v20 }
 0x2a6   :  { %5391 = vmatprep.subr.bf16.mxu1 %v9862_v37 }
 0x2a8   :  { %5294 = vmatmul.mubr.msk.f32.vlgmr.msra.gmra.mrb[0].mxu1 %vm3592_vm12, %v3975_v3 }
 0x2a9   :  { %5355 = vmatprep.mubr.msk.f32.mxu1 %vm5725_vm13, %v9863_v19 }
 0x36e   :  { %v3970_v41 = vpop.f32.mrb[0].mxu0 }
 0x36f   :  { %v3971_v11 = vadd.f32 %v3970_v41, %v3899_v18  ;;  %v5284_v24 = vpop.f32.mrb[1].mxu0 }
 0x371   :  { %v3974_v0 = vmax.f32 %v3971_v11, 0.0 }
 0x373   :  { %4057 = vrot.lane.b32.xlu1 %v3974_v0, %s5728_s26 }
 0x377   :  { %4064 = vrot.lane.b32.xlu1 %v3974_v0, %s5729_s27 }
 0x37b   :  { %v4051_v26 = vpop.f32.mrb[0].mxu1 }
 0x37c   :  { %v4052_v62 = vadd.f32 %v4051_v26, %v3980_v25  ;;  %v5295_v54 = vpop.f32.mrb[1].mxu1 }
 0x37e   :  { %v4055_v61 = vmax.f32 %v4052_v62, 0.0 }
 0x380   :  { %4076 = vrot.lane.b32.xlu1 %v4055_v61, %s5729_s27  ;;  %4060 = vrot.lane.b32.xlu0 %v4055_v61, %s5728_s26  ;;  %s5119_s26 = sshll.u32 %s5742_s25, 4  ;;  %s5120_s26 = int_to_ptr.vmem [resolvable:$true] %s5119_s26 }
 0x381   :  { %p5702_p1 = scmp.lt.s32.totalorder %s5120_s26, %s5120_s26 }
 0x384   :  { %4103 = vrot.lane.b32.xlu1 %v4101_v10, %s5730_s29 }
 0x388   :  { %4123 = vrot.lane.b32.xlu1 %v4121_v42, %s5731_s30 }
 0x38c   :  { %4143 = vrot.lane.b32.xlu1 %v4141_v57, %s5729_s27 }
 0x390   :  { %4163 = vrot.lane.b32.xlu1 %v4161_v52, %s5732_s11 }
 0x394   :  { %4183 = vrot.lane.b32.xlu1 %v4181_v6, %s5733_s14 }
 0x398   :  { %4203 = vrot.lane.b32.xlu1 %v4201_v28, %s5734_s15 }
 0x3e5   :  { %v4058_v29 = vpop.permute.xlu1 %4057 }
 0x3e6   :  { %4066 = vrot.lane.b32.xlu0 %v4058_v29, %s5729_s27 }
 0x3e9   :  { %v4065_v60 = vpop.permute.xlu1 %4064 }
 0x3ea   :  { %v4071_v46 = vsel %vm4070_vm15, 0.0, %v4065_v60 }
 0x3eb   :  { %v4074_v58 = vsel %vm4073_vm1, %v4071_v46, 0.0 }
 0x3ec   :  { %v4090_v35 = vmul.f32 %v4089_v14, %v4074_v58 }
 0x3f2   :  { %v4061_v56 = vpop.permute.xlu0 %4060  ;;  %v4077_v44 = vpop.permute.xlu1 %4076 }
 0x3f3   :  { %4078 = vrot.lane.b32.xlu0 %v4061_v56, %s5729_s27  ;;  %v4082_v33 = vsel %vm4070_vm15, 0.0, %v4077_v44 }
 0x3f4   :  { %v4084_v32 = vsel %vm4073_vm1, %v4082_v33, 0.0 }
 0x3f5   :  { %v4096_v25 = vmul.f32 %v4095_v17, %v4084_v32 }
 0x3f6   :  { %v4104_v8 = vpop.permute.xlu1 %4103 }
 0x3f7   :  { %4113 = vrot.lane.b32.xlu0 %v4111_v49, %s5730_s29  ;;  %v4106_v50 = vmul.f32 %v4104_v8, %v4074_v58 }
 0x3fa   :  { %v4124_v16 = vpop.permute.xlu1 %4123 }
 0x3fb   :  { %4133 = vrot.lane.b32.xlu0 %v4131_v4, %s5731_s30  ;;  %v4126_v53 = vmul.f32 %v4124_v16, %v4074_v58 }
 0x3fe   :  { %v4144_v45 = vpop.permute.xlu1 %4143 }
 0x3ff   :  { %4153 = vrot.lane.b32.xlu0 %v4151_v36, %s5729_s27  ;;  %v4146_v30 = vmul.f32 %v4144_v45, %v4074_v58  ;;  %s5697_s27 = scalar_lea.vmem %s5120_s26, 2048 }
 0x400   :  { %p5698_p0 = scmp.ne.s32.totalorder %s5120_s26, %s5697_s27  ;;  %p5703_p2 = scmp.lt.s32.totalorder %s5697_s27, %s5697_s27 }
 0x402   :  { %v4164_v21 = vpop.permute.xlu1 %4163  ;;  %p5704_p3 = por %p5703_p2, %p5702_p1 }
 0x403   :  { %4173 = vrot.lane.b32.xlu0 %v4171_v51, %s5732_s11  ;;  %v4166_v24 = vmul.f32 %v4164_v21, %v4074_v58 }
 0x404   :  { %p5705_p4 = pnand %p5704_p3, %p5698_p0 }
 0x406   :  { %v4184_v41 = vpop.permute.xlu1 %4183 }
 0x407   :  { %4193 = vrot.lane.b32.xlu0 %v4191_v13, %s5733_s14  ;;  %v4186_v10 = vmul.f32 %v4184_v41, %v4074_v58 }
 0x40a   :  { %v4204_v48 = vpop.permute.xlu1 %4203 }
 0x40b   :  { %4213 = vrot.lane.b32.xlu0 %v4211_v34, %s5734_s15  ;;  %v4206_v6 = vmul.f32 %v4204_v48, %v4074_v58 }
 0x458   :  { %v4067_v5 = vpop.permute.xlu0 %4066 }
 0x459   :  { %v4072_v1 = vsel %vm4070_vm15, 0.0, %v4067_v5 }
 0x45a   :  { %v4075_v55 = vsel %vm4073_vm1, %v4072_v1, 0.0 }
 0x45b   :  { %v4107_v43 = vmul.f32 %v4104_v8, %v4075_v55  ;;  %v4091_v15 = vmul.f32 %v4089_v14, %v4075_v55  ;;  %v4127_v2 = vmul.f32 %v4124_v16, %v4075_v55  ;;  %v4147_v47 = vmul.f32 %v4144_v45, %v4075_v55 }
 0x45c   :  { %v4167_v18 = vmul.f32 %v4164_v21, %v4075_v55  ;;  %v4187_v7 = vmul.f32 %v4184_v41, %v4075_v55  ;;  %v4207_v27 = vmul.f32 %v4204_v48, %v4075_v55 }
 0x45d   :  { %v5508_v31 = vpack.i.bf16 %v4107_v43, %v4106_v50  ;;  %v5371_v39 = vpack.c.bf16 %v4091_v15, %v4090_v35  ;;  %v5513_v9 = vpack.i.bf16 %v4127_v2, %v4126_v53  ;;  %v5518_v3 = vpack.i.bf16 %v4147_v47, %v4146_v30 }
 0x45e   :  { %v5523_v54 = vpack.i.bf16 %v4167_v18, %v4166_v24  ;;  %v5528_v57 = vpack.i.bf16 %v4187_v7, %v4186_v10  ;;  %v5533_v29 = vpack.i.bf16 %v4207_v27, %v4206_v6  ;;  %v4464_v24 = vld [vmem:[%s9397_s9 + $0x8] sm:$0xff]  ;;  %v4465_v10 = vld [vmem:[%s9397_s9 + $0x10] sm:$0xff]  ;;  %v4314_v27 = vld [vmem:[%s9394_s6] sm:$0xff] }
 0x45f   :  { %5509 = vrot.lane.b32.xlu1 %v5508_v31, %s5735_s12  ;;  %5372 = vmatpush3.bf16.msra.mxu0 %v5371_v39 }
 0x460   :  { %5373 = vmatprep.subr.bf16.mxu0 %v9862_v37 }
 0x463   :  { %5514 = vrot.lane.b32.xlu1 %v5513_v9, %s5736_s18 }
 0x465   :  { %v4079_v20 = vpop.permute.xlu0 %4078 }
 0x466   :  { %v4083_v11 = vsel %vm4070_vm15, 0.0, %v4079_v20 }
 0x467   :  { %v4085_v0 = vsel %vm4073_vm1, %v4083_v11, 0.0  ;;  %5519 = vrot.lane.b32.xlu1 %v5518_v3, %s5737_s0 }
 0x468   :  { %v4097_v26 = vmul.f32 %v4095_v17, %v4085_v0 }
 0x469   :  { %v4114_v62 = vpop.permute.xlu0 %4113 }
 0x46a   :  { %v4116_v59 = vmul.f32 %v4114_v62, %v4084_v32  ;;  %v4117_v63 = vmul.f32 %v4114_v62, %v4085_v0  ;;  %v5392_v61 = vpack.c.bf16 %v4097_v26, %v4096_v25 }
 0x46b   :  { %5524 = vrot.lane.b32.xlu1 %v5523_v54, %s5738_s19 }
 0x46c   :  { %v5483_v42 = vpack.i.bf16 %v4117_v63, %v4116_v59  ;;  %5393 = vmatpush3.bf16.msra.mxu1 %v5392_v61  ;;  %v4463_v61 = vld [vmem:[%s9397_s9] sm:$0xff] }
 0x46d   :  { %v4134_v38 = vpop.permute.xlu0 %4133  ;;  %5394 = vmatprep.subr.bf16.mxu1 %v9862_v37 }
 0x46e   :  { %v4136_v52 = vmul.f32 %v4134_v38, %v4084_v32  ;;  %v4137_v12 = vmul.f32 %v4134_v38, %v4085_v0  ;;  %5484 = vrot.lane.b32.xlu0 %v5483_v42, %s5735_s12 }
 0x46f   :  { %5529 = vrot.lane.b32.xlu1 %v5528_v57, %s5739_s21 }
 0x470   :  { %v5488_v22 = vpack.i.bf16 %v4137_v12, %v4136_v52  ;;  %v5414_v52 = vpack.c.bf16 %v4465_v10, %v4463_v61 }
 0x471   :  { %v4154_v28 = vpop.permute.xlu0 %4153 }
 0x472   :  { %v4156_v56 = vmul.f32 %v4154_v28, %v4084_v32  ;;  %v4157_v40 = vmul.f32 %v4154_v28, %v4085_v0  ;;  %5489 = vrot.lane.b32.xlu0 %v5488_v22, %s5736_s18  ;;  %s5741_s18 = smov 112  }
 0x473   :  { %5534 = vrot.lane.b32.xlu1 %v5533_v29, %s5740_s22 }
 0x474   :  { %v5493_v49 = vpack.i.bf16 %v4157_v40, %v4156_v56 }
 0x475   :  { %v4174_v4 = vpop.permute.xlu0 %4173 }
 0x476   :  { %v4176_v36 = vmul.f32 %v4174_v4, %v4084_v32  ;;  %v4177_v51 = vmul.f32 %v4174_v4, %v4085_v0  ;;  %5494 = vrot.lane.b32.xlu0 %v5493_v49, %s5737_s0 }
 0x478   :  { %v5498_v13 = vpack.i.bf16 %v4177_v51, %v4176_v36  ;;  %v4468_v36 = vld [vmem:[%s9398_s10 + $0x8] sm:$0xff]  ;;  %v4470_v51 = vld [vmem:[%s9398_s10 + $0x18] sm:$0xff] }
 0x479   :  { %v4194_v34 = vpop.permute.xlu0 %4193 }
 0x47a   :  { %v4196_v60 = vmul.f32 %v4194_v34, %v4084_v32  ;;  %v4197_v44 = vmul.f32 %v4194_v34, %v4085_v0  ;;  %5499 = vrot.lane.b32.xlu0 %v5498_v13, %s5738_s19 }
 0x47c   :  { %v5503_v8 = vpack.i.bf16 %v4197_v44, %v4196_v60  ;;  %v5416_v44 = vpack.c.bf16 %v4470_v51, %v4468_v36 }
 0x47d   :  { %v4214_v23 = vpop.permute.xlu0 %4213 }
 0x47e   :  { %v4216_v16 = vmul.f32 %v4214_v23, %v4084_v32  ;;  %v4217_v46 = vmul.f32 %v4214_v23, %v4085_v0  ;;  %5504 = vrot.lane.b32.xlu0 %v5503_v8, %s5739_s21  ;;  %v4466_v0 = vld [vmem:[%s9397_s9 + $0x18] sm:$0xff]  ;;  %v4467_v8 = vld [vmem:[%s9398_s10] sm:$0xff]  ;;  %v4469_v23 = vld [vmem:[%s9398_s10 + $0x10] sm:$0xff] }
 0x47f   :  { %v5412_v63 = vpack.c.bf16 %v4466_v0, %v4464_v24 }
 0x480   :  { %v5538_v14 = vpack.i.bf16 %v4217_v46, %v4216_v16  ;;  %v4389_v46 = vld [vmem:[%s9395_s7] sm:$0xff] }
 0x482   :  { %5539 = vrot.lane.b32.xlu0 %v5538_v14, %s5740_s22  ;;  %v5418_v14 = vpack.c.bf16 %v4469_v23, %v4467_v8 }
 0x4d1   :  { %v5510_v58 = vpop.permute.xlu1 %5509 }
 0x4d2   :  { %v5512_v5 = vunpack.i.h.bf16 %v5510_v58  ;;  %v5511_v1 = vunpack.i.l.bf16 %v5510_v58 }
 0x4d4   :  { %v5374_v45 = vpack.c.bf16 %v5512_v5, %v5511_v1 }
 0x4d5   :  { %v5515_v55 = vpop.permute.xlu1 %5514 }
 0x4d6   :  { %v5517_v50 = vunpack.i.h.bf16 %v5515_v55  ;;  %v5516_v43 = vunpack.i.l.bf16 %v5515_v55  ;;  %5375 = vmatpush3.bf16.msra.mxu0 %v5374_v45 }
 0x4d7   :  { %5376 = vmatprep.subr.bf16.mxu0 %v9862_v37 }
 0x4d8   :  { %v5377_v35 = vpack.c.bf16 %v5517_v50, %v5516_v43 }
 0x4d9   :  { %v5520_v15 = vpop.permute.xlu1 %5519 }
 0x4da   :  { %v5522_v31 = vunpack.i.h.bf16 %v5520_v15  ;;  %v5521_v39 = vunpack.i.l.bf16 %v5520_v15  ;;  %5378 = vmatpush3.bf16.msra.mxu0 %v5377_v35 }
 0x4db   :  { %5379 = vmatprep.subr.bf16.mxu0 %v9862_v37 }
 0x4dc   :  { %v5380_v2 = vpack.c.bf16 %v5522_v31, %v5521_v39 }
 0x4dd   :  { %v5525_v53 = vpop.permute.xlu1 %5524 }
 0x4de   :  { %v5527_v21 = vunpack.i.h.bf16 %v5525_v53  ;;  %v5526_v9 = vunpack.i.l.bf16 %v5525_v53  ;;  %5381 = vmatpush3.bf16.msra.mxu0 %v5380_v2  ;;  %v4773_v2 = vld [vmem:[%s9396_s8] sm:$0xff]  ;;  %v4774_v53 = vld [vmem:[%s9396_s8 + $0x8] sm:$0xff] }
 0x4df   :  { %5382 = vmatprep.subr.bf16.mxu0 %v9862_v37 }
 0x4e0   :  { %v5383_v47 = vpack.c.bf16 %v5527_v21, %v5526_v9  ;;  %v5485_v33 = vpop.permute.xlu0 %5484  ;;  %v4775_v21 = vld [vmem:[%s9396_s8 + $0x10] sm:$0xff]  ;;  %v4776_v9 = vld [vmem:[%s9396_s8 + $0x18] sm:$0xff] }
 0x4e1   :  { %v5530_v30 = vpop.permute.xlu1 %5529  ;;  %v5487_v17 = vunpack.i.h.bf16 %v5485_v33  ;;  %v5486_v32 = vunpack.i.l.bf16 %v5485_v33 }
 0x4e2   :  { %v5532_v20 = vunpack.i.h.bf16 %v5530_v30  ;;  %v5531_v3 = vunpack.i.l.bf16 %v5530_v30  ;;  %5384 = vmatpush3.bf16.msra.mxu0 %v5383_v47 }
 0x4e3   :  { %v5395_v18 = vpack.c.bf16 %v5487_v17, %v5486_v32  ;;  %5385 = vmatprep.subr.bf16.mxu0 %v9862_v37 }
 0x4e4   :  { %v5386_v41 = vpack.c.bf16 %v5532_v20, %v5531_v3  ;;  %v5490_v11 = vpop.permute.xlu0 %5489 }
 0x4e5   :  { %v5535_v25 = vpop.permute.xlu1 %5534  ;;  %v5492_v26 = vunpack.i.h.bf16 %v5490_v11  ;;  %v5491_v62 = vunpack.i.l.bf16 %v5490_v11  ;;  %5396 = vmatpush3.bf16.msra.mxu1 %v5395_v18 }
 0x4e6   :  { %v5537_v54 = vunpack.i.h.bf16 %v5535_v25  ;;  %v5536_v7 = vunpack.i.l.bf16 %v5535_v25  ;;  %5387 = vmatpush3.bf16.msra.mxu0 %v5386_v41  ;;  %5397 = vmatprep.subr.bf16.mxu1 %v9862_v37 }
 0x4e7   :  { %v5398_v59 = vpack.c.bf16 %v5492_v26, %v5491_v62  ;;  %5388 = vmatprep.subr.bf16.mxu0 %v9862_v37 }
 0x4e8   :  { %v5389_v48 = vpack.c.bf16 %v5537_v54, %v5536_v7  ;;  %v5495_v42 = vpop.permute.xlu0 %5494 }
 0x4e9   :  { %v5497_v38 = vunpack.i.h.bf16 %v5495_v42  ;;  %v5496_v57 = vunpack.i.l.bf16 %v5495_v42  ;;  %5399 = vmatpush3.bf16.msra.mxu1 %v5398_v59 }
 0x4ea   :  { %5390 = vmatpush3.bf16.msra.mxu0 %v5389_v48  ;;  %5400 = vmatprep.subr.bf16.mxu1 %v9862_v37 }
 0x4eb   :  { %v5401_v12 = vpack.c.bf16 %v5497_v38, %v5496_v57  ;;  %5413 = vmatprep.subr.bf16.mxu0 %v5412_v63 }
 0x4ec   :  { %v5500_v6 = vpop.permute.xlu0 %5499 }
 0x4ed   :  { %v5502_v22 = vunpack.i.h.bf16 %v5500_v6  ;;  %v5501_v28 = vunpack.i.l.bf16 %v5500_v6  ;;  %5402 = vmatpush3.bf16.msra.mxu1 %v5401_v12  ;;  %5325 = vmatmul.mubr.msk.f32.vlgmr.msra.gmra.mrb[2].mxu0 %vm4315_vm2, %v4314_v27 }
 0x4ee   :  { %5403 = vmatprep.subr.bf16.mxu1 %v9862_v37  ;;  %5415 = vmatpush1.bf16.msra.mxu0 %v5414_v52 }
 0x4ef   :  { %v5404_v29 = vpack.c.bf16 %v5502_v22, %v5501_v28  ;;  %4538 = vmatprep.mubr.f32.mxu0 %v9863_v19  ;;  %5421 = vmatprep.subr.bf16.mxu0 %v5412_v63 }
 0x4f0   :  { %v5505_v56 = vpop.permute.xlu0 %5504 }
 0x4f1   :  { %v5507_v40 = vunpack.i.h.bf16 %v5505_v56  ;;  %v5506_v49 = vunpack.i.l.bf16 %v5505_v56  ;;  %5405 = vmatpush3.bf16.msra.mxu1 %v5404_v29 }
 0x4f2   :  { %5406 = vmatprep.subr.bf16.mxu1 %v9862_v37 }
 0x4f3   :  { %v5407_v4 = vpack.c.bf16 %v5507_v40, %v5506_v49 }
 0x4f4   :  { %v5540_v13 = vpop.permute.xlu0 %5539 }
 0x4f5   :  { %v5542_v34 = vunpack.i.h.bf16 %v5540_v13  ;;  %v5541_v60 = vunpack.i.l.bf16 %v5540_v13  ;;  %5408 = vmatpush3.bf16.msra.mxu1 %v5407_v4  ;;  %v5065_v13 = vld [vmem:[%s9389_s1 + $0x8] sm:$0xff] }
 0x4f6   :  { %5409 = vmatprep.subr.bf16.mxu1 %v9862_v37 }
 0x4f7   :  { %v5410_v16 = vpack.c.bf16 %v5542_v34, %v5541_v60  ;;  %v5066_v60 = vld [vmem:[%s9389_s1 + $0x10] sm:$0xff] }
 0x4f9   :  { %5411 = vmatpush3.bf16.msra.mxu1 %v5410_v16 }
 0x4fa   :  { %5417 = vmatprep.subr.bf16.mxu1 %v5416_v44 }
 0x4fc   :  { %5356 = vmatmul.mubr.msk.f32.vlgmr.msra.gmra.mrb[2].mxu1 %vm4315_vm2, %v4389_v46 }
 0x4fd   :  { %5419 = vmatpush1.bf16.msra.mxu1 %v5418_v14  ;;  %4612 = vmatprep.mubr.f32.mxu1 %v9863_v19 }
 0x4fe   :  { %5425 = vmatprep.subr.bf16.mxu1 %v5416_v44 }
 0x5c0   :  { %v4385_v37 = vpop.f32.mrb[2].mxu0 }
 0x5c1   :  { %4621 = vrot.lane.b32.xlu1 %v4385_v37, %s5741_s18  ;;  %v5326_v58 = vpop.f32.mrb[3].mxu0  ;;  %5198 = vmatmul.mubr.msk.f32.vlgmr.msra.gmra.mrb[4].mxu0 %vm109_vm0, %v4385_v37  ;;  %v5068_v37 = vld [vmem:[%s9389_s1 + $0x20] sm:$0xff] }
 0x5c2   :  { %5423 = vmatpush1.bf16.msra.mxu0 %v5414_v52  ;;  %4689 = vmatprep.mubr.f32.mxu0 %v9863_v19 }
 0x5cf   :  { %v4459_v5 = vpop.f32.mrb[2].mxu1 }
 0x5d0   :  { %4696 = vrot.lane.b32.xlu0 %v4459_v5, %s5741_s18  ;;  %v5357_v1 = vpop.f32.mrb[3].mxu1  ;;  %5199 = vmatmul.mubr.msk.f32.vlgmr.msra.gmra.mrb[4].mxu1 %vm109_vm0, %v4459_v5 }
 0x5d1   :  { %5427 = vmatpush1.bf16.msra.mxu1 %v5418_v14  ;;  %4764 = vmatprep.mubr.f32.mxu1 %v9863_v19  ;;  %v5067_v14 = vld [vmem:[%s9389_s1 + $0x18] sm:$0xff] }
 0x633   :  { %v4622_v45 = vpop.permute.xlu1 %4621 }
 0x634   :  { %5200 = vmatmul.mubr.msk.f32.vlgmr.msra.gmra.mrb[6].mxu0 %vm109_vm0, %v4622_v45 }
 0x635   :  { %4854 = vmatprep.mubr.f32.mxu0 %v9863_v19 }
 0x642   :  { %v4697_v55 = vpop.permute.xlu0 %4696 }
 0x643   :  { %5201 = vmatmul.mubr.msk.f32.vlgmr.msra.gmra.mrb[6].mxu1 %vm109_vm0, %v4697_v55  ;;  %v5069_v55 = vld [vmem:[%s9389_s1 + $0x28] sm:$0xff] }
 0x644   :  { %4943 = vmatprep.mubr.f32.mxu1 %v9863_v19 }
 0x694   :  { %v4540_v50 = vpop.f32.mrb[4].mxu0 }
 0x695   :  { %v4542_v43 = vpop.f32.mrb[5].mxu0 }
 0x6a3   :  { %v4614_v35 = vpop.f32.mrb[4].mxu1 }
 0x6a4   :  { %v4619_v15 = vmul.f32 %v4614_v35, %v4540_v50  ;;  %v4616_v31 = vpop.f32.mrb[5].mxu1  ;;  %v5070_v50 = vld [vmem:[%s9389_s1 + $0x30] sm:$0xff] }
 0x6a5   :  { %v4620_v39 = vmul.f32 %v4616_v31, %v4542_v43 }
 0x6a7   :  { %4790 = vmatprep.subr.mxu0 %v4620_v39  ;;  %v5071_v39 = vld [vmem:[%s9389_s1 + $0x38] sm:$0xff] }
 0x6a8   :  { %4791 = vmatpush1.msra.mxu0 %v4619_v15 }
 0x6a9   :  { %5202 = vmatmul.mubr.msk.f32.vlgmr.msra.gmra.mrb[8].mxu0 %vm4777_vm3, %v4773_v2 }
 0x6aa   :  { %4860 = vmatprep.mubr.f32.mxu0 %v9863_v19 }
 0x6ad   :  { %5203 = vmatmul.mubr.msk.f32.gmra.mrb[10].mxu0 %vm4777_vm3, %v4774_v53 }
 0x6ae   :  { %4866 = vmatprep.mubr.f32.mxu0 %v9863_v19 }
 0x6b1   :  { %5204 = vmatmul.mubr.msk.f32.gmra.mrb[12].mxu0 %vm4777_vm3, %v4775_v21 }
 0x6b2   :  { %4872 = vmatprep.mubr.f32.mxu0 %v9863_v19 }
 0x6b5   :  { %5205 = vmatmul.mubr.msk.f32.gmra.mrb[14].mxu0 %vm4777_vm3, %v4776_v9 }
 0x707   :  { %v4691_v47 = vpop.f32.mrb[6].mxu0 }
 0x708   :  { %v4693_v33 = vpop.f32.mrb[7].mxu0 }
 0x716   :  { %v4766_v30 = vpop.f32.mrb[6].mxu1 }
 0x717   :  { %v4771_v17 = vmul.f32 %v4766_v30, %v4691_v47  ;;  %v4768_v32 = vpop.f32.mrb[7].mxu1 }
 0x718   :  { %v4772_v20 = vmul.f32 %v4768_v32, %v4693_v33 }
 0x71a   :  { %4879 = vmatprep.subr.mxu1 %v4772_v20 }
 0x71b   :  { %4880 = vmatpush1.msra.mxu1 %v4771_v17 }
 0x71c   :  { %5206 = vmatmul.mubr.msk.f32.vlgmr.msra.gmra.mrb[8].mxu1 %vm4777_vm3, %v4773_v2 }
 0x71d   :  { %4949 = vmatprep.mubr.f32.mxu1 %v9863_v19 }
 0x720   :  { %5207 = vmatmul.mubr.msk.f32.gmra.mrb[10].mxu1 %vm4777_vm3, %v4774_v53 }
 0x721   :  { %4955 = vmatprep.mubr.f32.mxu1 %v9863_v19 }
 0x724   :  { %5208 = vmatmul.mubr.msk.f32.gmra.mrb[12].mxu1 %vm4777_vm3, %v4775_v21 }
 0x725   :  { %4961 = vmatprep.mubr.f32.mxu1 %v9863_v19  ;;  %v5064_v19 = vld [vmem:[%s9389_s1] sm:$0xff] }
 0x728   :  { %5209 = vmatmul.mubr.msk.f32.gmra.mrb[14].mxu1 %vm4777_vm3, %v4776_v9 }
 0x77c   :  { %v4856_v3 = vpop.f32.mrb[8].mxu0 }
 0x77d   :  { %v5210_v18 = vmul.f32 -1.442695, %v4856_v3  ;;  %v4858_v24 = vpop.f32.mrb[9].mxu0 }
 0x77e   :  { %v5211_v0 = vmul.f32 -1.442695, %v4858_v24 }
 0x77f   :  { %5543 = vpow2.f32 %v5210_v18 }
 0x780   :  { %v4862_v25 = vpop.f32.mrb[10].mxu0 }
 0x781   :  { %v5214_v26 = vmul.f32 -1.442695, %v4862_v25  ;;  %v4864_v62 = vpop.f32.mrb[11].mxu0 }
 0x782   :  { %v5215_v54 = vmul.f32 -1.442695, %v4864_v62 }
 0x784   :  { %v4868_v7 = vpop.f32.mrb[12].mxu0 }
 0x785   :  { %v5218_v59 = vmul.f32 -1.442695, %v4868_v7  ;;  %v4870_v63 = vpop.f32.mrb[13].mxu0 }
 0x786   :  { %v5219_v61 = vmul.f32 -1.442695, %v4870_v63 }
 0x788   :  { %v4874_v10 = vpop.f32.mrb[14].mxu0 }
 0x789   :  { %v5544_v41 = vpop.eup %5543  ;;  %v5222_v42 = vmul.f32 -1.442695, %v4874_v10  ;;  %v4876_v57 = vpop.f32.mrb[15].mxu0 }
 0x78a   :  { %v5016_v11 = vadd.f32 1.0, %v5544_v41  ;;  %v5223_v52 = vmul.f32 -1.442695, %v4876_v57 }
 0x78c   :  { %5545 = vrcp.f32 %v5016_v11 }
 0x78d   :  { %5547 = vpow2.f32 %v5211_v0 }
 0x78e   :  { %5549 = vpow2.f32 %v5214_v26 }
 0x78f   :  { %5551 = vpow2.f32 %v5215_v54 }
 0x790   :  { %5553 = vpow2.f32 %v5218_v59 }
 0x791   :  { %5555 = vpow2.f32 %v5219_v61 }
 0x792   :  { %5557 = vpow2.f32 %v5222_v42 }
 0x793   :  { %5559 = vpow2.f32 %v5223_v52 }
 0x796   :  { %v5546_v48 = vpop.eup %5545 }
 0x797   :  { %v5072_v38 = vmul.f32 %v5546_v48, %v5064_v19  ;;  %v5548_v27 = vpop.eup %5547 }
 0x798   :  { %v5550_v12 = vpop.eup %5549  ;;  %v5017_v6 = vadd.f32 1.0, %v5548_v27  ;;  %v5226_v27 = vld [vmem:[%s9389_s1 + $0x40] sm:$0xff] }
 0x799   :  { %5080 = vst [vmem:[#allocation2] sm:$0xff] %v5072_v38  ;;  %v5020_v22 = vadd.f32 1.0, %v5550_v12  ;;  %v5552_v28 = vpop.eup %5551  ;;  %v5227_v12 = vld [vmem:[%s9389_s1 + $0x48] sm:$0xff] }
 0x79a   :  { %5561 = vrcp.f32 %v5017_v6  ;;  %v5554_v29 = vpop.eup %5553  ;;  %v5021_v56 = vadd.f32 1.0, %v5552_v28 }
 0x79b   :  { %5563 = vrcp.f32 %v5020_v22  ;;  %v5024_v40 = vadd.f32 1.0, %v5554_v29  ;;  %v5556_v49 = vpop.eup %5555 }
 0x79c   :  { %5565 = vrcp.f32 %v5021_v56  ;;  %v5558_v4 = vpop.eup %5557  ;;  %v5025_v36 = vadd.f32 1.0, %v5556_v49  ;;  %v5228_v49 = vld [vmem:[%s9389_s1 + $0x50] sm:$0xff] }
 0x79d   :  { %5567 = vrcp.f32 %v5024_v40  ;;  %v5028_v51 = vadd.f32 1.0, %v5558_v4  ;;  %v5560_v34 = vpop.eup %5559  ;;  %v5229_v4 = vld [vmem:[%s9389_s1 + $0x58] sm:$0xff] }
 0x79e   :  { %5569 = vrcp.f32 %v5025_v36  ;;  %v5029_v8 = vadd.f32 1.0, %v5560_v34 }
 0x79f   :  { %5571 = vrcp.f32 %v5028_v51 }
 0x7a0   :  { %5573 = vrcp.f32 %v5029_v8  ;;  %v5231_v8 = vld [vmem:[%s9389_s1 + $0x68] sm:$0xff] }
 0x7a4   :  { %v5562_v44 = vpop.eup %5561 }
 0x7a5   :  { %v5564_v23 = vpop.eup %5563  ;;  %v5073_v16 = vmul.f32 %v5562_v44, %v5065_v13  ;;  %v5230_v44 = vld [vmem:[%s9389_s1 + $0x60] sm:$0xff] }
 0x7a6   :  { %v5074_v46 = vmul.f32 %v5564_v23, %v5066_v60  ;;  %v5566_v58 = vpop.eup %5565 }
 0x7a7   :  { %5081 = vst [vmem:[#allocation2 + $0x8] sm:$0xff] %v5073_v16  ;;  %v5568_v5 = vpop.eup %5567  ;;  %v5075_v1 = vmul.f32 %v5566_v58, %v5067_v14 }
 0x7a8   :  { %5082 = vst [vmem:[#allocation2 + $0x10] sm:$0xff] %v5074_v46  ;;  %v5076_v45 = vmul.f32 %v5568_v5, %v5068_v37  ;;  %v5570_v43 = vpop.eup %5569  ;;  %v5232_v37 = vld [vmem:[%s9389_s1 + $0x70] sm:$0xff] }
 0x7a9   :  { %5083 = vst [vmem:[#allocation2 + $0x18] sm:$0xff] %v5075_v1  ;;  %v5572_v35 = vpop.eup %5571  ;;  %v5077_v15 = vmul.f32 %v5570_v43, %v5069_v55  ;;  %v5233_v1 = vld [vmem:[%s9389_s1 + $0x78] sm:$0xff] }
 0x7aa   :  { %5084 = vst [vmem:[#allocation2 + $0x20] sm:$0xff] %v5076_v45  ;;  %v5078_v31 = vmul.f32 %v5572_v35, %v5070_v50  ;;  %v5574_v2 = vpop.eup %5573 }
 0x7ab   :  { %5085 = vst [vmem:[#allocation2 + $0x28] sm:$0xff] %v5077_v15  ;;  %v5079_v53 = vmul.f32 %v5574_v2, %v5071_v39 }
 0x7ac   :  { %5086 = vst [vmem:[#allocation2 + $0x30] sm:$0xff] %v5078_v31 }
 0x7ad   :  { %5087 = vst [vmem:[#allocation2 + $0x38] sm:$0xff] %v5079_v53 }
 0x7ef   :  { %v4945_v21 = vpop.f32.mrb[8].mxu1 }
 0x7f0   :  { %v5212_v9 = vmul.f32 -1.442695, %v4945_v21  ;;  %v4947_v47 = vpop.f32.mrb[9].mxu1 }
 0x7f1   :  { %v5213_v33 = vmul.f32 -1.442695, %v4947_v47 }
 0x7f2   :  { %5575 = vpow2.f32 %v5212_v9 }
 0x7f3   :  { %5577 = vpow2.f32 %v5213_v33  ;;  %v4951_v30 = vpop.f32.mrb[10].mxu1 }
 0x7f4   :  { %v5216_v17 = vmul.f32 -1.442695, %v4951_v30  ;;  %v4953_v32 = vpop.f32.mrb[11].mxu1 }
 0x7f5   :  { %v5217_v20 = vmul.f32 -1.442695, %v4953_v32 }
 0x7f6   :  { %5579 = vpow2.f32 %v5216_v17 }
 0x7f7   :  { %5581 = vpow2.f32 %v5217_v20  ;;  %v4957_v3 = vpop.f32.mrb[12].mxu1 }
 0x7f8   :  { %v5220_v18 = vmul.f32 -1.442695, %v4957_v3  ;;  %v4959_v41 = vpop.f32.mrb[13].mxu1 }
 0x7f9   :  { %v5221_v11 = vmul.f32 -1.442695, %v4959_v41 }
 0x7fa   :  { %5583 = vpow2.f32 %v5220_v18 }
 0x7fb   :  { %5585 = vpow2.f32 %v5221_v11  ;;  %v4963_v24 = vpop.f32.mrb[14].mxu1 }
 0x7fc   :  { %v5576_v0 = vpop.eup %5575  ;;  %v5224_v25 = vmul.f32 -1.442695, %v4963_v24  ;;  %v4965_v26 = vpop.f32.mrb[15].mxu1 }
 0x7fd   :  { %v5578_v62 = vpop.eup %5577  ;;  %v5018_v54 = vadd.f32 1.0, %v5576_v0  ;;  %v5225_v7 = vmul.f32 -1.442695, %v4965_v26 }
 0x7fe   :  { %v5019_v59 = vadd.f32 1.0, %v5578_v62  ;;  %5587 = vpow2.f32 %v5224_v25 }
 0x7ff   :  { %5589 = vrcp.f32 %v5018_v54 }
 0x800   :  { %v5580_v19 = vpop.eup %5579  ;;  %5591 = vrcp.f32 %v5019_v59 }
 0x801   :  { %v5582_v63 = vpop.eup %5581  ;;  %v5022_v61 = vadd.f32 1.0, %v5580_v19  ;;  %5593 = vpow2.f32 %v5225_v7 }
 0x802   :  { %v5023_v10 = vadd.f32 1.0, %v5582_v63 }
 0x803   :  { %5595 = vrcp.f32 %v5022_v61 }
 0x804   :  { %v5584_v48 = vpop.eup %5583  ;;  %5597 = vrcp.f32 %v5023_v10 }
 0x805   :  { %v5586_v42 = vpop.eup %5585  ;;  %v5026_v38 = vadd.f32 1.0, %v5584_v48 }
 0x806   :  { %v5027_v57 = vadd.f32 1.0, %v5586_v42 }
 0x807   :  { %5599 = vrcp.f32 %v5026_v38 }
 0x808   :  { %v5588_v52 = vpop.eup %5587  ;;  %5601 = vrcp.f32 %v5027_v57 }
 0x809   :  { %v5590_v6 = vpop.eup %5589  ;;  %v5030_v22 = vadd.f32 1.0, %v5588_v52 }
 0x80a   :  { %v5592_v28 = vpop.eup %5591  ;;  %v5097_v29 = vmul.f32 %v5590_v6, %v5226_v27 }
 0x80b   :  { %v5594_v56 = vpop.eup %5593  ;;  %v5098_v40 = vmul.f32 %v5592_v28, %v5227_v12  ;;  %5603 = vrcp.f32 %v5030_v22 }
 0x80c   :  { %5106 = vst [vmem:[#allocation2 + $0x40] sm:$0xff] %v5097_v29  ;;  %v5031_v36 = vadd.f32 1.0, %v5594_v56 }
 0x80d   :  { %v5596_v51 = vpop.eup %5595  ;;  %5107 = vst [vmem:[#allocation2 + $0x48] sm:$0xff] %v5098_v40 }
 0x80e   :  { %v5598_v13 = vpop.eup %5597  ;;  %v5099_v34 = vmul.f32 %v5596_v51, %v5228_v49  ;;  %5605 = vrcp.f32 %v5031_v36 }
 0x80f   :  { %v5100_v60 = vmul.f32 %v5598_v13, %v5229_v4 }
 0x810   :  { %5108 = vst [vmem:[#allocation2 + $0x50] sm:$0xff] %v5099_v34 }
 0x811   :  { %v5600_v23 = vpop.eup %5599  ;;  %5109 = vst [vmem:[#allocation2 + $0x58] sm:$0xff] %v5100_v60 }
 0x812   :  { %v5602_v16 = vpop.eup %5601  ;;  %v5101_v46 = vmul.f32 %v5600_v23, %v5230_v44 }
 0x813   :  { %v5102_v14 = vmul.f32 %v5602_v16, %v5231_v8 }
 0x814   :  { %5110 = vst [vmem:[#allocation2 + $0x60] sm:$0xff] %v5101_v46 }
 0x815   :  { %v5604_v58 = vpop.eup %5603  ;;  %5111 = vst [vmem:[#allocation2 + $0x68] sm:$0xff] %v5102_v14 }
 0x816   :  { %v5103_v5 = vmul.f32 %v5604_v58, %v5232_v37 }
 0x818   :  { %v5606_v45 = vpop.eup %5605  ;;  %5112 = vst [vmem:[#allocation2 + $0x70] sm:$0xff] %v5103_v5 }
 0x819   :  { %v5104_v55 = vmul.f32 %v5606_v45, %v5233_v1 }
 0x81b   :  { %5113 = vst [vmem:[#allocation2 + $0x78] sm:$0xff] %v5104_v55 }
 0x81c   :  { %5708 = shalt.err (!%p5705_p4)
}
 0x81d   :  { %s5709_s6 = scalar_lea.hbm %s9401_s13, 2048 }
 0x81e   :  { %p5710_p5 = scmp.ne.s32.totalorder %s9401_s13, %s5709_s6  ;;  %p5713_p6 = scmp.lt.u32.totalorder %s5709_s6, %s9401_s13 }
 0x820   :  { %p5715_p7 = pnand %p5713_p6, %p5710_p5 }
 0x822   :  { %5718 = shalt.err (!%p5715_p7)
}
 0x823   :  { %s5743_s11 = smov 256  }
 0x824   :  { %5125 = dma.vmem_to_hbm [thread:$0]  %s5120_s26, 2048, %s9401_s13, [#allocation3], %s5743_s11, %s5743_s11, %s5724_s20  }
 0x825   :  { %5719 = dma.done.wait [#allocation3], 2048  }
 0x826   :  { %5720 = vsyncadd [#allocation3], 4294965248 }
 0x827   :  { %5129 = vsyncpa [#allocation3], 1 }

</bundles_post_ra>
